<compile_context>
chip_gen: v7x
topology: tpu7x:2x2x1
jax: 0.10.0
libtpu: 0.0.40
codegen_flags: <defaults>
</compile_context>

<pallas_src>
import numpy as np
import jax
import jax.numpy as jnp
from jax.experimental import pallas as pl
from jax.experimental.pallas import tpu as pltpu

# Small, module-consistent shapes.
B, C, H, W = 2, 8, 16, 16
NUM_CLASSES = 10

WC = W * C            # 128 : lane-dense activation width (w-major, c-minor)
BH = B * H            # 32  : matmul M dimension (batch folded into rows)
N3 = 3 * WC           # 384 : 3 stacked blocks per layer x (W*C) output lanes
ROWS = 32             # padded rows per batch in the VMEM activation scratch
ROFF = 8              # sublane-aligned offset of the activation inside scratch
N_LAYERS = 6          # A, AA, B, BB, C, CC


# ----------------------------------------------------------------------------
# The single fused Pallas kernel
# ----------------------------------------------------------------------------
def fused_network_kernel(x_ref, w_ref, b_ref, pool_ref, wl_ref, lb_ref,
                         o_ref, act_ref):
    """Whole NetworkA forward on VMEM-resident data.

    x_ref   : (B, H, WC)            lane-dense input activation
    w_ref   : (N_LAYERS, 3*WC, N3)  block-Toeplitz conv weights (3 row taps)
    b_ref   : (N_LAYERS, 1, N3)     per-layer stacked conv bias (tiled over w)
    pool_ref: (B, BH)               global-average-pool matrix
    wl_ref  : (WC, NUM_CLASSES)     linear weight tiled over w
    lb_ref  : (1, NUM_CLASSES)      linear bias
    o_ref   : (B, NUM_CLASSES)      logits (only HBM write of the network)
    act_ref : (B, ROWS, WC)         VMEM scratch; rows [ROFF, ROFF+H) hold the
                                    current activation, other rows stay zero
                                    (implements the 'same' padding in H).
    """
    act_ref[...] = jnp.zeros_like(act_ref)
    act_ref[:, ROFF:ROFF + H, :] = x_ref[...]

    for layer in range(N_LAYERS):              # unrolled: 6 layers x 3 blocks
        # Row taps h-1, h, h+1 of the zero-padded activation.
        a0 = act_ref[:, ROFF - 1:ROFF - 1 + H, :].reshape(BH, WC)
        a1 = act_ref[:, ROFF:ROFF + H, :].reshape(BH, WC)
        a2 = act_ref[:, ROFF + 1:ROFF + 1 + H, :].reshape(BH, WC)
        # One (32,128)x(128,384) matmul per row tap; kx taps, W padding and
        # the 3 parallel blocks are folded into the block-Toeplitz weights.
        y = jnp.dot(a0, w_ref[layer, 0:WC, :],
                    preferred_element_type=jnp.float32)
        y += jnp.dot(a1, w_ref[layer, WC:2 * WC, :],
                     preferred_element_type=jnp.float32)
        y += jnp.dot(a2, w_ref[layer, 2 * WC:3 * WC, :],
                     preferred_element_type=jnp.float32)
        y = jnp.maximum(y + b_ref[layer], 0.0)          # per-block bias + ReLU
        # Wired residual sum: next layer consumes the sum of this layer's
        # three block outputs.
        nxt = y[:, 0:WC] + y[:, WC:2 * WC] + y[:, 2 * WC:3 * WC]
        act_ref[:, ROFF:ROFF + H, :] = nxt.reshape(B, H, WC)

    # BlockL: global average pool (as a tiny matmul) + linear.
    act2d = act_ref[:, ROFF:ROFF + H, :].reshape(BH, WC)
    pooled = jnp.dot(pool_ref[...], act2d, preferred_element_type=jnp.float32)
    o_ref[...] = (jnp.dot(pooled, wl_ref[...],
                          preferred_element_type=jnp.float32) + lb_ref[...])


# ----------------------------------------------------------------------------
# Wrapper: one pallas_call for the whole network
# ----------------------------------------------------------------------------
def network_forward_fn(x_nchw, wbig, bbig, pool, wlbig, lin_b):
    # NCHW (PyTorch) -> NHWC -> lane-dense (B, H, W*C)
    x = jnp.transpose(x_nchw, (0, 2, 3, 1)).astype(jnp.float32)
    x = x.reshape(B, H, WC)
    return pl.pallas_call(
        fused_network_kernel,
        out_shape=jax.ShapeDtypeStruct((B, NUM_CLASSES), jnp.float32),
        scratch_shapes=[pltpu.VMEM((B, ROWS, WC), jnp.float32)],
    )(x, wbig, bbig, pool, wlbig, lin_b)


network_forward = jax.jit(network_forward_fn)


# ----------------------------------------------------------------------------
# Deterministic parameter init (18 conv blocks + 1 linear block) + packing
# ----------------------------------------------------------------------------
def init_params(key):
    """Per-block params: 18 x (HWIO 3x3 conv kernel, bias) + linear."""
    n_conv = N_LAYERS * 3
    keys = jax.random.split(key, 2 * n_conv + 2)
    conv_scale = 1.0 / np.sqrt(9.0 * C)
    conv = []
    for i in range(n_conv):
        # HWIO = (kh, kw, Cin, Cout); a PyTorch OIHW kernel maps via
        # w_pt.transpose(2, 3, 1, 0).
        wk = jax.random.normal(keys[2 * i], (3, 3, C, C), jnp.float32) * conv_scale
        bk = jax.random.normal(keys[2 * i + 1], (C,), jnp.float32) * 0.01
        conv.append((wk, bk))
    lin_w = (jax.random.normal(keys[-2], (C, NUM_CLASSES), jnp.float32)
             / np.sqrt(float(C)))
    lin_b = jax.random.normal(keys[-1], (1, NUM_CLASSES), jnp.float32) * 0.01
    return {"conv": conv, "lin_w": lin_w, "lin_b": lin_b}


def pack_params(params):
    """Pack per-block weights into the fused kernel's operands.

    Per layer and row-tap ky, the conv weight becomes a (W*C, 3*W*C)
    block-Toeplitz matrix: entry [wi*C+ci, blk*W*C + wo*C+co] equals
    K_blk[ky, wi-wo+1, ci, co] when |wi-wo| <= 1 and 0 otherwise (which also
    encodes the W-dim zero padding).  Biases are tiled over w.
    """
    wbig = np.zeros((N_LAYERS, 3 * WC, N3), np.float32)
    bbig = np.zeros((N_LAYERS, 1, N3), np.float32)
    for layer in range(N_LAYERS):
        for blk in range(3):
            k = np.asarray(params["conv"][layer * 3 + blk][0])     # (3,3,C,C)
            bias = np.asarray(params["conv"][layer * 3 + blk][1])  # (C,)
            for ky in range(3):
                for kx in range(3):
                    for wo in range(W):
                        wi = wo + kx - 1
                        if 0 <= wi < W:
                            wbig[layer,
                                 ky * WC + wi * C: ky * WC + (wi + 1) * C,
                                 blk * WC + wo * C: blk * WC + (wo + 1) * C] = k[ky, kx]
            for wo in range(W):
                bbig[layer, 0, blk * WC + wo * C: blk * WC + (wo + 1) * C] = bias
    # Global average pool as a (B, B*H) matmul operand (1/(H*W) per own-batch row).
    pool = np.zeros((B, BH), np.float32)
    for b in range(B):
        pool[b, b * H:(b + 1) * H] = 1.0 / (H * W)
    # Linear weight tiled over w so it applies directly to the (w, c) lanes.
    wlbig = np.tile(np.asarray(params["lin_w"]), (W, 1))            # (W*C, 10)
    return (jnp.asarray(wbig), jnp.asarray(bbig), jnp.asarray(pool),
            jnp.asarray(wlbig), jnp.asarray(params["lin_b"]))


if __name__ == "__main__":
    key = jax.random.PRNGKey(0)
    k_param, k_x = jax.random.split(key)
    params = init_params(k_param)
    packed = pack_params(params)
    x = jax.random.normal(k_x, (B, C, H, W), jnp.float32)   # NCHW input
    out = network_forward(x, *packed)
    jax.block_until_ready(out)
    assert out.shape == (B, NUM_CLASSES), out.shape
    print("KERNEL_OK")
</pallas_src>

<mosaic_0001>
module attributes {stable_mosaic.version = 11 : i64} {
  func.func @fused_network_kernel(%arg0: memref<2x16x128xf32, #tpu.memory_space<vmem>>, %arg1: memref<6x384x384xf32, #tpu.memory_space<vmem>>, %arg2: memref<6x1x384xf32, #tpu.memory_space<vmem>>, %arg3: memref<2x32xf32, #tpu.memory_space<vmem>>, %arg4: memref<128x10xf32, #tpu.memory_space<vmem>>, %arg5: memref<1x10xf32, #tpu.memory_space<vmem>>, %arg6: memref<2x10xf32, #tpu.memory_space<vmem>>, %arg7: memref<2x32x128xf32, #tpu.memory_space<vmem>>) attributes {dimension_semantics = [], scalar_prefetch = 0 : i64, scratch_operands = 1 : i64, tpu.core_type = #tpu.core_type<tc>} {
    %cst = arith.constant 0.000000e+00 : f32
    %0 = vector.broadcast %cst : f32 to vector<2x32x128xf32>
    %c0 = arith.constant 0 : index
    %c0_0 = arith.constant 0 : index
    %c0_1 = arith.constant 0 : index
    %1 = vector.load %arg7[%c0, %c0_0, %c0_1] : memref<2x32x128xf32, #tpu.memory_space<vmem>>, vector<2x32x128xf32>
    tpu.vector_store %arg7[%c0, %c0_0, %c0_1], %0 {strides = array<i32>} : memref<2x32x128xf32, #tpu.memory_space<vmem>>, vector<2x32x128xf32>,
    %c0_2 = arith.constant 0 : index
    %c0_3 = arith.constant 0 : index
    %c0_4 = arith.constant 0 : index
    %2 = vector.load %arg0[%c0_2, %c0_3, %c0_4] : memref<2x16x128xf32, #tpu.memory_space<vmem>>, vector<2x16x128xf32>
    %c0_5 = arith.constant 0 : index
    %c8 = arith.constant 8 : index
    %c0_6 = arith.constant 0 : index
    %3 = vector.load %arg7[%c0_5, %c8, %c0_6] : memref<2x32x128xf32, #tpu.memory_space<vmem>>, vector<2x16x128xf32>
    tpu.vector_store %arg7[%c0_5, %c8, %c0_6], %2 {strides = array<i32>} : memref<2x32x128xf32, #tpu.memory_space<vmem>>, vector<2x16x128xf32>,
    %c0_7 = arith.constant 0 : index
    %c7 = arith.constant 7 : index
    %c0_8 = arith.constant 0 : index
    %4 = vector.load %arg7[%c0_7, %c7, %c0_8] : memref<2x32x128xf32, #tpu.memory_space<vmem>>, vector<2x16x128xf32>
    %5 = vector.shape_cast %4 : vector<2x16x128xf32> to vector<32x128xf32>
    %c0_9 = arith.constant 0 : index
    %c8_10 = arith.constant 8 : index
    %c0_11 = arith.constant 0 : index
    %6 = vector.load %arg7[%c0_9, %c8_10, %c0_11] : memref<2x32x128xf32, #tpu.memory_space<vmem>>, vector<2x16x128xf32>
    %7 = vector.shape_cast %6 : vector<2x16x128xf32> to vector<32x128xf32>
    %c0_12 = arith.constant 0 : index
    %c9 = arith.constant 9 : index
    %c0_13 = arith.constant 0 : index
    %8 = vector.load %arg7[%c0_12, %c9, %c0_13] : memref<2x32x128xf32, #tpu.memory_space<vmem>>, vector<2x16x128xf32>
    %9 = vector.shape_cast %8 : vector<2x16x128xf32> to vector<32x128xf32>
    %c0_14 = arith.constant 0 : index
    %c0_15 = arith.constant 0 : index
    %c0_16 = arith.constant 0 : index
    %10 = vector.load %arg1[%c0_14, %c0_15, %c0_16] : memref<6x384x384xf32, #tpu.memory_space<vmem>>, vector<1x128x384xf32>
    %11 = vector.shape_cast %10 : vector<1x128x384xf32> to vector<128x384xf32>
    %cst_17 = arith.constant dense<0.000000e+00> : vector<32x384xf32>
    %12 = tpu.matmul %5, %11, %cst_17 {dimension_numbers = #tpu.dot_dimension_numbers<[1], [0], [0], [1], [0, 0, 1, 1], [], []>} : vector<32x128xf32>, vector<128x384xf32>, vector<32x384xf32> -> vector<32x384xf32>
    %c0_18 = arith.constant 0 : index
    %c128 = arith.constant 128 : index
    %c0_19 = arith.constant 0 : index
    %13 = vector.load %arg1[%c0_18, %c128, %c0_19] : memref<6x384x384xf32, #tpu.memory_space<vmem>>, vector<1x128x384xf32>
    %14 = vector.shape_cast %13 : vector<1x128x384xf32> to vector<128x384xf32>
    %cst_20 = arith.constant dense<0.000000e+00> : vector<32x384xf32>
    %15 = tpu.matmul %7, %14, %cst_20 {dimension_numbers = #tpu.dot_dimension_numbers<[1], [0], [0], [1], [0, 0, 1, 1], [], []>} : vector<32x128xf32>, vector<128x384xf32>, vector<32x384xf32> -> vector<32x384xf32>
    %16 = arith.addf %12, %15 : vector<32x384xf32>
    %c0_21 = arith.constant 0 : index
    %c256 = arith.constant 256 : index
    %c0_22 = arith.constant 0 : index
    %17 = vector.load %arg1[%c0_21, %c256, %c0_22] : memref<6x384x384xf32, #tpu.memory_space<vmem>>, vector<1x128x384xf32>
    %18 = vector.shape_cast %17 : vector<1x128x384xf32> to vector<128x384xf32>
    %cst_23 = arith.constant dense<0.000000e+00> : vector<32x384xf32>
    %19 = tpu.matmul %9, %18, %cst_23 {dimension_numbers = #tpu.dot_dimension_numbers<[1], [0], [0], [1], [0, 0, 1, 1], [], []>} : vector<32x128xf32>, vector<128x384xf32>, vector<32x384xf32> -> vector<32x384xf32>
    %20 = arith.addf %16, %19 : vector<32x384xf32>
    %c0_24 = arith.constant 0 : index
    %c0_25 = arith.constant 0 : index
    %c0_26 = arith.constant 0 : index
    %21 = vector.load %arg2[%c0_24, %c0_25, %c0_26] : memref<6x1x384xf32, #tpu.memory_space<vmem>>, vector<1x1x384xf32>
    %22 = vector.shape_cast %21 : vector<1x1x384xf32> to vector<1x384xf32>
    %23 = vector.broadcast %22 : vector<1x384xf32> to vector<32x384xf32>
    %24 = arith.addf %20, %23 : vector<32x384xf32>
    %cst_27 = arith.constant 0.000000e+00 : f32
    %25 = vector.broadcast %cst_27 : f32 to vector<32x384xf32>
    %26 = arith.maximumf %24, %25 : vector<32x384xf32>
    %27 = vector.extract_strided_slice %26 {offsets = [0, 0], sizes = [32, 128], strides = [1, 1]} : vector<32x384xf32> to vector<32x128xf32>
    %28 = vector.extract_strided_slice %26 {offsets = [0, 128], sizes = [32, 128], strides = [1, 1]} : vector<32x384xf32> to vector<32x128xf32>
    %29 = arith.addf %27, %28 : vector<32x128xf32>
    %30 = vector.extract_strided_slice %26 {offsets = [0, 256], sizes = [32, 128], strides = [1, 1]} : vector<32x384xf32> to vector<32x128xf32>
    %31 = arith.addf %29, %30 : vector<32x128xf32>
    %32 = vector.shape_cast %31 : vector<32x128xf32> to vector<2x16x128xf32>
    %c0_28 = arith.constant 0 : index
    %c8_29 = arith.constant 8 : index
    %c0_30 = arith.constant 0 : index
    %33 = vector.load %arg7[%c0_28, %c8_29, %c0_30] : memref<2x32x128xf32, #tpu.memory_space<vmem>>, vector<2x16x128xf32>
    tpu.vector_store %arg7[%c0_28, %c8_29, %c0_30], %32 {strides = array<i32>} : memref<2x32x128xf32, #tpu.memory_space<vmem>>, vector<2x16x128xf32>,
    %c0_31 = arith.constant 0 : index
    %c7_32 = arith.constant 7 : index
    %c0_33 = arith.constant 0 : index
    %34 = vector.load %arg7[%c0_31, %c7_32, %c0_33] : memref<2x32x128xf32, #tpu.memory_space<vmem>>, vector<2x16x128xf32>
    %35 = vector.shape_cast %34 : vector<2x16x128xf32> to vector<32x128xf32>
    %c0_34 = arith.constant 0 : index
    %c8_35 = arith.constant 8 : index
    %c0_36 = arith.constant 0 : index
    %36 = vector.load %arg7[%c0_34, %c8_35, %c0_36] : memref<2x32x128xf32, #tpu.memory_space<vmem>>, vector<2x16x128xf32>
    %37 = vector.shape_cast %36 : vector<2x16x128xf32> to vector<32x128xf32>
    %c0_37 = arith.constant 0 : index
    %c9_38 = arith.constant 9 : index
    %c0_39 = arith.constant 0 : index
    %38 = vector.load %arg7[%c0_37, %c9_38, %c0_39] : memref<2x32x128xf32, #tpu.memory_space<vmem>>, vector<2x16x128xf32>
    %39 = vector.shape_cast %38 : vector<2x16x128xf32> to vector<32x128xf32>
    %c1 = arith.constant 1 : index
    %c0_40 = arith.constant 0 : index
    %c0_41 = arith.constant 0 : index
    %40 = vector.load %arg1[%c1, %c0_40, %c0_41] : memref<6x384x384xf32, #tpu.memory_space<vmem>>, vector<1x128x384xf32>
    %41 = vector.shape_cast %40 : vector<1x128x384xf32> to vector<128x384xf32>
    %cst_42 = arith.constant dense<0.000000e+00> : vector<32x384xf32>
    %42 = tpu.matmul %35, %41, %cst_42 {dimension_numbers = #tpu.dot_dimension_numbers<[1], [0], [0], [1], [0, 0, 1, 1], [], []>} : vector<32x128xf32>, vector<128x384xf32>, vector<32x384xf32> -> vector<32x384xf32>
    %c1_43 = arith.constant 1 : index
    %c128_44 = arith.constant 128 : index
    %c0_45 = arith.constant 0 : index
    %43 = vector.load %arg1[%c1_43, %c128_44, %c0_45] : memref<6x384x384xf32, #tpu.memory_space<vmem>>, vector<1x128x384xf32>
    %44 = vector.shape_cast %43 : vector<1x128x384xf32> to vector<128x384xf32>
    %cst_46 = arith.constant dense<0.000000e+00> : vector<32x384xf32>
    %45 = tpu.matmul %37, %44, %cst_46 {dimension_numbers = #tpu.dot_dimension_numbers<[1], [0], [0], [1], [0, 0, 1, 1], [], []>} : vector<32x128xf32>, vector<128x384xf32>, vector<32x384xf32> -> vector<32x384xf32>
    %46 = arith.addf %42, %45 : vector<32x384xf32>
    %c1_47 = arith.constant 1 : index
    %c256_48 = arith.constant 256 : index
    %c0_49 = arith.constant 0 : index
    %47 = vector.load %arg1[%c1_47, %c256_48, %c0_49] : memref<6x384x384xf32, #tpu.memory_space<vmem>>, vector<1x128x384xf32>
    %48 = vector.shape_cast %47 : vector<1x128x384xf32> to vector<128x384xf32>
    %cst_50 = arith.constant dense<0.000000e+00> : vector<32x384xf32>
    %49 = tpu.matmul %39, %48, %cst_50 {dimension_numbers = #tpu.dot_dimension_numbers<[1], [0], [0], [1], [0, 0, 1, 1], [], []>} : vector<32x128xf32>, vector<128x384xf32>, vector<32x384xf32> -> vector<32x384xf32>
    %50 = arith.addf %46, %49 : vector<32x384xf32>
    %c1_51 = arith.constant 1 : index
    %c0_52 = arith.constant 0 : index
    %c0_53 = arith.constant 0 : index
    %51 = vector.load %arg2[%c1_51, %c0_52, %c0_53] : memref<6x1x384xf32, #tpu.memory_space<vmem>>, vector<1x1x384xf32>
    %52 = vector.shape_cast %51 : vector<1x1x384xf32> to vector<1x384xf32>
    %53 = vector.broadcast %52 : vector<1x384xf32> to vector<32x384xf32>
    %54 = arith.addf %50, %53 : vector<32x384xf32>
    %cst_54 = arith.constant 0.000000e+00 : f32
    %55 = vector.broadcast %cst_54 : f32 to vector<32x384xf32>
    %56 = arith.maximumf %54, %55 : vector<32x384xf32>
    %57 = vector.extract_strided_slice %56 {offsets = [0, 0], sizes = [32, 128], strides = [1, 1]} : vector<32x384xf32> to vector<32x128xf32>
    %58 = vector.extract_strided_slice %56 {offsets = [0, 128], sizes = [32, 128], strides = [1, 1]} : vector<32x384xf32> to vector<32x128xf32>
    %59 = arith.addf %57, %58 : vector<32x128xf32>
    %60 = vector.extract_strided_slice %56 {offsets = [0, 256], sizes = [32, 128], strides = [1, 1]} : vector<32x384xf32> to vector<32x128xf32>
    %61 = arith.addf %59, %60 : vector<32x128xf32>
    %62 = vector.shape_cast %61 : vector<32x128xf32> to vector<2x16x128xf32>
    %c0_55 = arith.constant 0 : index
    %c8_56 = arith.constant 8 : index
    %c0_57 = arith.constant 0 : index
    %63 = vector.load %arg7[%c0_55, %c8_56, %c0_57] : memref<2x32x128xf32, #tpu.memory_space<vmem>>, vector<2x16x128xf32>
    tpu.vector_store %arg7[%c0_55, %c8_56, %c0_57], %62 {strides = array<i32>} : memref<2x32x128xf32, #tpu.memory_space<vmem>>, vector<2x16x128xf32>,
    %c0_58 = arith.constant 0 : index
    %c7_59 = arith.constant 7 : index
    %c0_60 = arith.constant 0 : index
    %64 = vector.load %arg7[%c0_58, %c7_59, %c0_60] : memref<2x32x128xf32, #tpu.memory_space<vmem>>, vector<2x16x128xf32>
    %65 = vector.shape_cast %64 : vector<2x16x128xf32> to vector<32x128xf32>
    %c0_61 = arith.constant 0 : index
    %c8_62 = arith.constant 8 : index
    %c0_63 = arith.constant 0 : index
    %66 = vector.load %arg7[%c0_61, %c8_62, %c0_63] : memref<2x32x128xf32, #tpu.memory_space<vmem>>, vector<2x16x128xf32>
    %67 = vector.shape_cast %66 : vector<2x16x128xf32> to vector<32x128xf32>
    %c0_64 = arith.constant 0 : index
    %c9_65 = arith.constant 9 : index
    %c0_66 = arith.constant 0 : index
    %68 = vector.load %arg7[%c0_64, %c9_65, %c0_66] : memref<2x32x128xf32, #tpu.memory_space<vmem>>, vector<2x16x128xf32>
    %69 = vector.shape_cast %68 : vector<2x16x128xf32> to vector<32x128xf32>
    %c2 = arith.constant 2 : index
    %c0_67 = arith.constant 0 : index
    %c0_68 = arith.constant 0 : index
    %70 = vector.load %arg1[%c2, %c0_67, %c0_68] : memref<6x384x384xf32, #tpu.memory_space<vmem>>, vector<1x128x384xf32>
    %71 = vector.shape_cast %70 : vector<1x128x384xf32> to vector<128x384xf32>
    %cst_69 = arith.constant dense<0.000000e+00> : vector<32x384xf32>
    %72 = tpu.matmul %65, %71, %cst_69 {dimension_numbers = #tpu.dot_dimension_numbers<[1], [0], [0], [1], [0, 0, 1, 1], [], []>} : vector<32x128xf32>, vector<128x384xf32>, vector<32x384xf32> -> vector<32x384xf32>
    %c2_70 = arith.constant 2 : index
    %c128_71 = arith.constant 128 : index
    %c0_72 = arith.constant 0 : index
    %73 = vector.load %arg1[%c2_70, %c128_71, %c0_72] : memref<6x384x384xf32, #tpu.memory_space<vmem>>, vector<1x128x384xf32>
    %74 = vector.shape_cast %73 : vector<1x128x384xf32> to vector<128x384xf32>
    %cst_73 = arith.constant dense<0.000000e+00> : vector<32x384xf32>
    %75 = tpu.matmul %67, %74, %cst_73 {dimension_numbers = #tpu.dot_dimension_numbers<[1], [0], [0], [1], [0, 0, 1, 1], [], []>} : vector<32x128xf32>, vector<128x384xf32>, vector<32x384xf32> -> vector<32x384xf32>
    %76 = arith.addf %72, %75 : vector<32x384xf32>
    %c2_74 = arith.constant 2 : index
    %c256_75 = arith.constant 256 : index
    %c0_76 = arith.constant 0 : index
    %77 = vector.load %arg1[%c2_74, %c256_75, %c0_76] : memref<6x384x384xf32, #tpu.memory_space<vmem>>, vector<1x128x384xf32>
    %78 = vector.shape_cast %77 : vector<1x128x384xf32> to vector<128x384xf32>
    %cst_77 = arith.constant dense<0.000000e+00> : vector<32x384xf32>
    %79 = tpu.matmul %69, %78, %cst_77 {dimension_numbers = #tpu.dot_dimension_numbers<[1], [0], [0], [1], [0, 0, 1, 1], [], []>} : vector<32x128xf32>, vector<128x384xf32>, vector<32x384xf32> -> vector<32x384xf32>
    %80 = arith.addf %76, %79 : vector<32x384xf32>
    %c2_78 = arith.constant 2 : index
    %c0_79 = arith.constant 0 : index
    %c0_80 = arith.constant 0 : index
    %81 = vector.load %arg2[%c2_78, %c0_79, %c0_80] : memref<6x1x384xf32, #tpu.memory_space<vmem>>, vector<1x1x384xf32>
    %82 = vector.shape_cast %81 : vector<1x1x384xf32> to vector<1x384xf32>
    %83 = vector.broadcast %82 : vector<1x384xf32> to vector<32x384xf32>
    %84 = arith.addf %80, %83 : vector<32x384xf32>
    %cst_81 = arith.constant 0.000000e+00 : f32
    %85 = vector.broadcast %cst_81 : f32 to vector<32x384xf32>
    %86 = arith.maximumf %84, %85 : vector<32x384xf32>
    %87 = vector.extract_strided_slice %86 {offsets = [0, 0], sizes = [32, 128], strides = [1, 1]} : vector<32x384xf32> to vector<32x128xf32>
    %88 = vector.extract_strided_slice %86 {offsets = [0, 128], sizes = [32, 128], strides = [1, 1]} : vector<32x384xf32> to vector<32x128xf32>
    %89 = arith.addf %87, %88 : vector<32x128xf32>
    %90 = vector.extract_strided_slice %86 {offsets = [0, 256], sizes = [32, 128], strides = [1, 1]} : vector<32x384xf32> to vector<32x128xf32>
    %91 = arith.addf %89, %90 : vector<32x128xf32>
    %92 = vector.shape_cast %91 : vector<32x128xf32> to vector<2x16x128xf32>
    %c0_82 = arith.constant 0 : index
    %c8_83 = arith.constant 8 : index
    %c0_84 = arith.constant 0 : index
    %93 = vector.load %arg7[%c0_82, %c8_83, %c0_84] : memref<2x32x128xf32, #tpu.memory_space<vmem>>, vector<2x16x128xf32>
    tpu.vector_store %arg7[%c0_82, %c8_83, %c0_84], %92 {strides = array<i32>} : memref<2x32x128xf32, #tpu.memory_space<vmem>>, vector<2x16x128xf32>,
    %c0_85 = arith.constant 0 : index
    %c7_86 = arith.constant 7 : index
    %c0_87 = arith.constant 0 : index
    %94 = vector.load %arg7[%c0_85, %c7_86, %c0_87] : memref<2x32x128xf32, #tpu.memory_space<vmem>>, vector<2x16x128xf32>
    %95 = vector.shape_cast %94 : vector<2x16x128xf32> to vector<32x128xf32>
    %c0_88 = arith.constant 0 : index
    %c8_89 = arith.constant 8 : index
    %c0_90 = arith.constant 0 : index
    %96 = vector.load %arg7[%c0_88, %c8_89, %c0_90] : memref<2x32x128xf32, #tpu.memory_space<vmem>>, vector<2x16x128xf32>
    %97 = vector.shape_cast %96 : vector<2x16x128xf32> to vector<32x128xf32>
    %c0_91 = arith.constant 0 : index
    %c9_92 = arith.constant 9 : index
    %c0_93 = arith.constant 0 : index
    %98 = vector.load %arg7[%c0_91, %c9_92, %c0_93] : memref<2x32x128xf32, #tpu.memory_space<vmem>>, vector<2x16x128xf32>
    %99 = vector.shape_cast %98 : vector<2x16x128xf32> to vector<32x128xf32>
    %c3 = arith.constant 3 : index
    %c0_94 = arith.constant 0 : index
    %c0_95 = arith.constant 0 : index
    %100 = vector.load %arg1[%c3, %c0_94, %c0_95] : memref<6x384x384xf32, #tpu.memory_space<vmem>>, vector<1x128x384xf32>
    %101 = vector.shape_cast %100 : vector<1x128x384xf32> to vector<128x384xf32>
    %cst_96 = arith.constant dense<0.000000e+00> : vector<32x384xf32>
    %102 = tpu.matmul %95, %101, %cst_96 {dimension_numbers = #tpu.dot_dimension_numbers<[1], [0], [0], [1], [0, 0, 1, 1], [], []>} : vector<32x128xf32>, vector<128x384xf32>, vector<32x384xf32> -> vector<32x384xf32>
    %c3_97 = arith.constant 3 : index
    %c128_98 = arith.constant 128 : index
    %c0_99 = arith.constant 0 : index
    %103 = vector.load %arg1[%c3_97, %c128_98, %c0_99] : memref<6x384x384xf32, #tpu.memory_space<vmem>>, vector<1x128x384xf32>
    %104 = vector.shape_cast %103 : vector<1x128x384xf32> to vector<128x384xf32>
    %cst_100 = arith.constant dense<0.000000e+00> : vector<32x384xf32>
    %105 = tpu.matmul %97, %104, %cst_100 {dimension_numbers = #tpu.dot_dimension_numbers<[1], [0], [0], [1], [0, 0, 1, 1], [], []>} : vector<32x128xf32>, vector<128x384xf32>, vector<32x384xf32> -> vector<32x384xf32>
    %106 = arith.addf %102, %105 : vector<32x384xf32>
    %c3_101 = arith.constant 3 : index
    %c256_102 = arith.constant 256 : index
    %c0_103 = arith.constant 0 : index
    %107 = vector.load %arg1[%c3_101, %c256_102, %c0_103] : memref<6x384x384xf32, #tpu.memory_space<vmem>>, vector<1x128x384xf32>
    %108 = vector.shape_cast %107 : vector<1x128x384xf32> to vector<128x384xf32>
    %cst_104 = arith.constant dense<0.000000e+00> : vector<32x384xf32>
    %109 = tpu.matmul %99, %108, %cst_104 {dimension_numbers = #tpu.dot_dimension_numbers<[1], [0], [0], [1], [0, 0, 1, 1], [], []>} : vector<32x128xf32>, vector<128x384xf32>, vector<32x384xf32> -> vector<32x384xf32>
    %110 = arith.addf %106, %109 : vector<32x384xf32>
    %c3_105 = arith.constant 3 : index
    %c0_106 = arith.constant 0 : index
    %c0_107 = arith.constant 0 : index
    %111 = vector.load %arg2[%c3_105, %c0_106, %c0_107] : memref<6x1x384xf32, #tpu.memory_space<vmem>>, vector<1x1x384xf32>
    %112 = vector.shape_cast %111 : vector<1x1x384xf32> to vector<1x384xf32>
    %113 = vector.broadcast %112 : vector<1x384xf32> to vector<32x384xf32>
    %114 = arith.addf %110, %113 : vector<32x384xf32>
    %cst_108 = arith.constant 0.000000e+00 : f32
    %115 = vector.broadcast %cst_108 : f32 to vector<32x384xf32>
    %116 = arith.maximumf %114, %115 : vector<32x384xf32>
    %117 = vector.extract_strided_slice %116 {offsets = [0, 0], sizes = [32, 128], strides = [1, 1]} : vector<32x384xf32> to vector<32x128xf32>
    %118 = vector.extract_strided_slice %116 {offsets = [0, 128], sizes = [32, 128], strides = [1, 1]} : vector<32x384xf32> to vector<32x128xf32>
    %119 = arith.addf %117, %118 : vector<32x128xf32>
    %120 = vector.extract_strided_slice %116 {offsets = [0, 256], sizes = [32, 128], strides = [1, 1]} : vector<32x384xf32> to vector<32x128xf32>
    %121 = arith.addf %119, %120 : vector<32x128xf32>
    %122 = vector.shape_cast %121 : vector<32x128xf32> to vector<2x16x128xf32>
    %c0_109 = arith.constant 0 : index
    %c8_110 = arith.constant 8 : index
    %c0_111 = arith.constant 0 : index
    %123 = vector.load %arg7[%c0_109, %c8_110, %c0_111] : memref<2x32x128xf32, #tpu.memory_space<vmem>>, vector<2x16x128xf32>
    tpu.vector_store %arg7[%c0_109, %c8_110, %c0_111], %122 {strides = array<i32>} : memref<2x32x128xf32, #tpu.memory_space<vmem>>, vector<2x16x128xf32>,
    %c0_112 = arith.constant 0 : index
    %c7_113 = arith.constant 7 : index
    %c0_114 = arith.constant 0 : index
    %124 = vector.load %arg7[%c0_112, %c7_113, %c0_114] : memref<2x32x128xf32, #tpu.memory_space<vmem>>, vector<2x16x128xf32>
    %125 = vector.shape_cast %124 : vector<2x16x128xf32> to vector<32x128xf32>
    %c0_115 = arith.constant 0 : index
    %c8_116 = arith.constant 8 : index
    %c0_117 = arith.constant 0 : index
    %126 = vector.load %arg7[%c0_115, %c8_116, %c0_117] : memref<2x32x128xf32, #tpu.memory_space<vmem>>, vector<2x16x128xf32>
    %127 = vector.shape_cast %126 : vector<2x16x128xf32> to vector<32x128xf32>
    %c0_118 = arith.constant 0 : index
    %c9_119 = arith.constant 9 : index
    %c0_120 = arith.constant 0 : index
    %128 = vector.load %arg7[%c0_118, %c9_119, %c0_120] : memref<2x32x128xf32, #tpu.memory_space<vmem>>, vector<2x16x128xf32>
    %129 = vector.shape_cast %128 : vector<2x16x128xf32> to vector<32x128xf32>
    %c4 = arith.constant 4 : index
    %c0_121 = arith.constant 0 : index
    %c0_122 = arith.constant 0 : index
    %130 = vector.load %arg1[%c4, %c0_121, %c0_122] : memref<6x384x384xf32, #tpu.memory_space<vmem>>, vector<1x128x384xf32>
    %131 = vector.shape_cast %130 : vector<1x128x384xf32> to vector<128x384xf32>
    %cst_123 = arith.constant dense<0.000000e+00> : vector<32x384xf32>
    %132 = tpu.matmul %125, %131, %cst_123 {dimension_numbers = #tpu.dot_dimension_numbers<[1], [0], [0], [1], [0, 0, 1, 1], [], []>} : vector<32x128xf32>, vector<128x384xf32>, vector<32x384xf32> -> vector<32x384xf32>
    %c4_124 = arith.constant 4 : index
    %c128_125 = arith.constant 128 : index
    %c0_126 = arith.constant 0 : index
    %133 = vector.load %arg1[%c4_124, %c128_125, %c0_126] : memref<6x384x384xf32, #tpu.memory_space<vmem>>, vector<1x128x384xf32>
    %134 = vector.shape_cast %133 : vector<1x128x384xf32> to vector<128x384xf32>
    %cst_127 = arith.constant dense<0.000000e+00> : vector<32x384xf32>
    %135 = tpu.matmul %127, %134, %cst_127 {dimension_numbers = #tpu.dot_dimension_numbers<[1], [0], [0], [1], [0, 0, 1, 1], [], []>} : vector<32x128xf32>, vector<128x384xf32>, vector<32x384xf32> -> vector<32x384xf32>
    %136 = arith.addf %132, %135 : vector<32x384xf32>
    %c4_128 = arith.constant 4 : index
    %c256_129 = arith.constant 256 : index
    %c0_130 = arith.constant 0 : index
    %137 = vector.load %arg1[%c4_128, %c256_129, %c0_130] : memref<6x384x384xf32, #tpu.memory_space<vmem>>, vector<1x128x384xf32>
    %138 = vector.shape_cast %137 : vector<1x128x384xf32> to vector<128x384xf32>
    %cst_131 = arith.constant dense<0.000000e+00> : vector<32x384xf32>
    %139 = tpu.matmul %129, %138, %cst_131 {dimension_numbers = #tpu.dot_dimension_numbers<[1], [0], [0], [1], [0, 0, 1, 1], [], []>} : vector<32x128xf32>, vector<128x384xf32>, vector<32x384xf32> -> vector<32x384xf32>
    %140 = arith.addf %136, %139 : vector<32x384xf32>
    %c4_132 = arith.constant 4 : index
    %c0_133 = arith.constant 0 : index
    %c0_134 = arith.constant 0 : index
    %141 = vector.load %arg2[%c4_132, %c0_133, %c0_134] : memref<6x1x384xf32, #tpu.memory_space<vmem>>, vector<1x1x384xf32>
    %142 = vector.shape_cast %141 : vector<1x1x384xf32> to vector<1x384xf32>
    %143 = vector.broadcast %142 : vector<1x384xf32> to vector<32x384xf32>
    %144 = arith.addf %140, %143 : vector<32x384xf32>
    %cst_135 = arith.constant 0.000000e+00 : f32
    %145 = vector.broadcast %cst_135 : f32 to vector<32x384xf32>
    %146 = arith.maximumf %144, %145 : vector<32x384xf32>
    %147 = vector.extract_strided_slice %146 {offsets = [0, 0], sizes = [32, 128], strides = [1, 1]} : vector<32x384xf32> to vector<32x128xf32>
    %148 = vector.extract_strided_slice %146 {offsets = [0, 128], sizes = [32, 128], strides = [1, 1]} : vector<32x384xf32> to vector<32x128xf32>
    %149 = arith.addf %147, %148 : vector<32x128xf32>
    %150 = vector.extract_strided_slice %146 {offsets = [0, 256], sizes = [32, 128], strides = [1, 1]} : vector<32x384xf32> to vector<32x128xf32>
    %151 = arith.addf %149, %150 : vector<32x128xf32>
    %152 = vector.shape_cast %151 : vector<32x128xf32> to vector<2x16x128xf32>
    %c0_136 = arith.constant 0 : index
    %c8_137 = arith.constant 8 : index
    %c0_138 = arith.constant 0 : index
    %153 = vector.load %arg7[%c0_136, %c8_137, %c0_138] : memref<2x32x128xf32, #tpu.memory_space<vmem>>, vector<2x16x128xf32>
    tpu.vector_store %arg7[%c0_136, %c8_137, %c0_138], %152 {strides = array<i32>} : memref<2x32x128xf32, #tpu.memory_space<vmem>>, vector<2x16x128xf32>,
    %c0_139 = arith.constant 0 : index
    %c7_140 = arith.constant 7 : index
    %c0_141 = arith.constant 0 : index
    %154 = vector.load %arg7[%c0_139, %c7_140, %c0_141] : memref<2x32x128xf32, #tpu.memory_space<vmem>>, vector<2x16x128xf32>
    %155 = vector.shape_cast %154 : vector<2x16x128xf32> to vector<32x128xf32>
    %c0_142 = arith.constant 0 : index
    %c8_143 = arith.constant 8 : index
    %c0_144 = arith.constant 0 : index
    %156 = vector.load %arg7[%c0_142, %c8_143, %c0_144] : memref<2x32x128xf32, #tpu.memory_space<vmem>>, vector<2x16x128xf32>
    %157 = vector.shape_cast %156 : vector<2x16x128xf32> to vector<32x128xf32>
    %c0_145 = arith.constant 0 : index
    %c9_146 = arith.constant 9 : index
    %c0_147 = arith.constant 0 : index
    %158 = vector.load %arg7[%c0_145, %c9_146, %c0_147] : memref<2x32x128xf32, #tpu.memory_space<vmem>>, vector<2x16x128xf32>
    %159 = vector.shape_cast %158 : vector<2x16x128xf32> to vector<32x128xf32>
    %c5 = arith.constant 5 : index
    %c0_148 = arith.constant 0 : index
    %c0_149 = arith.constant 0 : index
    %160 = vector.load %arg1[%c5, %c0_148, %c0_149] : memref<6x384x384xf32, #tpu.memory_space<vmem>>, vector<1x128x384xf32>
    %161 = vector.shape_cast %160 : vector<1x128x384xf32> to vector<128x384xf32>
    %cst_150 = arith.constant dense<0.000000e+00> : vector<32x384xf32>
    %162 = tpu.matmul %155, %161, %cst_150 {dimension_numbers = #tpu.dot_dimension_numbers<[1], [0], [0], [1], [0, 0, 1, 1], [], []>} : vector<32x128xf32>, vector<128x384xf32>, vector<32x384xf32> -> vector<32x384xf32>
    %c5_151 = arith.constant 5 : index
    %c128_152 = arith.constant 128 : index
    %c0_153 = arith.constant 0 : index
    %163 = vector.load %arg1[%c5_151, %c128_152, %c0_153] : memref<6x384x384xf32, #tpu.memory_space<vmem>>, vector<1x128x384xf32>
    %164 = vector.shape_cast %163 : vector<1x128x384xf32> to vector<128x384xf32>
    %cst_154 = arith.constant dense<0.000000e+00> : vector<32x384xf32>
    %165 = tpu.matmul %157, %164, %cst_154 {dimension_numbers = #tpu.dot_dimension_numbers<[1], [0], [0], [1], [0, 0, 1, 1], [], []>} : vector<32x128xf32>, vector<128x384xf32>, vector<32x384xf32> -> vector<32x384xf32>
    %166 = arith.addf %162, %165 : vector<32x384xf32>
    %c5_155 = arith.constant 5 : index
    %c256_156 = arith.constant 256 : index
    %c0_157 = arith.constant 0 : index
    %167 = vector.load %arg1[%c5_155, %c256_156, %c0_157] : memref<6x384x384xf32, #tpu.memory_space<vmem>>, vector<1x128x384xf32>
    %168 = vector.shape_cast %167 : vector<1x128x384xf32> to vector<128x384xf32>
    %cst_158 = arith.constant dense<0.000000e+00> : vector<32x384xf32>
    %169 = tpu.matmul %159, %168, %cst_158 {dimension_numbers = #tpu.dot_dimension_numbers<[1], [0], [0], [1], [0, 0, 1, 1], [], []>} : vector<32x128xf32>, vector<128x384xf32>, vector<32x384xf32> -> vector<32x384xf32>
    %170 = arith.addf %166, %169 : vector<32x384xf32>
    %c5_159 = arith.constant 5 : index
    %c0_160 = arith.constant 0 : index
    %c0_161 = arith.constant 0 : index
    %171 = vector.load %arg2[%c5_159, %c0_160, %c0_161] : memref<6x1x384xf32, #tpu.memory_space<vmem>>, vector<1x1x384xf32>
    %172 = vector.shape_cast %171 : vector<1x1x384xf32> to vector<1x384xf32>
    %173 = vector.broadcast %172 : vector<1x384xf32> to vector<32x384xf32>
    %174 = arith.addf %170, %173 : vector<32x384xf32>
    %cst_162 = arith.constant 0.000000e+00 : f32
    %175 = vector.broadcast %cst_162 : f32 to vector<32x384xf32>
    %176 = arith.maximumf %174, %175 : vector<32x384xf32>
    %177 = vector.extract_strided_slice %176 {offsets = [0, 0], sizes = [32, 128], strides = [1, 1]} : vector<32x384xf32> to vector<32x128xf32>
    %178 = vector.extract_strided_slice %176 {offsets = [0, 128], sizes = [32, 128], strides = [1, 1]} : vector<32x384xf32> to vector<32x128xf32>
    %179 = arith.addf %177, %178 : vector<32x128xf32>
    %180 = vector.extract_strided_slice %176 {offsets = [0, 256], sizes = [32, 128], strides = [1, 1]} : vector<32x384xf32> to vector<32x128xf32>
    %181 = arith.addf %179, %180 : vector<32x128xf32>
    %182 = vector.shape_cast %181 : vector<32x128xf32> to vector<2x16x128xf32>
    %c0_163 = arith.constant 0 : index
    %c8_164 = arith.constant 8 : index
    %c0_165 = arith.constant 0 : index
    %183 = vector.load %arg7[%c0_163, %c8_164, %c0_165] : memref<2x32x128xf32, #tpu.memory_space<vmem>>, vector<2x16x128xf32>
    tpu.vector_store %arg7[%c0_163, %c8_164, %c0_165], %182 {strides = array<i32>} : memref<2x32x128xf32, #tpu.memory_space<vmem>>, vector<2x16x128xf32>,
    %c0_166 = arith.constant 0 : index
    %c8_167 = arith.constant 8 : index
    %c0_168 = arith.constant 0 : index
    %184 = vector.load %arg7[%c0_166, %c8_167, %c0_168] : memref<2x32x128xf32, #tpu.memory_space<vmem>>, vector<2x16x128xf32>
    %185 = vector.shape_cast %184 : vector<2x16x128xf32> to vector<32x128xf32>
    %c0_169 = arith.constant 0 : index
    %c0_170 = arith.constant 0 : index
    %186 = vector.load %arg3[%c0_169, %c0_170] : memref<2x32xf32, #tpu.memory_space<vmem>>, vector<2x32xf32>
    %cst_171 = arith.constant dense<0.000000e+00> : vector<2x128xf32>
    %187 = tpu.matmul %186, %185, %cst_171 {dimension_numbers = #tpu.dot_dimension_numbers<[1], [0], [0], [1], [0, 0, 1, 1], [], []>} : vector<2x32xf32>, vector<32x128xf32>, vector<2x128xf32> -> vector<2x128xf32>
    %c0_172 = arith.constant 0 : index
    %c0_173 = arith.constant 0 : index
    %188 = vector.load %arg4[%c0_172, %c0_173] : memref<128x10xf32, #tpu.memory_space<vmem>>, vector<128x10xf32>
    %cst_174 = arith.constant dense<0.000000e+00> : vector<2x10xf32>
    %189 = tpu.matmul %187, %188, %cst_174 {dimension_numbers = #tpu.dot_dimension_numbers<[1], [0], [0], [1], [0, 0, 1, 1], [], []>} : vector<2x128xf32>, vector<128x10xf32>, vector<2x10xf32> -> vector<2x10xf32>
    %c0_175 = arith.constant 0 : index
    %c0_176 = arith.constant 0 : index
    %190 = vector.load %arg5[%c0_175, %c0_176] : memref<1x10xf32, #tpu.memory_space<vmem>>, vector<1x10xf32>
    %191 = vector.broadcast %190 : vector<1x10xf32> to vector<2x10xf32>
    %192 = arith.addf %189, %191 : vector<2x10xf32>
    %c0_177 = arith.constant 0 : index
    %c0_178 = arith.constant 0 : index
    %193 = vector.load %arg6[%c0_177, %c0_178] : memref<2x10xf32, #tpu.memory_space<vmem>>, vector<2x10xf32>
    tpu.vector_store %arg6[%c0_177, %c0_178], %192 {strides = array<i32>} : memref<2x10xf32, #tpu.memory_space<vmem>>, vector<2x10xf32>,
    return
  }
}

</mosaic_0001>

<bundles_post_ra>
// kernel: network_forward_fn.1
= control target key start
LH: loop header
LB: loop body
LE: loop exit
PB: predicated region body
PF: predicated region fallthrough
CT: control target
= control target key end

     0   :  { %11 = vsyncpa [#allocation4], 0  ;;  %s7695_s0 = inlined_call_operand.vmem [shape: f32[2,16,128], index: 0, kind: input, shape index: {}]   ;;  %s7696_s1 = inlined_call_operand.hbm [shape: f32[6,384,384], index: 1, kind: input, shape index: {}]   ;;  %s7697_s2 = inlined_call_operand.hbm [shape: f32[6,1,384], index: 2, kind: input, shape index: {}]   ;;  %s7698_s3 = inlined_call_operand.hbm [shape: f32[2,32], index: 3, kind: input, shape index: {}]   ;;  %s7699_s4 = inlined_call_operand.vmem [shape: f32[128,10], index: 4, kind: input, shape index: {}]   ;;  %s7700_s5 = inlined_call_operand.hbm [shape: f32[1,10], index: 5, kind: input, shape index: {}]   ;;  %s7701_s6 = inlined_call_operand.hbm [shape: f32[2,10], index: 6, kind: output, shape index: {}]  }
   0x1   :  { %12 = vsyncpa [#allocation7], 0 }
   0x2   :  { %13 = vsyncpa [#allocation10], 0 }
   0x3   :  { %14 = vsyncpa [#allocation5], 0  ;;  %s7324_s21 = smov [#allocation6]   ;;  %s7206_s25 = scalar_lea.hbm %s7697_s2, 288 }
   0x4   :  { %s34_s22 = sshll.u32 %s7324_s21, 4  ;;  %p7207_p0 = scmp.ne.s32.totalorder %s7697_s2, %s7206_s25  ;;  %s35_s22 = int_to_ptr.vmem [resolvable:$true] %s34_s22 }
   0x5   :  { %p7210_p1 = scmp.lt.u32.totalorder %s7206_s25, %s7697_s2 }
   0x7   :  { %p7212_p2 = pnand %p7210_p1, %p7207_p0 }
   0x9   :  { %7215 = shalt.err (!%p7212_p2)
}
   0xa   :  { %s7216_s30 = scalar_lea.vmem %s35_s22, 288  ;;  %p7221_p4 = scmp.lt.s32.totalorder %s35_s22, %s35_s22 }
   0xb   :  { %p7217_p3 = scmp.ne.s32.totalorder %s35_s22, %s7216_s30  ;;  %p7222_p5 = scmp.lt.s32.totalorder %s7216_s30, %s7216_s30 }
   0xd   :  { %p7223_p6 = por %p7222_p5, %p7221_p4 }
   0xf   :  { %p7224_p7 = pnand %p7223_p6, %p7217_p3 }
  0x11   :  { %7227 = shalt.err (!%p7224_p7)
}
  0x12   :  { %s7325_s7 = smov 48   ;;  %s7326_s8 = smov 3  }
  0x13   :  { %40 = dma.hbm_to_vmem [thread:$0]  %s7697_s2, 288, %s35_s22, [#allocation7], %s7325_s7, %s7325_s7, %s7326_s8  }
  0x14   :  { %s7327_s11 = smov [#allocation3]   ;;  %s7228_s15 = scalar_lea.hbm %s7696_s1, 110592 }
  0x15   :  { %s22_s12 = sshll.u32 %s7327_s11, 4  ;;  %p7229_p8 = scmp.ne.s32.totalorder %s7696_s1, %s7228_s15  ;;  %s23_s12 = int_to_ptr.vmem [resolvable:$true] %s22_s12 }
  0x16   :  { %p7232_p9 = scmp.lt.u32.totalorder %s7228_s15, %s7696_s1 }
  0x18   :  { %p7234_p10 = pnand %p7232_p9, %p7229_p8 }
  0x1a   :  { %7237 = shalt.err (!%p7234_p10)
}
  0x1b   :  { %s7238_s20 = scalar_lea.vmem %s23_s12, 110592  ;;  %p7243_p12 = scmp.lt.s32.totalorder %s23_s12, %s23_s12 }
  0x1c   :  { %p7239_p11 = scmp.ne.s32.totalorder %s23_s12, %s7238_s20  ;;  %p7244_p13 = scmp.lt.s32.totalorder %s7238_s20, %s7238_s20 }
  0x1e   :  { %p7245_p0 = por %p7244_p13, %p7243_p12 }
  0x20   :  { %p7246_p1 = pnand %p7245_p0, %p7239_p11 }
  0x22   :  { %7249 = shalt.err (!%p7246_p1)
}
  0x23   :  { %s7328_s2 = smov 384   ;;  %s7329_s21 = smov 24  }
  0x24   :  { %28 = dma.hbm_to_vmem [thread:$0]  %s7696_s1, 110592, %s23_s12, [#allocation4], %s7328_s2, %s7328_s2, %s7329_s21  }
  0x25   :  { %s7330_s24 = smov [#allocation8]   ;;  %s7331_s26 = smov [#allocation9]  }
  0x26   :  { %s47_s25 = sshll.u32 %s7330_s24, 4  ;;  %s59_s27 = sshll.u32 %s7331_s26, 4  ;;  %s48_s25 = int_to_ptr.vmem [resolvable:$true] %s47_s25  ;;  %s60_s27 = int_to_ptr.vmem [resolvable:$true] %s59_s27 }
  0x27   :  { %s7250_s30 = scalar_lea.hbm %s7698_s3, 32 }
  0x28   :  { %p7251_p2 = scmp.ne.s32.totalorder %s7698_s3, %s7250_s30  ;;  %p7254_p3 = scmp.lt.u32.totalorder %s7250_s30, %s7698_s3 }
  0x2a   :  { %p7256_p4 = pnand %p7254_p3, %p7251_p2 }
  0x2c   :  { %7259 = shalt.err (!%p7256_p4)
}
  0x2d   :  { %s7260_s1 = scalar_lea.vmem %s48_s25, 32  ;;  %p7265_p6 = scmp.lt.s32.totalorder %s48_s25, %s48_s25 }
  0x2e   :  { %p7261_p5 = scmp.ne.s32.totalorder %s48_s25, %s7260_s1  ;;  %p7266_p7 = scmp.lt.s32.totalorder %s7260_s1, %s7260_s1 }
  0x30   :  { %p7267_p8 = por %p7266_p7, %p7265_p6 }
  0x32   :  { %p7268_p9 = pnand %p7267_p8, %p7261_p5 }
  0x34   :  { %7271 = shalt.err (!%p7268_p9)
}
  0x35   :  { %50 = dma.hbm_to_vmem [thread:$0]  %s7698_s3, 32, %s48_s25, [#allocation7]  }
  0x36   :  { %s7272_s15 = scalar_lea.hbm %s7700_s5, 16 }
  0x37   :  { %p7273_p10 = scmp.ne.s32.totalorder %s7700_s5, %s7272_s15  ;;  %p7276_p11 = scmp.lt.u32.totalorder %s7272_s15, %s7700_s5 }
  0x39   :  { %p7278_p12 = pnand %p7276_p11, %p7273_p10 }
  0x3b   :  { %7281 = shalt.err (!%p7278_p12)
}
  0x3c   :  { %s7282_s20 = scalar_lea.vmem %s60_s27, 16  ;;  %s7286_s2 = scalar_lea.vmem %s60_s27, 32 }
  0x3d   :  { %p7283_p13 = scmp.ne.s32.totalorder %s60_s27, %s7282_s20  ;;  %p7287_p0 = scmp.lt.s32.totalorder %s60_s27, %s60_s27 }
  0x3e   :  { %p7288_p1 = scmp.lt.s32.totalorder %s7286_s2, %s7282_s20 }
  0x40   :  { %p7289_p2 = por %p7288_p1, %p7287_p0 }
  0x42   :  { %p7290_p3 = pnand %p7289_p2, %p7283_p13 }
  0x44   :  { %7293 = shalt.err (!%p7290_p3)
}
  0x45   :  { %62 = dma.hbm_to_vmem [thread:$0]  %s7700_s5, 16, %s60_s27, [#allocation10]  }
  0x46   :  { %7316 = dma.done.wait [#allocation4], 110592  }
  0x47   :  { %7317 = vsyncadd [#allocation4], 4294856704 }
  0x48   :  { %7318 = dma.done.wait [#allocation7], 320  }
  0x49   :  { %7319 = vsyncadd [#allocation7], 4294966976 }
  0x4a   :  { %7320 = dma.done.wait [#allocation10], 16  }
  0x4b   :  { %7321 = vsyncadd [#allocation10], 4294967280  ;;  %v7332_v0 = vmov 0.0   ;;  %v152_v1 = vld [vmem:[#allocation3 + $0x188] sm:$0xff]  ;;  %v155_v2 = vld [vmem:[#allocation3 + $0x1a0] sm:$0xff]  ;;  %vm7334_vm0 = vmmov 0  }
  0x4c   :  { %263 = vmatprep.mubr.f32.mxu0 %v7332_v0  ;;  %75 = vst [vmem:[#allocation2] sm:$0xff] %v7332_v0  ;;  %78 = vst [vmem:[#allocation2 + $0x18] sm:$0xff] %v7332_v0  ;;  %v153_v3 = vld [vmem:[#allocation3 + $0x190] sm:$0xff]  ;;  %v5864_v4 = vpack.c.bf16 %v155_v2, %v152_v1  ;;  %v156_v5 = vld [vmem:[#allocation3 + $0x1a8] sm:$0xff]  ;;  %vm4564_vm1 = vcmask 261120   ;;  %vm4731_vm2 = vcmask 74752  }
  0x4d   :  { %79 = vst [vmem:[#allocation2 + $0x20] sm:$0xff] %v7332_v0  ;;  %82 = vst [vmem:[#allocation2 + $0x38] sm:$0xff] %v7332_v0  ;;  %v151_v6 = vld [vmem:[#allocation3 + $0x180] sm:$0xff]  ;;  %v154_v7 = vld [vmem:[#allocation3 + $0x198] sm:$0xff]  ;;  %v5896_v8 = vpack.c.bf16 %v156_v5, %v153_v3 }
  0x4e   :  { %v5866_v9 = vpack.c.bf16 %v154_v7, %v151_v6  ;;  %v158_v10 = vld [vmem:[#allocation3 + $0x1b8] sm:$0xff]  ;;  %v161_v11 = vld [vmem:[#allocation3 + $0x1d0] sm:$0xff]  ;;  %v159_v12 = vld [vmem:[#allocation3 + $0x1c0] sm:$0xff]  ;;  %5865 = vmatprep.subr.bf16.mxu0 %v5864_v4 }
  0x4f   :  { %v5868_v13 = vpack.c.bf16 %v161_v11, %v158_v10  ;;  %v162_v14 = vld [vmem:[#allocation3 + $0x1d8] sm:$0xff]  ;;  %v157_v15 = vld [vmem:[#allocation3 + $0x1b0] sm:$0xff]  ;;  %v160_v16 = vld [vmem:[#allocation3 + $0x1c8] sm:$0xff]  ;;  %5897 = vmatprep.subr.bf16.mxu1 %v5896_v8 }
  0x50   :  { %5867 = vmatpush1.bf16.msra.mxu0 %v5866_v9  ;;  %v5900_v17 = vpack.c.bf16 %v162_v14, %v159_v12  ;;  %v5870_v18 = vpack.c.bf16 %v160_v16, %v157_v15  ;;  %v164_v19 = vld [vmem:[#allocation3 + $0x1e8] sm:$0xff]  ;;  %v167_v20 = vld [vmem:[#allocation3 + $0x200] sm:$0xff]  ;;  %v165_v21 = vld [vmem:[#allocation3 + $0x1f0] sm:$0xff]  ;;  %5899 = vmatpush3.bf16.msra.mxu1 %v5896_v8 }
  0x51   :  { %5869 = vmatprep.subr.bf16.mxu0 %v5868_v13  ;;  %v5872_v22 = vpack.c.bf16 %v167_v20, %v164_v19  ;;  %v168_v23 = vld [vmem:[#allocation3 + $0x208] sm:$0xff]  ;;  %v163_v24 = vld [vmem:[#allocation3 + $0x1e0] sm:$0xff]  ;;  %v166_v25 = vld [vmem:[#allocation3 + $0x1f8] sm:$0xff] }
  0x52   :  { %5901 = vmatprep.subr.bf16.mxu1 %v5900_v17  ;;  %v5904_v26 = vpack.c.bf16 %v168_v23, %v165_v21  ;;  %v170_v27 = vld [vmem:[#allocation3 + $0x218] sm:$0xff]  ;;  %v173_v28 = vld [vmem:[#allocation3 + $0x230] sm:$0xff]  ;;  %v171_v29 = vld [vmem:[#allocation3 + $0x220] sm:$0xff]  ;;  %v5874_v31 = vpack.c.bf16 %v166_v25, %v163_v24 }
  0x53   :  { %v174_v30 = vld [vmem:[#allocation3 + $0x238] sm:$0xff]  ;;  %v5876_v32 = vpack.c.bf16 %v173_v28, %v170_v27  ;;  %v169_v33 = vld [vmem:[#allocation3 + $0x210] sm:$0xff]  ;;  %v172_v34 = vld [vmem:[#allocation3 + $0x228] sm:$0xff] }
  0x54   :  { %5871 = vmatpush1.bf16.msra.mxu0 %v5870_v18  ;;  %5903 = vmatpush3.bf16.msra.mxu1 %v5900_v17  ;;  %v5908_v35 = vpack.c.bf16 %v174_v30, %v171_v29  ;;  %v176_v36 = vld [vmem:[#allocation3 + $0x248] sm:$0xff]  ;;  %v179_v37 = vld [vmem:[#allocation3 + $0x260] sm:$0xff]  ;;  %v177_v38 = vld [vmem:[#allocation3 + $0x250] sm:$0xff]  ;;  %v5878_v40 = vpack.c.bf16 %v172_v34, %v169_v33 }
  0x55   :  { %5873 = vmatprep.subr.bf16.mxu0 %v5872_v22  ;;  %5905 = vmatprep.subr.bf16.mxu1 %v5904_v26  ;;  %v180_v39 = vld [vmem:[#allocation3 + $0x268] sm:$0xff]  ;;  %v5880_v41 = vpack.c.bf16 %v179_v37, %v176_v36  ;;  %v175_v42 = vld [vmem:[#allocation3 + $0x240] sm:$0xff]  ;;  %v178_v43 = vld [vmem:[#allocation3 + $0x258] sm:$0xff] }
  0x56   :  { %v5912_v44 = vpack.c.bf16 %v180_v39, %v177_v38  ;;  %v182_v45 = vld [vmem:[#allocation3 + $0x278] sm:$0xff]  ;;  %v185_v46 = vld [vmem:[#allocation3 + $0x290] sm:$0xff]  ;;  %v183_v47 = vld [vmem:[#allocation3 + $0x280] sm:$0xff]  ;;  %v5882_v49 = vpack.c.bf16 %v178_v43, %v175_v42 }
  0x57   :  { %v186_v48 = vld [vmem:[#allocation3 + $0x298] sm:$0xff]  ;;  %v7427_v50 = vld [vmem:[%s7695_s0] sm:$0xff]  ;;  %v5884_v51 = vpack.c.bf16 %v185_v46, %v182_v45  ;;  %v181_v52 = vld [vmem:[#allocation3 + $0x270] sm:$0xff] }
  0x58   :  { %5875 = vmatpush1.bf16.msra.mxu0 %v5874_v31  ;;  %5907 = vmatpush3.bf16.msra.mxu1 %v5904_v26  ;;  %v184_v53 = vld [vmem:[#allocation3 + $0x288] sm:$0xff]  ;;  %87 = vst [vmem:[#allocation2 + $0x8] sm:$0xff] %v7427_v50  ;;  %v5916_v55 = vpack.c.bf16 %v186_v48, %v183_v47  ;;  %v191_v57 = vld [vmem:[#allocation3 + $0x2c0] sm:$0xff]  ;;  %v189_v58 = vld [vmem:[#allocation3 + $0x2b0] sm:$0xff] }
  0x59   :  { %5877 = vmatprep.subr.bf16.mxu0 %v5876_v32  ;;  %5909 = vmatprep.subr.bf16.mxu1 %v5908_v35  ;;  %v7433_v54 = vld [vmem:[%s7695_s0 + $0x8] sm:$0xff]  ;;  %v5886_v60 = vpack.c.bf16 %v184_v53, %v181_v52  ;;  %v187_v62 = vld [vmem:[#allocation3 + $0x2a0] sm:$0xff]  ;;  %v190_v63 = vld [vmem:[#allocation3 + $0x2b8] sm:$0xff] }
  0x5a   :  { %v188_v56 = vld [vmem:[#allocation3 + $0x2a8] sm:$0xff]  ;;  %5166 = vmatprep.mubr.f32.mxu1 %v7427_v50  ;;  %88 = vst [vmem:[#allocation2 + $0x10] sm:$0xff] %v7433_v54  ;;  %v194_v2 = vld [vmem:[#allocation3 + $0x2d8] sm:$0xff]  ;;  %v197_v3 = vld [vmem:[#allocation3 + $0x2f0] sm:$0xff]  ;;  %v5890_v6 = vpack.c.bf16 %v190_v63, %v187_v62 }
  0x5b   :  { %v192_v59 = vld [vmem:[#allocation3 + $0x2c8] sm:$0xff]  ;;  %v5888_v61 = vpack.c.bf16 %v191_v57, %v188_v56  ;;  %v195_v4 = vld [vmem:[#allocation3 + $0x2e0] sm:$0xff]  ;;  %v198_v5 = vld [vmem:[#allocation3 + $0x2f8] sm:$0xff]  ;;  %v5892_v7 = vpack.c.bf16 %v197_v3, %v194_v2 }
  0x5c   :  { %5879 = vmatpush1.bf16.msra.mxu0 %v5878_v40  ;;  %5911 = vmatpush3.bf16.msra.mxu1 %v5908_v35  ;;  %v5920_v1 = vpack.c.bf16 %v192_v59, %v189_v58  ;;  %v193_v8 = vld [vmem:[#allocation3 + $0x2d0] sm:$0xff]  ;;  %v196_v9 = vld [vmem:[#allocation3 + $0x2e8] sm:$0xff]  ;;  %v5924_v10 = vpack.c.bf16 %v198_v5, %v195_v4  ;;  %v107_v12 = vld [vmem:[#allocation3 + $0x20] sm:$0xff] }
  0x5d   :  { %5881 = vmatprep.subr.bf16.mxu0 %v5880_v41  ;;  %5913 = vmatprep.subr.bf16.mxu1 %v5912_v44  ;;  %v104_v11 = vld [vmem:[#allocation3 + $0x8] sm:$0xff]  ;;  %v105_v13 = vld [vmem:[#allocation3 + $0x10] sm:$0xff]  ;;  %v5894_v15 = vpack.c.bf16 %v196_v9, %v193_v8  ;;  %v103_v17 = vld [vmem:[#allocation3] sm:$0xff] }
  0x5e   :  { %v108_v14 = vld [vmem:[#allocation3 + $0x28] sm:$0xff]  ;;  %v5928_v16 = vpack.c.bf16 %v107_v12, %v104_v11  ;;  %v106_v18 = vld [vmem:[#allocation3 + $0x18] sm:$0xff]  ;;  %v113_v21 = vld [vmem:[#allocation3 + $0x50] sm:$0xff] }
  0x5f   :  { %v5960_v19 = vpack.c.bf16 %v108_v14, %v105_v13  ;;  %v110_v20 = vld [vmem:[#allocation3 + $0x38] sm:$0xff]  ;;  %v85_v22 = vld [vmem:[%s7695_s0 + $0x10] sm:$0xff]  ;;  %v111_v23 = vld [vmem:[#allocation3 + $0x40] sm:$0xff]  ;;  %v5930_v25 = vpack.c.bf16 %v106_v18, %v103_v17 }
  0x60   :  { %5883 = vmatpush1.bf16.msra.mxu0 %v5882_v49  ;;  %5915 = vmatpush3.bf16.msra.mxu1 %v5912_v44  ;;  %v114_v24 = vld [vmem:[#allocation3 + $0x58] sm:$0xff]  ;;  %89 = vst [vmem:[#allocation2 + $0x28] sm:$0xff] %v85_v22  ;;  %v5932_v27 = vpack.c.bf16 %v113_v21, %v110_v20  ;;  %v109_v28 = vld [vmem:[#allocation3 + $0x30] sm:$0xff]  ;;  %v112_v29 = vld [vmem:[#allocation3 + $0x48] sm:$0xff] }
  0x61   :  { %5885 = vmatprep.subr.bf16.mxu0 %v5884_v51  ;;  %5917 = vmatprep.subr.bf16.mxu1 %v5916_v55  ;;  %v86_v26 = vld [vmem:[%s7695_s0 + $0x18] sm:$0xff]  ;;  %v5964_v30 = vpack.c.bf16 %v114_v24, %v111_v23  ;;  %v116_v31 = vld [vmem:[#allocation3 + $0x68] sm:$0xff]  ;;  %v119_v32 = vld [vmem:[#allocation3 + $0x80] sm:$0xff]  ;;  %v5934_v35 = vpack.c.bf16 %v112_v29, %v109_v28 }
  0x62   :  { %90 = vst [vmem:[#allocation2 + $0x30] sm:$0xff] %v86_v26  ;;  %v117_v33 = vld [vmem:[#allocation3 + $0x70] sm:$0xff]  ;;  %v120_v34 = vld [vmem:[#allocation3 + $0x88] sm:$0xff]  ;;  %v5936_v36 = vpack.c.bf16 %v119_v32, %v116_v31  ;;  %v115_v37 = vld [vmem:[#allocation3 + $0x60] sm:$0xff] }
  0x63   :  { %v118_v38 = vld [vmem:[#allocation3 + $0x78] sm:$0xff]  ;;  %v5968_v39 = vpack.c.bf16 %v120_v34, %v117_v33  ;;  %v125_v41 = vld [vmem:[#allocation3 + $0xb0] sm:$0xff]  ;;  %v123_v42 = vld [vmem:[#allocation3 + $0xa0] sm:$0xff] }
  0x64   :  { %5887 = vmatpush1.bf16.msra.mxu0 %v5886_v60  ;;  %5919 = vmatpush3.bf16.msra.mxu1 %v5916_v55  ;;  %v122_v40 = vld [vmem:[#allocation3 + $0x98] sm:$0xff]  ;;  %v5938_v44 = vpack.c.bf16 %v118_v38, %v115_v37  ;;  %v7448_v45 = vld [vmem:[#allocation2 + $0x7] sm:$0xff]  ;;  %v121_v47 = vld [vmem:[#allocation3 + $0x90] sm:$0xff] }
  0x65   :  { %5889 = vmatprep.subr.bf16.mxu0 %v5888_v61  ;;  %5921 = vmatprep.subr.bf16.mxu1 %v5920_v1  ;;  %v126_v43 = vld [vmem:[#allocation3 + $0xb8] sm:$0xff]  ;;  %v5940_v46 = vpack.c.bf16 %v125_v41, %v122_v40  ;;  %v124_v48 = vld [vmem:[#allocation3 + $0xa8] sm:$0xff]  ;;  %v131_v51 = vld [vmem:[#allocation3 + $0xe0] sm:$0xff] }
  0x66   :  { %v5972_v49 = vpack.c.bf16 %v126_v43, %v123_v42  ;;  %v129_v52 = vld [vmem:[#allocation3 + $0xd0] sm:$0xff]  ;;  %v132_v53 = vld [vmem:[#allocation3 + $0xe8] sm:$0xff]  ;;  %v127_v56 = vld [vmem:[#allocation3 + $0xc0] sm:$0xff] }
  0x67   :  { %v130_v57 = vld [vmem:[#allocation3 + $0xd8] sm:$0xff]  ;;  %v5976_v58 = vpack.c.bf16 %v132_v53, %v129_v52  ;;  %v137_v60 = vld [vmem:[#allocation3 + $0x110] sm:$0xff]  ;;  %v135_v61 = vld [vmem:[#allocation3 + $0x100] sm:$0xff] }
  0x68   :  { %5891 = vmatpush1.bf16.msra.mxu0 %v5890_v6  ;;  %5923 = vmatpush3.bf16.msra.mxu1 %v5920_v1  ;;  %v134_v59 = vld [vmem:[#allocation3 + $0xf8] sm:$0xff]  ;;  %v5946_v63 = vpack.c.bf16 %v130_v57, %v127_v56  ;;  %v133_v2 = vld [vmem:[#allocation3 + $0xf0] sm:$0xff]  ;;  %v136_v3 = vld [vmem:[#allocation3 + $0x108] sm:$0xff] }
  0x69   :  { %5893 = vmatprep.subr.bf16.mxu0 %v5892_v7  ;;  %5925 = vmatprep.subr.bf16.mxu1 %v5924_v10  ;;  %v138_v62 = vld [vmem:[#allocation3 + $0x118] sm:$0xff]  ;;  %v5948_v1 = vpack.c.bf16 %v137_v60, %v134_v59  ;;  %v140_v5 = vld [vmem:[#allocation3 + $0x128] sm:$0xff]  ;;  %v143_v6 = vld [vmem:[#allocation3 + $0x140] sm:$0xff]  ;;  %v5950_v9 = vpack.c.bf16 %v136_v3, %v133_v2 }
  0x6a   :  { %v5980_v4 = vpack.c.bf16 %v138_v62, %v135_v61  ;;  %v141_v7 = vld [vmem:[#allocation3 + $0x130] sm:$0xff]  ;;  %v144_v8 = vld [vmem:[#allocation3 + $0x148] sm:$0xff]  ;;  %v139_v11 = vld [vmem:[#allocation3 + $0x120] sm:$0xff] }
  0x6b   :  { %v142_v12 = vld [vmem:[#allocation3 + $0x138] sm:$0xff]  ;;  %v5984_v13 = vpack.c.bf16 %v144_v8, %v141_v7  ;;  %v145_v20 = vld [vmem:[#allocation3 + $0x150] sm:$0xff]  ;;  %v148_v21 = vld [vmem:[#allocation3 + $0x168] sm:$0xff] }
  0x6c   :  { %5895 = vmatpush1.bf16.msra.mxu0 %v5894_v15  ;;  %5927 = vmatpush3.bf16.msra.mxu1 %v5924_v10  ;;  %v5952_v10 = vpack.c.bf16 %v143_v6, %v140_v5  ;;  %v146_v14 = vld [vmem:[#allocation3 + $0x158] sm:$0xff]  ;;  %v149_v15 = vld [vmem:[#allocation3 + $0x170] sm:$0xff]  ;;  %v5954_v18 = vpack.c.bf16 %v142_v12, %v139_v11  ;;  %v548_v23 = vld [vmem:[#allocation3 + $0x308] sm:$0xff] }
  0x6d   :  { %5929 = vmatprep.subr.bf16.mxu0 %v5928_v16  ;;  %5961 = vmatprep.subr.bf16.mxu1 %v5960_v19  ;;  %v147_v16 = vld [vmem:[#allocation3 + $0x160] sm:$0xff]  ;;  %v150_v17 = vld [vmem:[#allocation3 + $0x178] sm:$0xff]  ;;  %v557_v33 = vld [vmem:[#allocation3 + $0x350] sm:$0xff] }
  0x6e   :  { %v551_v24 = vld [vmem:[#allocation3 + $0x320] sm:$0xff]  ;;  %v554_v32 = vld [vmem:[#allocation3 + $0x338] sm:$0xff]  ;;  %v92_v37 = vld [vmem:[#allocation2 + $0xf] sm:$0xff] }
  0x6f   :  { %264 = vmatmul.mubr.f32.vlgmr.msra.gmra.mrb[0].mxu0 %v7427_v50  ;;  %5167 = vmatmul.mubr.f32.vlgmr.msra.gmra.mrb[0].mxu1 %v7433_v54  ;;  %v128_v50 = vld [vmem:[#allocation3 + $0xc8] sm:$0xff]  ;;  %v5992_v28 = vpack.c.bf16 %v551_v24, %v548_v23  ;;  %v547_v29 = vld [vmem:[#allocation3 + $0x300] sm:$0xff]  ;;  %v5996_v38 = vpack.c.bf16 %v557_v33, %v554_v32  ;;  %v566_v52 = vld [vmem:[#allocation3 + $0x398] sm:$0xff] }
  0x70   :  { %5931 = vmatpush1.bf16.msra.mxu0 %v5930_v25  ;;  %5963 = vmatpush3.bf16.msra.mxu1 %v5960_v19  ;;  %v5944_v55 = vpack.c.bf16 %v131_v51, %v128_v50  ;;  %v5956_v19 = vpack.c.bf16 %v149_v15, %v146_v14  ;;  %v549_v25 = vld [vmem:[#allocation3 + $0x310] sm:$0xff]  ;;  %v555_v34 = vld [vmem:[#allocation3 + $0x340] sm:$0xff]  ;;  %v556_v40 = vld [vmem:[#allocation3 + $0x348] sm:$0xff] }
  0x71   :  { %5933 = vmatprep.subr.bf16.mxu0 %v5932_v27  ;;  %5965 = vmatprep.subr.bf16.mxu1 %v5964_v30  ;;  %v5958_v27 = vpack.c.bf16 %v148_v21, %v145_v20  ;;  %v560_v42 = vld [vmem:[#allocation3 + $0x368] sm:$0xff]  ;;  %v563_v43 = vld [vmem:[#allocation3 + $0x380] sm:$0xff]  ;;  %v562_v50 = vld [vmem:[#allocation3 + $0x378] sm:$0xff] }
  0x72   :  { %269 = vmatprep.mubr.f32.mxu0 %v7332_v0  ;;  %5169 = vmatprep.mubr.f32.mxu1 %v85_v22  ;;  %v569_v53 = vld [vmem:[#allocation3 + $0x3b0] sm:$0xff]  ;;  %v570_v56 = vld [vmem:[#allocation3 + $0x3b8] sm:$0xff]  ;;  %v568_v61 = vld [vmem:[#allocation3 + $0x3a8] sm:$0xff] }
  0x73   :  { %270 = vmatmul.mubr.f32.gmra.mrb[2].mxu0 %v7433_v54  ;;  %5170 = vmatmul.mubr.f32.gmra.mrb[2].mxu1 %v86_v26  ;;  %v5942_v54 = vpack.c.bf16 %v124_v48, %v121_v47  ;;  %v6000_v48 = vpack.c.bf16 %v563_v43, %v560_v42  ;;  %v6004_v59 = vpack.c.bf16 %v569_v53, %v566_v52  ;;  %v565_v60 = vld [vmem:[#allocation3 + $0x390] sm:$0xff]  ;;  %v576_v3 = vld [vmem:[#allocation3 + $0x3e8] sm:$0xff]  ;;  %v571_v6 = vld [vmem:[#allocation3 + $0x3c0] sm:$0xff] }
  0x74   :  { %5935 = vmatpush1.bf16.msra.mxu0 %v5934_v35  ;;  %275 = vmatprep.mubr.f32.mxu0 %v7332_v0  ;;  %v558_v35 = vld [vmem:[#allocation3 + $0x358] sm:$0xff]  ;;  %v573_v2 = vld [vmem:[#allocation3 + $0x3d0] sm:$0xff]  ;;  %v579_v11 = vld [vmem:[#allocation3 + $0x400] sm:$0xff] }
  0x75   :  { %5967 = vmatpush3.bf16.msra.mxu1 %v5964_v30  ;;  %5937 = vmatprep.subr.bf16.mxu0 %v5936_v36  ;;  %v550_v30 = vld [vmem:[#allocation3 + $0x318] sm:$0xff]  ;;  %v6028_v41 = vpack.c.bf16 %v558_v35, %v555_v34  ;;  %v6040_v8 = vpack.c.bf16 %v576_v3, %v573_v2  ;;  %v577_v15 = vld [vmem:[#allocation3 + $0x3f0] sm:$0xff]  ;;  %v588_v21 = vld [vmem:[#allocation3 + $0x448] sm:$0xff] }
  0x76   :  { %5969 = vmatprep.subr.bf16.mxu1 %v5968_v39  ;;  %5204 = vmatprep.mubr.f32.mxu1 %v7448_v45  ;;  %v5994_v36 = vpack.c.bf16 %v550_v30, %v547_v29  ;;  %v574_v7 = vld [vmem:[#allocation3 + $0x3d8] sm:$0xff]  ;;  %v585_v20 = vld [vmem:[#allocation3 + $0x430] sm:$0xff]  ;;  %v583_v24 = vld [vmem:[#allocation3 + $0x420] sm:$0xff] }
  0x77   :  { %276 = vmatmul.mubr.f32.gmra.mrb[4].mxu0 %v85_v22  ;;  %v5988_v22 = vpack.c.bf16 %v150_v17, %v147_v16  ;;  %v582_v12 = vld [vmem:[#allocation3 + $0x418] sm:$0xff]  ;;  %v580_v16 = vld [vmem:[#allocation3 + $0x408] sm:$0xff]  ;;  %v591_v29 = vld [vmem:[#allocation3 + $0x460] sm:$0xff] }
  0x78   :  { %5939 = vmatpush1.bf16.msra.mxu0 %v5938_v44  ;;  %281 = vmatprep.mubr.f32.mxu0 %v7332_v0  ;;  %v561_v44 = vld [vmem:[#allocation3 + $0x370] sm:$0xff]  ;;  %v6044_v17 = vpack.c.bf16 %v582_v12, %v579_v11  ;;  %v594_v30 = vld [vmem:[#allocation3 + $0x478] sm:$0xff]  ;;  %v592_v34 = vld [vmem:[#allocation3 + $0x468] sm:$0xff] }
  0x79   :  { %5971 = vmatpush3.bf16.msra.mxu1 %v5968_v39  ;;  %5941 = vmatprep.subr.bf16.mxu0 %v5940_v46  ;;  %v553_v39 = vld [vmem:[#allocation3 + $0x330] sm:$0xff]  ;;  %v564_v46 = vld [vmem:[#allocation3 + $0x388] sm:$0xff]  ;;  %v6052_v35 = vpack.c.bf16 %v594_v30, %v591_v29  ;;  %v895_v42 = vld [vmem:[#allocation3 + $0x600] sm:$0xff] }
  0x7a   :  { %5973 = vmatprep.subr.bf16.mxu1 %v5972_v49  ;;  %v5998_v47 = vpack.c.bf16 %v556_v40, %v553_v39  ;;  %v6032_v51 = vpack.c.bf16 %v564_v46, %v561_v44  ;;  %v589_v33 = vld [vmem:[#allocation3 + $0x450] sm:$0xff]  ;;  %v900_v39 = vld [vmem:[#allocation3 + $0x628] sm:$0xff]  ;;  %v898_v43 = vld [vmem:[#allocation3 + $0x618] sm:$0xff] }
  0x7b   :  { %282 = vmatmul.mubr.f32.gmra.mrb[6].mxu0 %v86_v26  ;;  %v552_v26 = vld [vmem:[#allocation3 + $0x328] sm:$0xff]  ;;  %v6022_v40 = vpack.c.bf16 %v592_v34, %v589_v33  ;;  %v902_v46 = vld [vmem:[#allocation3 + $0x638] sm:$0xff]  ;;  %v917_v3 = vld [vmem:[#allocation3 + $0x6b0] sm:$0xff] }
  0x7c   :  { %5943 = vmatpush1.bf16.msra.mxu0 %v5942_v54  ;;  %437 = vmatprep.mubr.f32.mxu0 %v7332_v0  ;;  %v6024_v31 = vpack.c.bf16 %v552_v26, %v549_v25  ;;  %v93_v54 = vld [vmem:[#allocation2 + $0x27] sm:$0xff]  ;;  %v586_v25 = vld [vmem:[#allocation3 + $0x438] sm:$0xff]  ;;  %v6048_v26 = vpack.c.bf16 %v588_v21, %v585_v20  ;;  %v929_v20 = vld [vmem:[#allocation3 + $0x710] sm:$0xff] }
  0x7d   :  { %5975 = vmatpush3.bf16.msra.mxu1 %v5972_v49  ;;  %5945 = vmatprep.subr.bf16.mxu0 %v5944_v55  ;;  %v559_v49 = vld [vmem:[#allocation3 + $0x360] sm:$0xff]  ;;  %v101_v52 = vld [vmem:[#allocation2 + $0x29] sm:$0xff]  ;;  %v910_v2 = vld [vmem:[#allocation3 + $0x678] sm:$0xff] }
  0x7e   :  { %5977 = vmatprep.subr.bf16.mxu1 %v5976_v58  ;;  %v567_v55 = vld [vmem:[#allocation3 + $0x3a0] sm:$0xff]  ;;  %v6002_v57 = vpack.c.bf16 %v562_v50, %v559_v49  ;;  %v906_v49 = vld [vmem:[#allocation3 + $0x658] sm:$0xff]  ;;  %v921_v21 = vld [vmem:[#allocation3 + $0x6d0] sm:$0xff] }
  0x7f   :  { %v6036_v62 = vpack.c.bf16 %v570_v56, %v567_v55  ;;  %v100_v50 = vld [vmem:[#allocation2 + $0x11] sm:$0xff]  ;;  %v904_v55 = vld [vmem:[#allocation3 + $0x648] sm:$0xff]  ;;  %v923_v11 = vld [vmem:[#allocation3 + $0x6e0] sm:$0xff] }
  0x80   :  { %5947 = vmatpush1.bf16.msra.mxu0 %v5946_v63  ;;  %v572_v63 = vld [vmem:[#allocation3 + $0x3c8] sm:$0xff]  ;;  %v915_v12 = vld [vmem:[#allocation3 + $0x6a0] sm:$0xff]  ;;  %v934_v34 = vld [vmem:[#allocation3 + $0x738] sm:$0xff] }
  0x81   :  { %5979 = vmatpush3.bf16.msra.mxu1 %v5976_v58  ;;  %5949 = vmatprep.subr.bf16.mxu0 %v5948_v1  ;;  %v7456_v58 = vld [vmem:[#allocation2 + $0x9] sm:$0xff]  ;;  %v575_v1 = vld [vmem:[#allocation3 + $0x3e0] sm:$0xff] }
  0x82   :  { %5981 = vmatprep.subr.bf16.mxu1 %v5980_v4  ;;  %v6008_v5 = vpack.c.bf16 %v575_v1, %v572_v63  ;;  %v908_v56 = vld [vmem:[#allocation3 + $0x668] sm:$0xff]  ;;  %v907_v1 = vld [vmem:[#allocation3 + $0x660] sm:$0xff] }
  0x83   :  { %v927_v30 = vld [vmem:[#allocation3 + $0x700] sm:$0xff] }
  0x84   :  { %5951 = vmatpush1.bf16.msra.mxu0 %v5950_v9  ;;  %v578_v9 = vld [vmem:[#allocation3 + $0x3f8] sm:$0xff] }
  0x85   :  { %5983 = vmatpush3.bf16.msra.mxu1 %v5980_v4  ;;  %5953 = vmatprep.subr.bf16.mxu0 %v5952_v10  ;;  %v6006_v4 = vpack.c.bf16 %v568_v61, %v565_v60  ;;  %v581_v10 = vld [vmem:[#allocation3 + $0x410] sm:$0xff]  ;;  %v912_v60 = vld [vmem:[#allocation3 + $0x688] sm:$0xff] }
  0x86   :  { %5985 = vmatprep.subr.bf16.mxu1 %v5984_v13  ;;  %v6012_v14 = vpack.c.bf16 %v581_v10, %v578_v9  ;;  %v102_v61 = vld [vmem:[#allocation2 + $0x31] sm:$0xff]  ;;  %v920_v10 = vld [vmem:[#allocation3 + $0x6c8] sm:$0xff] }
  0x88   :  { %5955 = vmatpush1.bf16.msra.mxu0 %v5954_v18  ;;  %v584_v18 = vld [vmem:[#allocation3 + $0x428] sm:$0xff] }
  0x89   :  { %5987 = vmatpush3.bf16.msra.mxu1 %v5984_v13  ;;  %5957 = vmatprep.subr.bf16.mxu0 %v5956_v19  ;;  %v6010_v13 = vpack.c.bf16 %v574_v7, %v571_v6  ;;  %v587_v19 = vld [vmem:[#allocation3 + $0x440] sm:$0xff]  ;;  %v913_v7 = vld [vmem:[#allocation3 + $0x690] sm:$0xff] }
  0x8a   :  { %5989 = vmatprep.subr.bf16.mxu1 %v5988_v22  ;;  %v6016_v23 = vpack.c.bf16 %v587_v19, %v584_v18  ;;  %v926_v19 = vld [vmem:[#allocation3 + $0x6f8] sm:$0xff] }
  0x8c   :  { %5959 = vmatpush1.bf16.msra.mxu0 %v5958_v27  ;;  %v590_v27 = vld [vmem:[#allocation3 + $0x458] sm:$0xff] }
  0x8d   :  { %5991 = vmatpush3.bf16.msra.mxu1 %v5988_v22  ;;  %5993 = vmatprep.subr.bf16.mxu0 %v5992_v28  ;;  %v6014_v22 = vpack.c.bf16 %v580_v16, %v577_v15  ;;  %v593_v28 = vld [vmem:[#allocation3 + $0x470] sm:$0xff]  ;;  %v919_v15 = vld [vmem:[#allocation3 + $0x6c0] sm:$0xff]  ;;  %v922_v16 = vld [vmem:[#allocation3 + $0x6d8] sm:$0xff] }
  0x8e   :  { %6025 = vmatprep.subr.bf16.mxu1 %v6024_v31  ;;  %v6020_v32 = vpack.c.bf16 %v593_v28, %v590_v27  ;;  %v6074_v18 = vpack.c.bf16 %v922_v16, %v919_v15  ;;  %v932_v27 = vld [vmem:[#allocation3 + $0x728] sm:$0xff]  ;;  %v935_v28 = vld [vmem:[#allocation3 + $0x740] sm:$0xff]  ;;  %v854_v15 = vld [vmem:[#allocation3 + $0x4b8] sm:$0xff] }
  0x8f   :  { %438 = vmatmul.mubr.f32.vlgmr.msra.gmra.mrb[0].mxu0 %v7448_v45  ;;  %v94_v45 = vld [vmem:[#allocation2 + $0x2f] sm:$0xff]  ;;  %v6080_v29 = vpack.c.bf16 %v935_v28, %v932_v27 }
  0x90   :  { %5205 = vmatmul.mubr.f32.vlgmr.msra.gmra.mrb[0].mxu1 %v92_v37  ;;  %5995 = vmatpush1.bf16.msra.mxu0 %v5994_v36  ;;  %v896_v36 = vld [vmem:[#allocation3 + $0x608] sm:$0xff]  ;;  %v857_v16 = vld [vmem:[#allocation3 + $0x4d0] sm:$0xff] }
  0x91   :  { %6027 = vmatpush3.bf16.msra.mxu1 %v6024_v31  ;;  %5997 = vmatprep.subr.bf16.mxu0 %v5996_v38  ;;  %v6018_v31 = vpack.c.bf16 %v586_v25, %v583_v24  ;;  %v897_v38 = vld [vmem:[#allocation3 + $0x610] sm:$0xff]  ;;  %v928_v24 = vld [vmem:[#allocation3 + $0x708] sm:$0xff] }
  0x92   :  { %6029 = vmatprep.subr.bf16.mxu1 %v6028_v41  ;;  %443 = vmatprep.mubr.f32.mxu0 %v7332_v0  ;;  %v6088_v44 = vpack.c.bf16 %v900_v39, %v897_v38  ;;  %v933_v38 = vld [vmem:[#allocation3 + $0x730] sm:$0xff]  ;;  %v856_v28 = vld [vmem:[#allocation3 + $0x4c8] sm:$0xff] }
  0x93   :  { %444 = vmatmul.mubr.f32.gmra.mrb[2].mxu0 %v92_v37  ;;  %5207 = vmatprep.mubr.f32.mxu1 %v93_v54  ;;  %v899_v37 = vld [vmem:[#allocation3 + $0x620] sm:$0xff]  ;;  %v853_v27 = vld [vmem:[#allocation3 + $0x4b0] sm:$0xff] }
  0x94   :  { %5999 = vmatpush1.bf16.msra.mxu0 %v5998_v47  ;;  %449 = vmatprep.mubr.f32.mxu0 %v7332_v0  ;;  %v905_v47 = vld [vmem:[#allocation3 + $0x650] sm:$0xff] }
  0x95   :  { %6031 = vmatpush3.bf16.msra.mxu1 %v6028_v41  ;;  %6001 = vmatprep.subr.bf16.mxu0 %v6000_v48  ;;  %v6056_v41 = vpack.c.bf16 %v899_v37, %v896_v36  ;;  %v903_v48 = vld [vmem:[#allocation3 + $0x640] sm:$0xff]  ;;  %v6060_v53 = vpack.c.bf16 %v905_v47, %v902_v46  ;;  %v938_v36 = vld [vmem:[#allocation3 + $0x758] sm:$0xff]  ;;  %v941_v37 = vld [vmem:[#allocation3 + $0x770] sm:$0xff] }
  0x96   :  { %6033 = vmatprep.subr.bf16.mxu1 %v6032_v51  ;;  %5208 = vmatmul.mubr.f32.gmra.mrb[2].mxu1 %v94_v45  ;;  %v6084_v39 = vpack.c.bf16 %v941_v37, %v938_v36  ;;  %v939_v46 = vld [vmem:[#allocation3 + $0x760] sm:$0xff]  ;;  %v942_v47 = vld [vmem:[#allocation3 + $0x778] sm:$0xff] }
  0x97   :  { %450 = vmatmul.mubr.f32.gmra.mrb[4].mxu0 %v93_v54  ;;  %5242 = vmatprep.mubr.f32.mxu1 %v7456_v58  ;;  %v901_v54 = vld [vmem:[#allocation3 + $0x630] sm:$0xff]  ;;  %v855_v37 = vld [vmem:[#allocation3 + $0x4c0] sm:$0xff] }
  0x98   :  { %6003 = vmatpush1.bf16.msra.mxu0 %v6002_v57  ;;  %455 = vmatprep.mubr.f32.mxu0 %v7332_v0  ;;  %v6092_v57 = vpack.c.bf16 %v906_v49, %v903_v48  ;;  %v848_v48 = vld [vmem:[#allocation3 + $0x488] sm:$0xff]  ;;  %v6116_v49 = vpack.c.bf16 %v942_v47, %v939_v46  ;;  %v859_v47 = vld [vmem:[#allocation3 + $0x4e0] sm:$0xff] }
  0x99   :  { %6035 = vmatpush3.bf16.msra.mxu1 %v6032_v51  ;;  %6005 = vmatprep.subr.bf16.mxu0 %v6004_v59  ;;  %v6058_v51 = vpack.c.bf16 %v898_v43, %v895_v42  ;;  %v909_v59 = vld [vmem:[#allocation3 + $0x670] sm:$0xff]  ;;  %v940_v42 = vld [vmem:[#allocation3 + $0x768] sm:$0xff] }
  0x9a   :  { %6037 = vmatprep.subr.bf16.mxu1 %v6036_v62 }
  0x9b   :  { %456 = vmatmul.mubr.f32.gmra.mrb[6].mxu0 %v94_v45  ;;  %v911_v45 = vld [vmem:[#allocation3 + $0x680] sm:$0xff] }
  0x9c   :  { %6007 = vmatpush1.bf16.msra.mxu0 %v6006_v4  ;;  %659 = vmatprep.mubr.f32.mxu0 %v7332_v0  ;;  %v6064_v63 = vpack.c.bf16 %v911_v45, %v908_v56  ;;  %v6096_v4 = vpack.c.bf16 %v912_v60, %v909_v59 }
  0x9d   :  { %6039 = vmatpush3.bf16.msra.mxu1 %v6036_v62  ;;  %6009 = vmatprep.subr.bf16.mxu0 %v6008_v5  ;;  %v6062_v62 = vpack.c.bf16 %v904_v55, %v901_v54  ;;  %v6066_v5 = vpack.c.bf16 %v910_v2, %v907_v1  ;;  %v783_v55 = vlaneseq }
  0x9e   :  { %6041 = vmatprep.subr.bf16.mxu1 %v6040_v8 }
  0x9f   :  { %v784_v56 = vshrl.u32 %v783_v55, 7 }
  0xa0   :  { %6011 = vmatpush1.bf16.msra.mxu0 %v6010_v13  ;;  %v6072_v13 = vpack.c.bf16 %v923_v11, %v920_v10  ;;  %v847_v10 = vld [vmem:[#allocation3 + $0x480] sm:$0xff]  ;;  %v850_v11 = vld [vmem:[#allocation3 + $0x498] sm:$0xff] }
  0xa1   :  { %6043 = vmatpush3.bf16.msra.mxu1 %v6040_v8  ;;  %6013 = vmatprep.subr.bf16.mxu0 %v6012_v14  ;;  %v916_v8 = vld [vmem:[#allocation3 + $0x6a8] sm:$0xff]  ;;  %v918_v14 = vld [vmem:[#allocation3 + $0x6b8] sm:$0xff]  ;;  %v7469_v45 = vsub.s32 0, %v784_v56  ;;  %v7471_v59 = vsub.s32 1, %v784_v56  ;;  %v7473_v60 = vsub.s32 2, %v784_v56 }
  0xa2   :  { %6045 = vmatprep.subr.bf16.mxu1 %v6044_v17  ;;  %v6070_v9 = vpack.c.bf16 %v916_v8, %v913_v7 }
  0xa4   :  { %6015 = vmatpush1.bf16.msra.mxu0 %v6014_v22  ;;  %v6076_v22 = vpack.c.bf16 %v929_v20, %v926_v19 }
  0xa5   :  { %6047 = vmatpush3.bf16.msra.mxu1 %v6044_v17  ;;  %6017 = vmatprep.subr.bf16.mxu0 %v6016_v23  ;;  %v6100_v17 = vpack.c.bf16 %v918_v14, %v915_v12  ;;  %v924_v23 = vld [vmem:[#allocation3 + $0x6e8] sm:$0xff] }
  0xa6   :  { %6049 = vmatprep.subr.bf16.mxu1 %v6048_v26  ;;  %v6104_v25 = vpack.c.bf16 %v924_v23, %v921_v21  ;;  %v6122_v23 = vpack.c.bf16 %v850_v11, %v847_v10 }
  0xa8   :  { %6019 = vmatpush1.bf16.msra.mxu0 %v6018_v31  ;;  %v930_v31 = vld [vmem:[#allocation3 + $0x718] sm:$0xff] }
  0xa9   :  { %6051 = vmatpush3.bf16.msra.mxu1 %v6048_v26  ;;  %6021 = vmatprep.subr.bf16.mxu0 %v6020_v32  ;;  %v931_v32 = vld [vmem:[#allocation3 + $0x720] sm:$0xff]  ;;  %v6108_v33 = vpack.c.bf16 %v930_v31, %v927_v30  ;;  %v860_v31 = vld [vmem:[#allocation3 + $0x4e8] sm:$0xff] }
  0xaa   :  { %6053 = vmatprep.subr.bf16.mxu1 %v6052_v35 }
  0xac   :  { %6023 = vmatpush1.bf16.msra.mxu0 %v6022_v40  ;;  %v936_v40 = vld [vmem:[#allocation3 + $0x748] sm:$0xff] }
  0xad   :  { %6055 = vmatpush3.bf16.msra.mxu1 %v6052_v35  ;;  %6057 = vmatprep.subr.bf16.mxu0 %v6056_v41  ;;  %v6082_v35 = vpack.c.bf16 %v934_v34, %v931_v32  ;;  %v937_v41 = vld [vmem:[#allocation3 + $0x750] sm:$0xff]  ;;  %v6112_v43 = vpack.c.bf16 %v936_v40, %v933_v38  ;;  %v863_v32 = vld [vmem:[#allocation3 + $0x500] sm:$0xff]  ;;  %v858_v38 = vld [vmem:[#allocation3 + $0x4d8] sm:$0xff] }
  0xae   :  { %6089 = vmatprep.subr.bf16.mxu1 %v6088_v44  ;;  %v7483_v40 = vld [vmem:[#allocation2] sm:$0xff]  ;;  %v6128_v46 = vpack.c.bf16 %v863_v32, %v860_v31  ;;  %v882_v31 = vld [vmem:[#allocation3 + $0x598] sm:$0xff] }
  0xaf   :  { %660 = vmatmul.mubr.f32.vlgmr.msra.gmra.mrb[0].mxu0 %v7456_v58  ;;  %v914_v58 = vld [vmem:[#allocation3 + $0x698] sm:$0xff] }
  0xb0   :  { %5243 = vmatmul.mubr.f32.vlgmr.msra.gmra.mrb[0].mxu1 %v100_v50  ;;  %665 = vmatprep.mubr.f32.mxu0 %v7332_v0  ;;  %v6068_v6 = vpack.c.bf16 %v917_v3, %v914_v58 }
  0xb1   :  { %5245 = vmatprep.mubr.f32.mxu1 %v101_v52  ;;  %6059 = vmatpush1.bf16.msra.mxu0 %v6058_v51 }
  0xb2   :  { %6061 = vmatprep.subr.bf16.mxu0 %v6060_v53  ;;  %6091 = vmatpush3.bf16.msra.mxu1 %v6088_v44  ;;  %v6086_v44 = vpack.c.bf16 %v940_v42, %v937_v41  ;;  %v852_v53 = vld [vmem:[#allocation3 + $0x4a8] sm:$0xff]  ;;  %v6126_v41 = vpack.c.bf16 %v856_v28, %v853_v27 }
  0xb3   :  { %666 = vmatmul.mubr.f32.gmra.mrb[2].mxu0 %v100_v50  ;;  %6093 = vmatprep.subr.bf16.mxu1 %v6092_v57  ;;  %v851_v50 = vld [vmem:[#allocation3 + $0x4a0] sm:$0xff]  ;;  %v880_v27 = vld [vmem:[#allocation3 + $0x588] sm:$0xff] }
  0xb4   :  { %5246 = vmatmul.mubr.f32.gmra.mrb[2].mxu1 %v102_v61  ;;  %671 = vmatprep.mubr.f32.mxu0 %v7332_v0  ;;  %v6120_v51 = vpack.c.bf16 %v851_v50, %v848_v48  ;;  %v862_v48 = vld [vmem:[#allocation3 + $0x4f8] sm:$0xff]  ;;  %v884_v28 = vld [vmem:[#allocation3 + $0x5a8] sm:$0xff] }
  0xb5   :  { %6063 = vmatpush1.bf16.msra.mxu0 %v6062_v62 }
  0xb6   :  { %6065 = vmatprep.subr.bf16.mxu0 %v6064_v63  ;;  %6095 = vmatpush3.bf16.msra.mxu1 %v6092_v57  ;;  %v781_v57 = vld [vmem:[#allocation6] sm:$0x7] }
  0xb7   :  { %672 = vmatmul.mubr.f32.gmra.mrb[4].mxu0 %v101_v52  ;;  %6097 = vmatprep.subr.bf16.mxu1 %v6096_v4  ;;  %v849_v52 = vld [vmem:[#allocation3 + $0x490] sm:$0xff]  ;;  %v7477_v62 = vrot.slane %v781_v57, %v7471_v59  ;;  %v794_v63 = vrot.slane %v781_v57, %v7473_v60 }
  0xb8   :  { %677 = vmatprep.mubr.f32.mxu0 %v7332_v0  ;;  %v7466_v54 = vpack.c.bf16 %v852_v53, %v849_v52  ;;  %v866_v52 = vld [vmem:[#allocation3 + $0x518] sm:$0xff]  ;;  %v869_v53 = vld [vmem:[#allocation3 + $0x530] sm:$0xff] }
  0xb9   :  { %6067 = vmatpush1.bf16.msra.mxu0 %v6066_v5 }
  0xba   :  { %6069 = vmatprep.subr.bf16.mxu0 %v6068_v6  ;;  %6099 = vmatpush3.bf16.msra.mxu1 %v6096_v4 }
  0xbb   :  { %678 = vmatmul.mubr.f32.gmra.mrb[6].mxu0 %v102_v61  ;;  %6101 = vmatprep.subr.bf16.mxu1 %v6100_v17  ;;  %v786_v61 = vrot.slane %v781_v57, %v7469_v45 }
  0xbc   :  { %1007 = vmatprep.mubr.f32.mxu0 %v7332_v0  ;;  %v925_v0 = vld [vmem:[#allocation3 + $0x6f0] sm:$0xff] }
  0xbd   :  { %6071 = vmatpush1.bf16.msra.mxu0 %v6070_v9  ;;  %v6078_v26 = vpack.c.bf16 %v928_v24, %v925_v0 }
  0xbe   :  { %6073 = vmatprep.subr.bf16.mxu0 %v6072_v13  ;;  %6103 = vmatpush3.bf16.msra.mxu1 %v6100_v17 }
  0xbf   :  { %6105 = vmatprep.subr.bf16.mxu1 %v6104_v25 }
  0xc1   :  { %6075 = vmatpush1.bf16.msra.mxu0 %v6074_v18 }
  0xc2   :  { %6077 = vmatprep.subr.bf16.mxu0 %v6076_v22  ;;  %6107 = vmatpush3.bf16.msra.mxu1 %v6104_v25 }
  0xc3   :  { %6109 = vmatprep.subr.bf16.mxu1 %v6108_v33 }
  0xc5   :  { %6079 = vmatpush1.bf16.msra.mxu0 %v6078_v26  ;;  %v6124_v26 = vpack.c.bf16 %v857_v16, %v854_v15  ;;  %v871_v16 = vld [vmem:[#allocation3 + $0x540] sm:$0xff] }
  0xc6   :  { %6081 = vmatprep.subr.bf16.mxu0 %v6080_v29  ;;  %6111 = vmatpush3.bf16.msra.mxu1 %v6108_v33 }
  0xc7   :  { %6113 = vmatprep.subr.bf16.mxu1 %v6112_v43 }
  0xc9   :  { %6083 = vmatpush1.bf16.msra.mxu0 %v6082_v35 }
  0xca   :  { %6085 = vmatprep.subr.bf16.mxu0 %v6084_v39  ;;  %6115 = vmatpush3.bf16.msra.mxu1 %v6112_v43 }
  0xcb   :  { %6117 = vmatprep.subr.bf16.mxu1 %v6116_v49 }
  0xcd   :  { %6087 = vmatpush1.bf16.msra.mxu0 %v6086_v44 }
  0xce   :  { %6121 = vmatprep.subr.bf16.mxu0 %v6120_v51  ;;  %6119 = vmatpush3.bf16.msra.mxu1 %v6116_v49  ;;  %v6156_v51 = vpack.c.bf16 %v858_v38, %v855_v37  ;;  %v890_v37 = vld [vmem:[#allocation3 + $0x5d8] sm:$0xff]  ;;  %v893_v38 = vld [vmem:[#allocation3 + $0x5f0] sm:$0xff] }
  0xcf   :  { %6153 = vmatprep.subr.bf16.mxu1 %v7466_v54 }
 0x182   :  { %v661_v1 = vpop.f32.mrb[0].mxu0 }
 0x183   :  { %v798_v2 = vadd.f32 %v786_v61, %v661_v1  ;;  %v5244_v58 = vpop.f32.mrb[0].mxu1  ;;  %v663_v3 = vpop.f32.mrb[1].mxu0 }
 0x184   :  { %v799_v4 = vadd.f32 %v7477_v62, %v663_v3  ;;  %v750_v5 = vpop.f32.mrb[1].mxu1  ;;  %v803_v17 = vadd.f32 %v5244_v58, %v794_v63  ;;  %v864_v58 = vld [vmem:[#allocation3 + $0x508] sm:$0xff] }
 0x185   :  { %v810_v6 = vmax.f32 %v798_v2, 0.0  ;;  %v800_v7 = vadd.f32 %v794_v63, %v750_v5  ;;  %v861_v2 = vld [vmem:[#allocation3 + $0x4f0] sm:$0xff] }
 0x186   :  { %v811_v8 = vmax.f32 %v799_v4, 0.0  ;;  %v667_v9 = vpop.f32.mrb[2].mxu0  ;;  %v815_v33 = vmax.f32 %v803_v17, 0.0  ;;  %v6130_v4 = vpack.c.bf16 %v862_v48, %v859_v47  ;;  %v874_v17 = vld [vmem:[#allocation3 + $0x558] sm:$0xff]  ;;  %v892_v47 = vld [vmem:[#allocation3 + $0x5e8] sm:$0xff]  ;;  %v891_v48 = vld [vmem:[#allocation3 + $0x5e0] sm:$0xff] }
 0x187   :  { %v801_v12 = vadd.f32 %v786_v61, %v667_v9  ;;  %v5247_v13 = vpop.f32.mrb[2].mxu1  ;;  %v669_v14 = vpop.f32.mrb[3].mxu0  ;;  %v812_v19 = vmax.f32 %v800_v7, 0.0  ;;  %v868_v7 = vld [vmem:[#allocation3 + $0x528] sm:$0xff]  ;;  %v875_v9 = vld [vmem:[#allocation3 + $0x560] sm:$0xff] }
 0x188   :  { %v822_v18 = vadd.f32 %v811_v8, %v810_v6  ;;  %v802_v20 = vadd.f32 %v7477_v62, %v669_v14  ;;  %v760_v21 = vpop.f32.mrb[3].mxu1  ;;  %v809_v55 = vadd.f32 %v5247_v13, %v794_v63  ;;  %v865_v6 = vld [vmem:[#allocation3 + $0x510] sm:$0xff]  ;;  %v6160_v8 = vpack.c.bf16 %v864_v58, %v861_v2 }
 0x189   :  { %v813_v22 = vmax.f32 %v801_v12, 0.0  ;;  %v806_v35 = vadd.f32 %v794_v63, %v760_v21  ;;  %v6132_v63 = vpack.c.bf16 %v869_v53, %v866_v52  ;;  %v867_v12 = vld [vmem:[#allocation3 + $0x520] sm:$0xff]  ;;  %v6134_v13 = vpack.c.bf16 %v868_v7, %v865_v6  ;;  %v873_v21 = vld [vmem:[#allocation3 + $0x550] sm:$0xff]  ;;  %v1304_v7 = vld [vmem:[#allocation3 + $0x7e8] sm:$0xff] }
 0x18a   :  { %v826_v0 = vadd.f32 %v822_v18, %v812_v19  ;;  %v814_v24 = vmax.f32 %v802_v20, 0.0  ;;  %v673_v25 = vpop.f32.mrb[4].mxu0  ;;  %v821_v10 = vmax.f32 %v809_v55, 0.0  ;;  %v878_v18 = vld [vmem:[#allocation3 + $0x578] sm:$0xff]  ;;  %v881_v20 = vld [vmem:[#allocation3 + $0x590] sm:$0xff] }
 0x18b   :  { %v804_v29 = vadd.f32 %v786_v61, %v673_v25  ;;  %v675_v30 = vpop.f32.mrb[5].mxu0  ;;  %v818_v56 = vmax.f32 %v806_v35, 0.0  ;;  %v883_v35 = vld [vmem:[#allocation3 + $0x5a0] sm:$0xff]  ;;  %v1301_v2 = vld [vmem:[#allocation3 + $0x7d0] sm:$0xff] }
 0x18c   :  { %830 = vst [vmem:[#allocation2 + $0x8] sm:$0xff] %v826_v0  ;;  %v823_v34 = vadd.f32 %v814_v24, %v813_v22  ;;  %v805_v36 = vadd.f32 %v7477_v62, %v675_v30  ;;  %1008 = vmatmul.mubr.f32.vlgmr.msra.gmra.mrb[8].mxu0 %v826_v0  ;;  %5280 = vmatprep.mubr.f32.mxu1 %v826_v0  ;;  %v876_v22 = vld [vmem:[#allocation3 + $0x568] sm:$0xff]  ;;  %v879_v30 = vld [vmem:[#allocation3 + $0x580] sm:$0xff]  ;;  %v1293_v58 = vld [vmem:[#allocation3 + $0x790] sm:$0xff] }
 0x18d   :  { %v816_v39 = vmax.f32 %v804_v29, 0.0  ;;  %6123 = vmatpush1.bf16.msra.mxu0 %v6122_v23  ;;  %1013 = vmatprep.mubr.f32.mxu0 %v7483_v40  ;;  %v6138_v0 = vpack.c.bf16 %v874_v17, %v871_v16  ;;  %v6140_v24 = vpack.c.bf16 %v881_v20, %v878_v18  ;;  %v6168_v25 = vpack.c.bf16 %v876_v22, %v873_v21  ;;  %v887_v29 = vld [vmem:[#allocation3 + $0x5c0] sm:$0xff]  ;;  %v1313_v16 = vld [vmem:[#allocation3 + $0x830] sm:$0xff]  ;;  %v1312_v22 = vld [vmem:[#allocation3 + $0x828] sm:$0xff] }
 0x18e   :  { %v827_v42 = vadd.f32 %v823_v34, %v815_v33  ;;  %v817_v43 = vmax.f32 %v805_v36, 0.0  ;;  %v679_v44 = vpop.f32.mrb[6].mxu0  ;;  %6125 = vmatprep.subr.bf16.mxu0 %v6124_v26  ;;  %v877_v26 = vld [vmem:[#allocation3 + $0x570] sm:$0xff]  ;;  %v6144_v33 = vpack.c.bf16 %v887_v29, %v884_v28  ;;  %v6172_v34 = vpack.c.bf16 %v882_v31, %v879_v30  ;;  %v886_v36 = vld [vmem:[#allocation3 + $0x5b8] sm:$0xff]  ;;  %v1311_v28 = vld [vmem:[#allocation3 + $0x820] sm:$0xff] }
 0x18f   :  { %v807_v49 = vadd.f32 %v786_v61, %v679_v44  ;;  %v681_v50 = vpop.f32.mrb[7].mxu0  ;;  %v6142_v32 = vpack.c.bf16 %v880_v27, %v877_v26  ;;  %v1305_v18 = vld [vmem:[#allocation3 + $0x7f0] sm:$0xff]  ;;  %v1319_v26 = vld [vmem:[#allocation3 + $0x860] sm:$0xff]  ;;  %v1314_v29 = vld [vmem:[#allocation3 + $0x838] sm:$0xff] }
 0x190   :  { %831 = vst [vmem:[#allocation2 + $0x10] sm:$0xff] %v827_v42  ;;  %v824_v57 = vadd.f32 %v817_v43, %v816_v39  ;;  %v808_v1 = vadd.f32 %v7477_v62, %v681_v50  ;;  %1014 = vmatmul.mubr.f32.gmra.mrb[10].mxu0 %v827_v42  ;;  %5281 = vmatmul.mubr.f32.vlgmr.msra.gmra.mrb[4].mxu1 %v827_v42  ;;  %v872_v62 = vld [vmem:[#allocation3 + $0x548] sm:$0xff]  ;;  %v885_v39 = vld [vmem:[#allocation3 + $0x5b0] sm:$0xff] }
 0x191   :  { %v819_v3 = vmax.f32 %v807_v49, 0.0  ;;  %6127 = vmatpush1.bf16.msra.mxu0 %v6126_v41  ;;  %6155 = vmatpush3.bf16.msra.mxu1 %v7466_v54  ;;  %v870_v54 = vld [vmem:[#allocation3 + $0x538] sm:$0xff]  ;;  %v6136_v15 = vpack.c.bf16 %v875_v9, %v872_v62  ;;  %v888_v41 = vld [vmem:[#allocation3 + $0x5c8] sm:$0xff]  ;;  %v6146_v42 = vpack.c.bf16 %v886_v36, %v883_v35  ;;  %v6148_v43 = vpack.c.bf16 %v893_v38, %v890_v37  ;;  %v1299_v62 = vld [vmem:[#allocation3 + $0x7c0] sm:$0xff] }
 0x192   :  { %v828_v61 = vadd.f32 %v824_v57, %v818_v56  ;;  %v820_v5 = vmax.f32 %v808_v1, 0.0  ;;  %1019 = vmatprep.mubr.f32.mxu0 %v7483_v40  ;;  %6129 = vmatprep.subr.bf16.mxu0 %v6128_v46  ;;  %v6164_v19 = vpack.c.bf16 %v870_v54, %v867_v12  ;;  %v6176_v44 = vpack.c.bf16 %v888_v41, %v885_v39  ;;  %v889_v46 = vld [vmem:[#allocation3 + $0x5d0] sm:$0xff]  ;;  %v894_v49 = vld [vmem:[#allocation3 + $0x5f8] sm:$0xff]  ;;  %v1292_v50 = vld [vmem:[#allocation3 + $0x788] sm:$0xff] }
 0x193   :  { %6157 = vmatprep.subr.bf16.mxu1 %v6156_v51  ;;  %v834_v23 = vld [vmem:[#allocation2 + $0x7] sm:$0xff]  ;;  %v6150_v52 = vpack.c.bf16 %v892_v47, %v889_v46  ;;  %v6180_v53 = vpack.c.bf16 %v894_v49, %v891_v48  ;;  %v1294_v57 = vld [vmem:[#allocation3 + $0x798] sm:$0xff]  ;;  %v1309_v21 = vld [vmem:[#allocation3 + $0x810] sm:$0xff] }
 0x194   :  { %832 = vst [vmem:[#allocation2 + $0x28] sm:$0xff] %v828_v61  ;;  %v825_v11 = vadd.f32 %v820_v5, %v819_v3  ;;  %1020 = vmatmul.mubr.f32.gmra.mrb[12].mxu0 %v828_v61  ;;  %5283 = vmatprep.mubr.f32.mxu1 %v828_v61  ;;  %v1291_v56 = vld [vmem:[#allocation3 + $0x780] sm:$0xff]  ;;  %v1298_v1 = vld [vmem:[#allocation3 + $0x7b8] sm:$0xff]  ;;  %v1296_v3 = vld [vmem:[#allocation3 + $0x7a8] sm:$0xff]  ;;  %v6198_v30 = vpack.c.bf16 %v1312_v22, %v1309_v21 }
 0x195   :  { %6131 = vmatpush1.bf16.msra.mxu0 %v6130_v4  ;;  %6159 = vmatpush3.bf16.msra.mxu1 %v6156_v51  ;;  %v1295_v51 = vld [vmem:[#allocation3 + $0x7a0] sm:$0xff]  ;;  %v6186_v4 = vpack.c.bf16 %v1294_v57, %v1291_v56  ;;  %v6188_v61 = vpack.c.bf16 %v1301_v2, %v1298_v1  ;;  %v1297_v5 = vld [vmem:[#allocation3 + $0x7b0] sm:$0xff]  ;;  %v6216_v6 = vpack.c.bf16 %v1296_v3, %v1293_v58  ;;  %v1302_v9 = vld [vmem:[#allocation3 + $0x7d8] sm:$0xff] }
 0x196   :  { %v829_v14 = vadd.f32 %v825_v11, %v821_v10  ;;  %1025 = vmatprep.mubr.f32.mxu0 %v7483_v40  ;;  %6133 = vmatprep.subr.bf16.mxu0 %v6132_v63  ;;  %v6184_v55 = vpack.c.bf16 %v1295_v51, %v1292_v50  ;;  %v1300_v63 = vld [vmem:[#allocation3 + $0x7c8] sm:$0xff]  ;;  %v1303_v11 = vld [vmem:[#allocation3 + $0x7e0] sm:$0xff]  ;;  %v1306_v12 = vld [vmem:[#allocation3 + $0x7f8] sm:$0xff] }
 0x197   :  { %6161 = vmatprep.subr.bf16.mxu1 %v6160_v8  ;;  %v6190_v10 = vpack.c.bf16 %v1300_v63, %v1297_v5  ;;  %v835_v54 = vld [vmem:[#allocation2 + $0xf] sm:$0xff]  ;;  %v6194_v20 = vpack.c.bf16 %v1306_v12, %v1303_v11  ;;  %v1322_v35 = vld [vmem:[#allocation3 + $0x878] sm:$0xff]  ;;  %v1331_v47 = vld [vmem:[#allocation3 + $0x8c0] sm:$0xff] }
 0x198   :  { %833 = vst [vmem:[#allocation2 + $0x30] sm:$0xff] %v829_v14  ;;  %1026 = vmatmul.mubr.f32.gmra.mrb[14].mxu0 %v829_v14  ;;  %5284 = vmatmul.mubr.f32.gmra.mrb[6].mxu1 %v829_v14  ;;  %v6220_v14 = vpack.c.bf16 %v1302_v9, %v1299_v62  ;;  %v7493_v27 = vld [vmem:[#allocation2 + $0x9] sm:$0xff]  ;;  %v1323_v48 = vld [vmem:[#allocation3 + $0x880] sm:$0xff]  ;;  %v1326_v49 = vld [vmem:[#allocation3 + $0x898] sm:$0xff] }
 0x199   :  { %6135 = vmatpush1.bf16.msra.mxu0 %v6134_v13  ;;  %6163 = vmatpush3.bf16.msra.mxu1 %v6160_v8  ;;  %v1307_v8 = vld [vmem:[#allocation3 + $0x800] sm:$0xff]  ;;  %v1325_v36 = vld [vmem:[#allocation3 + $0x890] sm:$0xff]  ;;  %v1320_v38 = vld [vmem:[#allocation3 + $0x868] sm:$0xff] }
 0x19a   :  { %5318 = vmatprep.mubr.f32.mxu1 %v834_v23  ;;  %6137 = vmatprep.subr.bf16.mxu0 %v6136_v15  ;;  %v6192_v13 = vpack.c.bf16 %v1307_v8, %v1304_v7  ;;  %v1310_v15 = vld [vmem:[#allocation3 + $0x818] sm:$0xff]  ;;  %v1317_v37 = vld [vmem:[#allocation3 + $0x850] sm:$0xff]  ;;  %v6204_v41 = vpack.c.bf16 %v1325_v36, %v1322_v35  ;;  %v1328_v46 = vld [vmem:[#allocation3 + $0x8a8] sm:$0xff] }
 0x19b   :  { %6165 = vmatprep.subr.bf16.mxu1 %v6164_v19  ;;  %1181 = vmatprep.mubr.f32.mxu0 %v7483_v40  ;;  %v836_v17 = vld [vmem:[#allocation2 + $0x27] sm:$0xff]  ;;  %v6208_v51 = vpack.c.bf16 %v1331_v47, %v1328_v46  ;;  %v1334_v56 = vld [vmem:[#allocation3 + $0x8d8] sm:$0xff]  ;;  %v1337_v57 = vld [vmem:[#allocation3 + $0x8f0] sm:$0xff] }
 0x19c   :  { %v1329_v1 = vld [vmem:[#allocation3 + $0x8b0] sm:$0xff]  ;;  %v1332_v2 = vld [vmem:[#allocation3 + $0x8c8] sm:$0xff]  ;;  %v6212_v3 = vpack.c.bf16 %v1337_v57, %v1334_v56  ;;  %v1335_v7 = vld [vmem:[#allocation3 + $0x8e0] sm:$0xff] }
 0x19d   :  { %6139 = vmatpush1.bf16.msra.mxu0 %v6138_v0  ;;  %6167 = vmatpush3.bf16.msra.mxu1 %v6164_v19  ;;  %v1308_v19 = vld [vmem:[#allocation3 + $0x808] sm:$0xff]  ;;  %v6196_v0 = vpack.c.bf16 %v1313_v16, %v1310_v15  ;;  %v6240_v5 = vpack.c.bf16 %v1332_v2, %v1329_v1  ;;  %v1338_v8 = vld [vmem:[#allocation3 + $0x8f8] sm:$0xff]  ;;  %v1648_v21 = vld [vmem:[#allocation3 + $0xac0] sm:$0xff] }
 0x19e   :  { %6141 = vmatprep.subr.bf16.mxu0 %v6140_v24  ;;  %6169 = vmatprep.subr.bf16.mxu1 %v6168_v25  ;;  %v6224_v24 = vpack.c.bf16 %v1308_v19, %v1305_v18  ;;  %v1641_v63 = vld [vmem:[#allocation3 + $0xa88] sm:$0xff]  ;;  %v1643_v11 = vld [vmem:[#allocation3 + $0xa98] sm:$0xff]  ;;  %v6244_v12 = vpack.c.bf16 %v1338_v8, %v1335_v7  ;;  %v1646_v19 = vld [vmem:[#allocation3 + $0xab0] sm:$0xff] }
 0x19f   :  { %v1645_v15 = vld [vmem:[#allocation3 + $0xaa8] sm:$0xff]  ;;  %v1651_v22 = vld [vmem:[#allocation3 + $0xad8] sm:$0xff]  ;;  %v1674_v1 = vld [vmem:[#allocation3 + $0xb90] sm:$0xff] }
 0x1a0   :  { %v1665_v47 = vld [vmem:[#allocation3 + $0xb48] sm:$0xff]  ;;  %v1671_v57 = vld [vmem:[#allocation3 + $0xb78] sm:$0xff]  ;;  %v1680_v7 = vld [vmem:[#allocation3 + $0xbc0] sm:$0xff] }
 0x1a1   :  { %6143 = vmatpush1.bf16.msra.mxu0 %v6142_v32  ;;  %6171 = vmatpush3.bf16.msra.mxu1 %v6168_v25  ;;  %v1316_v25 = vld [vmem:[#allocation3 + $0x848] sm:$0xff]  ;;  %v1315_v32 = vld [vmem:[#allocation3 + $0x840] sm:$0xff]  ;;  %v6268_v2 = vpack.c.bf16 %v1674_v1, %v1671_v57 }
 0x1a2   :  { %6145 = vmatprep.subr.bf16.mxu0 %v6144_v33  ;;  %6173 = vmatprep.subr.bf16.mxu1 %v6172_v34  ;;  %v6200_v31 = vpack.c.bf16 %v1319_v26, %v1316_v25  ;;  %v1318_v33 = vld [vmem:[#allocation3 + $0x858] sm:$0xff]  ;;  %v6284_v26 = vpack.c.bf16 %v1651_v22, %v1648_v21  ;;  %v1593_v22 = vld [vmem:[#allocation3 + $0x908] sm:$0xff] }
 0x1a3   :  { %v6202_v39 = vpack.c.bf16 %v1318_v33, %v1315_v32  ;;  %v844_v32 = vld [vmem:[#allocation2 + $0x29] sm:$0xff]  ;;  %v1659_v33 = vld [vmem:[#allocation3 + $0xb18] sm:$0xff] }
 0x1a5   :  { %6147 = vmatpush1.bf16.msra.mxu0 %v6146_v42  ;;  %6175 = vmatpush3.bf16.msra.mxu1 %v6172_v34  ;;  %v6228_v34 = vpack.c.bf16 %v1314_v29, %v1311_v28  ;;  %v1321_v42 = vld [vmem:[#allocation3 + $0x870] sm:$0xff]  ;;  %v1652_v28 = vld [vmem:[#allocation3 + $0xae0] sm:$0xff] }
 0x1a6   :  { %6149 = vmatprep.subr.bf16.mxu0 %v6148_v43  ;;  %6177 = vmatprep.subr.bf16.mxu1 %v6176_v44  ;;  %v1324_v43 = vld [vmem:[#allocation3 + $0x888] sm:$0xff] }
 0x1a7   :  { %v6206_v50 = vpack.c.bf16 %v1324_v43, %v1321_v42  ;;  %v1660_v43 = vld [vmem:[#allocation3 + $0xb20] sm:$0xff] }
 0x1a9   :  { %6151 = vmatpush1.bf16.msra.mxu0 %v6150_v52  ;;  %6179 = vmatpush3.bf16.msra.mxu1 %v6176_v44  ;;  %v6232_v44 = vpack.c.bf16 %v1320_v38, %v1317_v37  ;;  %v1327_v52 = vld [vmem:[#allocation3 + $0x8a0] sm:$0xff]  ;;  %v845_v37 = vld [vmem:[#allocation2 + $0x31] sm:$0xff] }
 0x1aa   :  { %6181 = vmatprep.subr.bf16.mxu1 %v6180_v53  ;;  %6185 = vmatprep.subr.bf16.mxu0 %v6184_v55  ;;  %v6236_v55 = vpack.c.bf16 %v1326_v49, %v1323_v48  ;;  %v1668_v48 = vld [vmem:[#allocation3 + $0xb60] sm:$0xff] }
 0x1ab   :  { %v6264_v49 = vpack.c.bf16 %v1668_v48, %v1665_v47 }
 0x1ac   :  { %1182 = vmatmul.mubr.f32.vlgmr.msra.gmra.mrb[8].mxu0 %v834_v23  ;;  %v837_v23 = vld [vmem:[#allocation2 + $0x2f] sm:$0xff] }
 0x1ad   :  { %6183 = vmatpush3.bf16.msra.mxu1 %v6180_v53  ;;  %6187 = vmatpush1.bf16.msra.mxu0 %v6186_v4  ;;  %v1330_v53 = vld [vmem:[#allocation3 + $0x8b8] sm:$0xff]  ;;  %v1333_v4 = vld [vmem:[#allocation3 + $0x8d0] sm:$0xff] }
 0x1ae   :  { %1187 = vmatprep.mubr.f32.mxu0 %v7483_v40  ;;  %6189 = vmatprep.subr.bf16.mxu0 %v6188_v61  ;;  %v6210_v58 = vpack.c.bf16 %v1330_v53, %v1327_v52  ;;  %v1336_v61 = vld [vmem:[#allocation3 + $0x8e8] sm:$0xff]  ;;  %v1666_v53 = vld [vmem:[#allocation3 + $0xb50] sm:$0xff] }
 0x1af   :  { %6217 = vmatprep.subr.bf16.mxu1 %v6216_v6  ;;  %v6214_v62 = vpack.c.bf16 %v1336_v61, %v1333_v4  ;;  %v1672_v61 = vld [vmem:[#allocation3 + $0xb80] sm:$0xff] }
 0x1b0   :  { %1188 = vmatmul.mubr.f32.gmra.mrb[10].mxu0 %v835_v54  ;;  %5319 = vmatmul.mubr.f32.vlgmr.msra.gmra.mrb[4].mxu1 %v835_v54  ;;  %v1647_v54 = vld [vmem:[#allocation3 + $0xab8] sm:$0xff] }
 0x1b1   :  { %5321 = vmatprep.mubr.f32.mxu1 %v836_v17  ;;  %6191 = vmatpush1.bf16.msra.mxu0 %v6190_v10  ;;  %v1640_v10 = vld [vmem:[#allocation3 + $0xa80] sm:$0xff] }
 0x1b2   :  { %6219 = vmatpush3.bf16.msra.mxu1 %v6216_v6  ;;  %1193 = vmatprep.mubr.f32.mxu0 %v7483_v40  ;;  %v1644_v6 = vld [vmem:[#allocation3 + $0xaa0] sm:$0xff]  ;;  %v6250_v16 = vpack.c.bf16 %v1643_v11, %v1640_v10  ;;  %v1678_v11 = vld [vmem:[#allocation3 + $0xbb0] sm:$0xff] }
 0x1b3   :  { %6193 = vmatprep.subr.bf16.mxu0 %v6192_v13  ;;  %6221 = vmatprep.subr.bf16.mxu1 %v6220_v14  ;;  %v6248_v9 = vpack.c.bf16 %v1644_v6, %v1641_v63  ;;  %v1650_v13 = vld [vmem:[#allocation3 + $0xad0] sm:$0xff]  ;;  %v1677_v6 = vld [vmem:[#allocation3 + $0xba8] sm:$0xff] }
 0x1b4   :  { %1194 = vmatmul.mubr.f32.gmra.mrb[12].mxu0 %v836_v17  ;;  %5322 = vmatmul.mubr.f32.gmra.mrb[6].mxu1 %v837_v23  ;;  %v6252_v17 = vpack.c.bf16 %v1650_v13, %v1647_v54  ;;  %v6272_v8 = vpack.c.bf16 %v1680_v7, %v1677_v6  ;;  %v1683_v13 = vld [vmem:[#allocation3 + $0xbd8] sm:$0xff]  ;;  %v1598_v7 = vld [vmem:[#allocation3 + $0x930] sm:$0xff] }
 0x1b5   :  { %6195 = vmatpush1.bf16.msra.mxu0 %v6194_v20  ;;  %5356 = vmatprep.mubr.f32.mxu1 %v7493_v27  ;;  %v1649_v20 = vld [vmem:[#allocation3 + $0xac8] sm:$0xff] }
 0x1b6   :  { %6223 = vmatpush3.bf16.msra.mxu1 %v6220_v14  ;;  %1199 = vmatprep.mubr.f32.mxu0 %v7483_v40  ;;  %v1642_v14 = vld [vmem:[#allocation3 + $0xa90] sm:$0xff]  ;;  %v6254_v25 = vpack.c.bf16 %v1649_v20, %v1646_v19  ;;  %v1684_v19 = vld [vmem:[#allocation3 + $0xbe0] sm:$0xff]  ;;  %v1687_v20 = vld [vmem:[#allocation3 + $0xbf8] sm:$0xff] }
 0x1b7   :  { %6197 = vmatprep.subr.bf16.mxu0 %v6196_v0  ;;  %6225 = vmatprep.subr.bf16.mxu1 %v6224_v24  ;;  %v6280_v18 = vpack.c.bf16 %v1645_v15, %v1642_v14  ;;  %v1656_v0 = vld [vmem:[#allocation3 + $0xb00] sm:$0xff]  ;;  %v1686_v14 = vld [vmem:[#allocation3 + $0xbf0] sm:$0xff]  ;;  %v6308_v21 = vpack.c.bf16 %v1687_v20, %v1684_v19 }
 0x1b8   :  { %1200 = vmatmul.mubr.f32.gmra.mrb[14].mxu0 %v837_v23  ;;  %v1653_v23 = vld [vmem:[#allocation3 + $0xae8] sm:$0xff]  ;;  %v6276_v15 = vpack.c.bf16 %v1686_v14, %v1683_v13  ;;  %v1608_v19 = vld [vmem:[#allocation3 + $0x980] sm:$0xff]  ;;  %v1606_v20 = vld [vmem:[#allocation3 + $0x970] sm:$0xff] }
 0x1b9   :  { %6199 = vmatpush1.bf16.msra.mxu0 %v6198_v30  ;;  %1403 = vmatprep.mubr.f32.mxu0 %v7483_v40  ;;  %v6256_v29 = vpack.c.bf16 %v1656_v0, %v1653_v23  ;;  %v1655_v30 = vld [vmem:[#allocation3 + $0xaf8] sm:$0xff]  ;;  %v1596_v23 = vld [vmem:[#allocation3 + $0x920] sm:$0xff] }
 0x1ba   :  { %6227 = vmatpush3.bf16.msra.mxu1 %v6224_v24  ;;  %6201 = vmatprep.subr.bf16.mxu0 %v6200_v31  ;;  %v843_v24 = vld [vmem:[#allocation2 + $0x11] sm:$0xff]  ;;  %v6258_v35 = vpack.c.bf16 %v1655_v30, %v1652_v28  ;;  %v6312_v0 = vpack.c.bf16 %v1596_v23, %v1593_v22  ;;  %v1526_v28 = vld [vmem:[#allocation6 + $0x3] sm:$0x7] }
 0x1bb   :  { %6229 = vmatprep.subr.bf16.mxu1 %v6228_v34  ;;  %v1654_v31 = vld [vmem:[#allocation3 + $0xaf0] sm:$0xff]  ;;  %v1535_v30 = vrot.slane %v1526_v28, %v7471_v59 }
 0x1bd   :  { %6203 = vmatpush1.bf16.msra.mxu0 %v6202_v39  ;;  %v1658_v39 = vld [vmem:[#allocation3 + $0xb10] sm:$0xff] }
 0x1be   :  { %6231 = vmatpush3.bf16.msra.mxu1 %v6228_v34  ;;  %6205 = vmatprep.subr.bf16.mxu0 %v6204_v41  ;;  %v1662_v34 = vld [vmem:[#allocation3 + $0xb30] sm:$0xff]  ;;  %v1661_v41 = vld [vmem:[#allocation3 + $0xb28] sm:$0xff] }
 0x1bf   :  { %6233 = vmatprep.subr.bf16.mxu1 %v6232_v44  ;;  %v6260_v38 = vpack.c.bf16 %v1662_v34, %v1659_v33  ;;  %v6262_v42 = vpack.c.bf16 %v1661_v41, %v1658_v39  ;;  %v1539_v34 = vrot.slane %v1526_v28, %v7473_v60 }
 0x1c1   :  { %6207 = vmatpush1.bf16.msra.mxu0 %v6206_v50  ;;  %v1664_v50 = vld [vmem:[#allocation3 + $0xb40] sm:$0xff] }
 0x1c2   :  { %6235 = vmatpush3.bf16.msra.mxu1 %v6232_v44  ;;  %6209 = vmatprep.subr.bf16.mxu0 %v6208_v51  ;;  %v1663_v44 = vld [vmem:[#allocation3 + $0xb38] sm:$0xff] }
 0x1c3   :  { %6237 = vmatprep.subr.bf16.mxu1 %v6236_v55  ;;  %v6292_v46 = vpack.c.bf16 %v1663_v44, %v1660_v43  ;;  %v1667_v51 = vld [vmem:[#allocation3 + $0xb58] sm:$0xff] }
 0x1c4   :  { %v6266_v52 = vpack.c.bf16 %v1667_v51, %v1664_v50  ;;  %v1595_v50 = vld [vmem:[#allocation3 + $0x918] sm:$0xff] }
 0x1c5   :  { %6211 = vmatpush1.bf16.msra.mxu0 %v6210_v58  ;;  %v1670_v58 = vld [vmem:[#allocation3 + $0xb70] sm:$0xff] }
 0x1c6   :  { %6239 = vmatpush3.bf16.msra.mxu1 %v6236_v55  ;;  %6213 = vmatprep.subr.bf16.mxu0 %v6212_v3  ;;  %v1669_v55 = vld [vmem:[#allocation3 + $0xb68] sm:$0xff] }
 0x1c7   :  { %6241 = vmatprep.subr.bf16.mxu1 %v6240_v5  ;;  %v6296_v56 = vpack.c.bf16 %v1669_v55, %v1666_v53  ;;  %v1673_v3 = vld [vmem:[#allocation3 + $0xb88] sm:$0xff]  ;;  %v1599_v53 = vld [vmem:[#allocation3 + $0x938] sm:$0xff] }
 0x1c8   :  { %v6270_v4 = vpack.c.bf16 %v1673_v3, %v1670_v58  ;;  %v1600_v58 = vld [vmem:[#allocation3 + $0x940] sm:$0xff]  ;;  %v1603_v3 = vld [vmem:[#allocation3 + $0x958] sm:$0xff] }
 0x1c9   :  { %6215 = vmatpush1.bf16.msra.mxu0 %v6214_v62  ;;  %v1676_v62 = vld [vmem:[#allocation3 + $0xba0] sm:$0xff]  ;;  %v6348_v14 = vpack.c.bf16 %v1603_v3, %v1600_v58  ;;  %v1627_v58 = vld [vmem:[#allocation3 + $0xa18] sm:$0xff] }
 0x1ca   :  { %6243 = vmatpush3.bf16.msra.mxu1 %v6240_v5  ;;  %6249 = vmatprep.subr.bf16.mxu0 %v6248_v9  ;;  %v1675_v5 = vld [vmem:[#allocation3 + $0xb98] sm:$0xff] }
 0x1cb   :  { %6245 = vmatprep.subr.bf16.mxu1 %v6244_v12  ;;  %v6300_v63 = vpack.c.bf16 %v1675_v5, %v1672_v61  ;;  %v1679_v9 = vld [vmem:[#allocation3 + $0xbb8] sm:$0xff] }
 0x1cc   :  { %1404 = vmatmul.mubr.f32.vlgmr.msra.gmra.mrb[8].mxu0 %v7493_v27  ;;  %v1657_v27 = vld [vmem:[#allocation3 + $0xb08] sm:$0xff]  ;;  %v6274_v10 = vpack.c.bf16 %v1679_v9, %v1676_v62 }
 0x1cd   :  { %1409 = vmatprep.mubr.f32.mxu0 %v7483_v40  ;;  %6251 = vmatpush1.bf16.msra.mxu0 %v6250_v16  ;;  %v6288_v36 = vpack.c.bf16 %v1657_v27, %v1654_v31  ;;  %v1682_v16 = vld [vmem:[#allocation3 + $0xbd0] sm:$0xff] }
 0x1ce   :  { %6247 = vmatpush3.bf16.msra.mxu1 %v6244_v12  ;;  %6253 = vmatprep.subr.bf16.mxu0 %v6252_v17  ;;  %v1681_v12 = vld [vmem:[#allocation3 + $0xbc8] sm:$0xff] }
 0x1cf   :  { %6281 = vmatprep.subr.bf16.mxu1 %v6280_v18  ;;  %v6304_v54 = vpack.c.bf16 %v1681_v12, %v1678_v11  ;;  %v1685_v17 = vld [vmem:[#allocation3 + $0xbe8] sm:$0xff] }
 0x1d0   :  { %1410 = vmatmul.mubr.f32.gmra.mrb[10].mxu0 %v843_v24 }
 0x1d1   :  { %5357 = vmatmul.mubr.f32.vlgmr.msra.gmra.mrb[4].mxu1 %v843_v24  ;;  %1415 = vmatprep.mubr.f32.mxu0 %v7483_v40  ;;  %v1594_v24 = vld [vmem:[#allocation3 + $0x910] sm:$0xff] }
 0x1d2   :  { %5359 = vmatprep.mubr.f32.mxu1 %v844_v32  ;;  %6283 = vmatpush3.bf16.msra.mxu1 %v6280_v18  ;;  %v6278_v18 = vpack.c.bf16 %v1685_v17, %v1682_v16 }
 0x1d3   :  { %6255 = vmatpush1.bf16.msra.mxu0 %v6254_v25  ;;  %6285 = vmatprep.subr.bf16.mxu1 %v6284_v26  ;;  %v1597_v25 = vld [vmem:[#allocation3 + $0x928] sm:$0xff] }
 0x1d4   :  { %1416 = vmatmul.mubr.f32.gmra.mrb[12].mxu0 %v844_v32  ;;  %6257 = vmatprep.subr.bf16.mxu0 %v6256_v29  ;;  %v1531_v29 = vrot.slane %v1526_v28, %v7469_v45  ;;  %v1604_v28 = vld [vmem:[#allocation3 + $0x960] sm:$0xff] }
 0x1d5   :  { %5360 = vmatmul.mubr.f32.gmra.mrb[6].mxu1 %v845_v37  ;;  %1421 = vmatprep.mubr.f32.mxu0 %v7483_v40 }
 0x1d6   :  { %6287 = vmatpush3.bf16.msra.mxu1 %v6284_v26  ;;  %v7503_v26 = vpack.c.bf16 %v1597_v25, %v1594_v24 }
 0x1d7   :  { %6259 = vmatpush1.bf16.msra.mxu0 %v6258_v35  ;;  %6289 = vmatprep.subr.bf16.mxu1 %v6288_v36 }
 0x1d8   :  { %1422 = vmatmul.mubr.f32.gmra.mrb[14].mxu0 %v845_v37  ;;  %6261 = vmatprep.subr.bf16.mxu0 %v6260_v38 }
 0x1d9   :  { %1752 = vmatprep.mubr.f32.mxu0 %v7483_v40 }
 0x1da   :  { %6291 = vmatpush3.bf16.msra.mxu1 %v6288_v36 }
 0x1db   :  { %6263 = vmatpush1.bf16.msra.mxu0 %v6262_v42  ;;  %6293 = vmatprep.subr.bf16.mxu1 %v6292_v46 }
 0x1dc   :  { %6265 = vmatprep.subr.bf16.mxu0 %v6264_v49  ;;  %v1592_v49 = vld [vmem:[#allocation3 + $0x900] sm:$0xff] }
 0x1dd   :  { %v6314_v6 = vpack.c.bf16 %v1595_v50, %v1592_v49  ;;  %v1621_v49 = vld [vmem:[#allocation3 + $0x9e8] sm:$0xff] }
 0x1de   :  { %6295 = vmatpush3.bf16.msra.mxu1 %v6292_v46 }
 0x1df   :  { %6267 = vmatpush1.bf16.msra.mxu0 %v6266_v52  ;;  %6297 = vmatprep.subr.bf16.mxu1 %v6296_v56 }
 0x1e0   :  { %6269 = vmatprep.subr.bf16.mxu0 %v6268_v2  ;;  %v1602_v2 = vld [vmem:[#allocation3 + $0x950] sm:$0xff] }
 0x1e1   :  { %v6316_v13 = vpack.c.bf16 %v1602_v2, %v1599_v53  ;;  %v1616_v53 = vld [vmem:[#allocation3 + $0x9c0] sm:$0xff] }
 0x1e2   :  { %6299 = vmatpush3.bf16.msra.mxu1 %v6296_v56  ;;  %v1624_v2 = vld [vmem:[#allocation3 + $0xa00] sm:$0xff] }
 0x1e3   :  { %6271 = vmatpush1.bf16.msra.mxu0 %v6270_v4  ;;  %6301 = vmatprep.subr.bf16.mxu1 %v6300_v63 }
 0x1e4   :  { %6273 = vmatprep.subr.bf16.mxu0 %v6272_v8  ;;  %v1601_v8 = vld [vmem:[#allocation3 + $0x948] sm:$0xff] }
 0x1e6   :  { %6303 = vmatpush3.bf16.msra.mxu1 %v6300_v63 }
 0x1e7   :  { %6275 = vmatpush1.bf16.msra.mxu0 %v6274_v10  ;;  %6305 = vmatprep.subr.bf16.mxu1 %v6304_v54 }
 0x1e8   :  { %6277 = vmatprep.subr.bf16.mxu0 %v6276_v15  ;;  %v1605_v15 = vld [vmem:[#allocation3 + $0x968] sm:$0xff] }
 0x1ea   :  { %6307 = vmatpush3.bf16.msra.mxu1 %v6304_v54 }
 0x1eb   :  { %6279 = vmatpush1.bf16.msra.mxu0 %v6278_v18  ;;  %6309 = vmatprep.subr.bf16.mxu1 %v6308_v21  ;;  %v6318_v18 = vpack.c.bf16 %v1601_v8, %v1598_v7  ;;  %v1632_v7 = vld [vmem:[#allocation3 + $0xa40] sm:$0xff]  ;;  %v1630_v8 = vld [vmem:[#allocation3 + $0xa30] sm:$0xff] }
 0x1ec   :  { %6313 = vmatprep.subr.bf16.mxu0 %v6312_v0 }
 0x1ee   :  { %6311 = vmatpush3.bf16.msra.mxu1 %v6308_v21  ;;  %v1609_v21 = vld [vmem:[#allocation3 + $0x988] sm:$0xff] }
 0x1ef   :  { %6345 = vmatprep.subr.bf16.mxu1 %v7503_v26 }
 0x29f   :  { %v1405_v31 = vpop.f32.mrb[8].mxu0 }
 0x2a0   :  { %v1543_v27 = vadd.f32 %v1531_v29, %v1405_v31  ;;  %v1407_v32 = vpop.f32.mrb[9].mxu0 }
 0x2a1   :  { %v1544_v33 = vadd.f32 %v1535_v30, %v1407_v32  ;;  %v6320_v32 = vpack.c.bf16 %v1608_v19, %v1605_v15  ;;  %v1639_v15 = vld [vmem:[#allocation3 + $0xa78] sm:$0xff]  ;;  %v1637_v19 = vld [vmem:[#allocation3 + $0xa68] sm:$0xff] }
 0x2a2   :  { %v1555_v35 = vmax.f32 %v1543_v27, 0.0 }
 0x2a3   :  { %v1556_v36 = vmax.f32 %v1544_v33, 0.0  ;;  %v1411_v37 = vpop.f32.mrb[10].mxu0  ;;  %v6352_v33 = vpack.c.bf16 %v1609_v21, %v1606_v20  ;;  %v2037_v21 = vld [vmem:[#allocation3 + $0xc08] sm:$0xff] }
 0x2a4   :  { %v1546_v38 = vadd.f32 %v1531_v29, %v1411_v37  ;;  %v5358_v39 = vpop.f32.mrb[4].mxu1  ;;  %v1413_v41 = vpop.f32.mrb[11].mxu0 }
 0x2a5   :  { %v1567_v42 = vadd.f32 %v1556_v36, %v1555_v35  ;;  %v1548_v43 = vadd.f32 %v5358_v39, %v1539_v34  ;;  %v1547_v44 = vadd.f32 %v1535_v30, %v1413_v41  ;;  %v1494_v46 = vpop.f32.mrb[5].mxu1  ;;  %v1614_v35 = vld [vmem:[#allocation3 + $0x9b0] sm:$0xff]  ;;  %v1613_v41 = vld [vmem:[#allocation3 + $0x9a8] sm:$0xff] }
 0x2a6   :  { %v1558_v47 = vmax.f32 %v1546_v38, 0.0  ;;  %v1545_v48 = vadd.f32 %v1539_v34, %v1494_v46  ;;  %v1615_v38 = vld [vmem:[#allocation3 + $0x9b8] sm:$0xff]  ;;  %v1610_v39 = vld [vmem:[#allocation3 + $0x990] sm:$0xff]  ;;  %v1620_v46 = vld [vmem:[#allocation3 + $0x9e0] sm:$0xff] }
 0x2a7   :  { %v1559_v51 = vmax.f32 %v1547_v44, 0.0  ;;  %v1417_v52 = vpop.f32.mrb[12].mxu0  ;;  %v1560_v4 = vmax.f32 %v1548_v43, 0.0  ;;  %v1617_v44 = vld [vmem:[#allocation3 + $0x9c8] sm:$0xff]  ;;  %v6326_v50 = vpack.c.bf16 %v1613_v41, %v1610_v39  ;;  %v2052_v41 = vld [vmem:[#allocation3 + $0xc80] sm:$0xff] }
 0x2a8   :  { %v1557_v55 = vmax.f32 %v1545_v48, 0.0  ;;  %v1549_v56 = vadd.f32 %v1531_v29, %v1417_v52  ;;  %v5361_v57 = vpop.f32.mrb[6].mxu1  ;;  %v1419_v1 = vpop.f32.mrb[13].mxu0  ;;  %v1618_v48 = vld [vmem:[#allocation3 + $0x9d0] sm:$0xff]  ;;  %v6328_v52 = vpack.c.bf16 %v1620_v46, %v1617_v44  ;;  %v2049_v39 = vld [vmem:[#allocation3 + $0xc68] sm:$0xff] }
 0x2a9   :  { %v1568_v61 = vadd.f32 %v1559_v51, %v1558_v47  ;;  %v1550_v5 = vadd.f32 %v1535_v30, %v1419_v1  ;;  %v1504_v63 = vpop.f32.mrb[7].mxu1  ;;  %v1554_v22 = vadd.f32 %v5361_v57, %v1539_v34  ;;  %v1623_v57 = vld [vmem:[#allocation3 + $0x9f8] sm:$0xff]  ;;  %v1626_v1 = vld [vmem:[#allocation3 + $0xa10] sm:$0xff]  ;;  %v2053_v46 = vld [vmem:[#allocation3 + $0xc88] sm:$0xff] }
 0x2aa   :  { %v1571_v62 = vadd.f32 %v1567_v42, %v1557_v55  ;;  %v1561_v9 = vmax.f32 %v1549_v56, 0.0  ;;  %v1551_v10 = vadd.f32 %v1539_v34, %v1504_v63  ;;  %v1611_v34 = vld [vmem:[#allocation3 + $0x998] sm:$0xff]  ;;  %v6360_v56 = vpack.c.bf16 %v1621_v49, %v1618_v48  ;;  %v2050_v44 = vld [vmem:[#allocation3 + $0xc70] sm:$0xff]  ;;  %v2048_v48 = vld [vmem:[#allocation3 + $0xc60] sm:$0xff] }
 0x2ab   :  { %v1572_v11 = vadd.f32 %v1568_v61, %v1560_v4  ;;  %v1562_v12 = vmax.f32 %v1550_v5, 0.0  ;;  %v1423_v54 = vpop.f32.mrb[14].mxu0  ;;  %v1566_v36 = vmax.f32 %v1554_v22, 0.0  ;;  %v6324_v43 = vpack.c.bf16 %v1614_v35, %v1611_v34  ;;  %v1619_v55 = vld [vmem:[#allocation3 + $0x9d8] sm:$0xff]  ;;  %v1622_v61 = vld [vmem:[#allocation3 + $0x9f0] sm:$0xff]  ;;  %v1625_v5 = vld [vmem:[#allocation3 + $0xa08] sm:$0xff] }
 0x2ac   :  { %1575 = vst [vmem:[#allocation2 + $0x8] sm:$0xff] %v1571_v62  ;;  %v1552_v16 = vadd.f32 %v1531_v29, %v1423_v54  ;;  %v1425_v17 = vpop.f32.mrb[15].mxu0  ;;  %1753 = vmatmul.mubr.f32.vlgmr.msra.gmra.mrb[16].mxu0 %v1571_v62  ;;  %5394 = vmatprep.mubr.f32.mxu1 %v1571_v62  ;;  %v1563_v0 = vmax.f32 %v1551_v10, 0.0  ;;  %v1607_v29 = vld [vmem:[#allocation3 + $0x978] sm:$0xff]  ;;  %v6330_v3 = vpack.c.bf16 %v1619_v55, %v1616_v53  ;;  %v1633_v62 = vld [vmem:[#allocation3 + $0xa48] sm:$0xff]  ;;  %v2040_v22 = vld [vmem:[#allocation3 + $0xc20] sm:$0xff] }
 0x2ad   :  { %1576 = vst [vmem:[#allocation2 + $0x10] sm:$0xff] %v1572_v11  ;;  %v1569_v23 = vadd.f32 %v1562_v12, %v1561_v9  ;;  %v1553_v24 = vadd.f32 %v1535_v30, %v1425_v17  ;;  %6315 = vmatpush1.bf16.msra.mxu0 %v6314_v6  ;;  %5395 = vmatmul.mubr.f32.vlgmr.msra.gmra.mrb[8].mxu1 %v1572_v11  ;;  %v1629_v6 = vld [vmem:[#allocation3 + $0xa28] sm:$0xff]  ;;  %v1631_v12 = vld [vmem:[#allocation3 + $0xa38] sm:$0xff]  ;;  %v2044_v34 = vld [vmem:[#allocation3 + $0xc40] sm:$0xff] }
 0x2ae   :  { %v1564_v25 = vmax.f32 %v1552_v16, 0.0  ;;  %6347 = vmatpush3.bf16.msra.mxu1 %v7503_v26  ;;  %1758 = vmatprep.mubr.f32.mxu0 %v7483_v40  ;;  %v6322_v37 = vpack.c.bf16 %v1607_v29, %v1604_v28  ;;  %v1612_v26 = vld [vmem:[#allocation3 + $0x9a0] sm:$0xff]  ;;  %v6332_v4 = vpack.c.bf16 %v1626_v1, %v1623_v57  ;;  %v6364_v63 = vpack.c.bf16 %v1627_v58, %v1624_v2  ;;  %v1635_v54 = vld [vmem:[#allocation3 + $0xa58] sm:$0xff] }
 0x2af   :  { %v1573_v31 = vadd.f32 %v1569_v23, %v1563_v0  ;;  %v1565_v27 = vmax.f32 %v1553_v24, 0.0  ;;  %6317 = vmatprep.subr.bf16.mxu0 %v6316_v13  ;;  %6349 = vmatprep.subr.bf16.mxu1 %v6348_v14  ;;  %v6356_v47 = vpack.c.bf16 %v1615_v38, %v1612_v26  ;;  %v6334_v9 = vpack.c.bf16 %v1625_v5, %v1622_v61  ;;  %v1638_v13 = vld [vmem:[#allocation3 + $0xa70] sm:$0xff]  ;;  %v2041_v0 = vld [vmem:[#allocation3 + $0xc28] sm:$0xff]  ;;  %v2036_v28 = vld [vmem:[#allocation3 + $0xc00] sm:$0xff] }
 0x2b0   :  { %1759 = vmatmul.mubr.f32.gmra.mrb[18].mxu0 %v1572_v11  ;;  %v6336_v10 = vpack.c.bf16 %v1632_v7, %v1629_v6  ;;  %v1628_v11 = vld [vmem:[#allocation3 + $0xa20] sm:$0xff]  ;;  %v6340_v17 = vpack.c.bf16 %v1638_v13, %v1635_v54  ;;  %v2038_v23 = vld [vmem:[#allocation3 + $0xc10] sm:$0xff]  ;;  %v2039_v29 = vld [vmem:[#allocation3 + $0xc18] sm:$0xff]  ;;  %v6416_v55 = vpack.c.bf16 %v2053_v46, %v2050_v44 }
 0x2b1   :  { %1577 = vst [vmem:[#allocation2 + $0x28] sm:$0xff] %v1573_v31  ;;  %v1570_v30 = vadd.f32 %v1565_v27, %v1564_v25  ;;  %6319 = vmatpush1.bf16.msra.mxu0 %v6318_v18  ;;  %5397 = vmatprep.mubr.f32.mxu1 %v1573_v31  ;;  %v6338_v16 = vpack.c.bf16 %v1631_v12, %v1628_v11  ;;  %v1634_v18 = vld [vmem:[#allocation3 + $0xa50] sm:$0xff]  ;;  %v2043_v27 = vld [vmem:[#allocation3 + $0xc38] sm:$0xff]  ;;  %v2056_v1 = vld [vmem:[#allocation3 + $0xca0] sm:$0xff] }
 0x2b2   :  { %6351 = vmatpush3.bf16.msra.mxu1 %v6348_v14  ;;  %1764 = vmatprep.mubr.f32.mxu0 %v7483_v40  ;;  %v1636_v14 = vld [vmem:[#allocation3 + $0xa60] sm:$0xff]  ;;  %v6342_v24 = vpack.c.bf16 %v1637_v19, %v1634_v18  ;;  %v6376_v25 = vpack.c.bf16 %v2040_v22, %v2037_v21  ;;  %v2047_v35 = vld [vmem:[#allocation3 + $0xc58] sm:$0xff]  ;;  %v2061_v61 = vld [vmem:[#allocation3 + $0xcc8] sm:$0xff] }
 0x2b3   :  { %v1574_v42 = vadd.f32 %v1570_v30, %v1566_v36  ;;  %6321 = vmatprep.subr.bf16.mxu0 %v6320_v32  ;;  %6353 = vmatprep.subr.bf16.mxu1 %v6352_v33  ;;  %v7513_v51 = vld [vmem:[#allocation2 + $0x7] sm:$0xff]  ;;  %v6372_v20 = vpack.c.bf16 %v1639_v15, %v1636_v14  ;;  %v2046_v32 = vld [vmem:[#allocation3 + $0xc50] sm:$0xff]  ;;  %v6412_v38 = vpack.c.bf16 %v2047_v35, %v2044_v34  ;;  %v2051_v49 = vld [vmem:[#allocation3 + $0xc78] sm:$0xff] }
 0x2b4   :  { %1765 = vmatmul.mubr.f32.gmra.mrb[20].mxu0 %v1573_v31  ;;  %v6408_v31 = vpack.c.bf16 %v2041_v0, %v2038_v23  ;;  %v2042_v36 = vld [vmem:[#allocation3 + $0xc30] sm:$0xff]  ;;  %v2045_v30 = vld [vmem:[#allocation3 + $0xc48] sm:$0xff]  ;;  %v6386_v57 = vpack.c.bf16 %v2051_v49, %v2048_v48  ;;  %v2059_v2 = vld [vmem:[#allocation3 + $0xcb8] sm:$0xff] }
 0x2b5   :  { %1578 = vst [vmem:[#allocation2 + $0x30] sm:$0xff] %v1574_v42  ;;  %6323 = vmatpush1.bf16.msra.mxu0 %v6322_v37  ;;  %5398 = vmatmul.mubr.f32.gmra.mrb[10].mxu1 %v1574_v42  ;;  %v6380_v37 = vpack.c.bf16 %v2046_v32, %v2043_v27  ;;  %v1580_v26 = vld [vmem:[#allocation2 + $0xf] sm:$0xff]  ;;  %v2064_v5 = vld [vmem:[#allocation3 + $0xce0] sm:$0xff]  ;;  %v2067_v11 = vld [vmem:[#allocation3 + $0xcf8] sm:$0xff] }
 0x2b6   :  { %6355 = vmatpush3.bf16.msra.mxu1 %v6352_v33  ;;  %1770 = vmatprep.mubr.f32.mxu0 %v7483_v40  ;;  %v6378_v33 = vpack.c.bf16 %v2039_v29, %v2036_v28  ;;  %v2062_v7 = vld [vmem:[#allocation3 + $0xcd0] sm:$0xff]  ;;  %v2068_v13 = vld [vmem:[#allocation3 + $0xd00] sm:$0xff]  ;;  %v2071_v14 = vld [vmem:[#allocation3 + $0xd18] sm:$0xff] }
 0x2b7   :  { %6325 = vmatprep.subr.bf16.mxu0 %v6324_v43  ;;  %5432 = vmatprep.mubr.f32.mxu1 %v7513_v51  ;;  %v6382_v43 = vpack.c.bf16 %v2045_v30, %v2042_v36  ;;  %v2070_v12 = vld [vmem:[#allocation3 + $0xd10] sm:$0xff]  ;;  %v2073_v18 = vld [vmem:[#allocation3 + $0xd28] sm:$0xff]  ;;  %v2076_v19 = vld [vmem:[#allocation3 + $0xd40] sm:$0xff] }
 0x2b8   :  { %1771 = vmatmul.mubr.f32.gmra.mrb[22].mxu0 %v1574_v42  ;;  %6357 = vmatprep.subr.bf16.mxu1 %v6356_v47  ;;  %v1581_v42 = vld [vmem:[#allocation2 + $0x27] sm:$0xff]  ;;  %v6396_v15 = vpack.c.bf16 %v2070_v12, %v2067_v11  ;;  %v2074_v22 = vld [vmem:[#allocation3 + $0xd30] sm:$0xff]  ;;  %v6400_v0 = vpack.c.bf16 %v2076_v19, %v2073_v18  ;;  %v2079_v28 = vld [vmem:[#allocation3 + $0xd58] sm:$0xff] }
 0x2b9   :  { %6327 = vmatpush1.bf16.msra.mxu0 %v6326_v50  ;;  %1926 = vmatprep.mubr.f32.mxu0 %v7483_v40  ;;  %v6368_v40 = vpack.c.bf16 %v1633_v62, %v1630_v8  ;;  %v6384_v50 = vpack.c.bf16 %v2052_v41, %v2049_v39  ;;  %v2065_v8 = vld [vmem:[#allocation3 + $0xce8] sm:$0xff]  ;;  %v6392_v62 = vpack.c.bf16 %v2064_v5, %v2061_v61  ;;  %v2082_v29 = vld [vmem:[#allocation3 + $0xd70] sm:$0xff]  ;;  %v2080_v32 = vld [vmem:[#allocation3 + $0xd60] sm:$0xff] }
 0x2ba   :  { %6359 = vmatpush3.bf16.msra.mxu1 %v6356_v47  ;;  %6329 = vmatprep.subr.bf16.mxu0 %v6328_v52  ;;  %v7518_v47 = vld [vmem:[#allocation2] sm:$0xff]  ;;  %v2058_v52 = vld [vmem:[#allocation3 + $0xcb0] sm:$0xff]  ;;  %v2077_v23 = vld [vmem:[#allocation3 + $0xd48] sm:$0xff]  ;;  %v6404_v34 = vpack.c.bf16 %v2082_v29, %v2079_v28 }
 0x2bb   :  { %6361 = vmatprep.subr.bf16.mxu1 %v6360_v56  ;;  %v2078_v35 = vld [vmem:[#allocation3 + $0xd50] sm:$0xff]  ;;  %v2081_v36 = vld [vmem:[#allocation3 + $0xd68] sm:$0xff]  ;;  %v2388_v44 = vld [vmem:[#allocation3 + $0xf18] sm:$0xff] }
 0x2bc   :  { %v1582_v53 = vld [vmem:[#allocation2 + $0x2f] sm:$0xff]  ;;  %v2392_v46 = vld [vmem:[#allocation3 + $0xf38] sm:$0xff]  ;;  %v2409_v19 = vld [vmem:[#allocation3 + $0xfc0] sm:$0xff] }
 0x2bd   :  { %6331 = vmatpush1.bf16.msra.mxu0 %v6330_v3  ;;  %v2054_v3 = vld [vmem:[#allocation3 + $0xc90] sm:$0xff]  ;;  %v2386_v30 = vld [vmem:[#allocation3 + $0xf08] sm:$0xff]  ;;  %v2408_v18 = vld [vmem:[#allocation3 + $0xfb8] sm:$0xff] }
 0x2be   :  { %6363 = vmatpush3.bf16.msra.mxu1 %v6360_v56  ;;  %6333 = vmatprep.subr.bf16.mxu0 %v6332_v4  ;;  %v7521_v56 = vld [vmem:[#allocation2 + $0x9] sm:$0xff] }
 0x2bf   :  { %6365 = vmatprep.subr.bf16.mxu1 %v6364_v63  ;;  %v2057_v4 = vld [vmem:[#allocation3 + $0xca8] sm:$0xff]  ;;  %v2387_v39 = vld [vmem:[#allocation3 + $0xf10] sm:$0xff] }
 0x2c0   :  { %v6390_v6 = vpack.c.bf16 %v2057_v4, %v2054_v3  ;;  %v2390_v41 = vld [vmem:[#allocation3 + $0xf28] sm:$0xff]  ;;  %v2395_v48 = vld [vmem:[#allocation3 + $0xf50] sm:$0xff] }
 0x2c1   :  { %6335 = vmatpush1.bf16.msra.mxu0 %v6334_v9  ;;  %v2060_v9 = vld [vmem:[#allocation3 + $0xcc0] sm:$0xff]  ;;  %v6472_v49 = vpack.c.bf16 %v2390_v41, %v2387_v39  ;;  %v1588_v3 = vld [vmem:[#allocation2 + $0x11] sm:$0xff]  ;;  %v2402_v5 = vld [vmem:[#allocation3 + $0xf88] sm:$0xff] }
 0x2c2   :  { %6367 = vmatpush3.bf16.msra.mxu1 %v6364_v63  ;;  %6337 = vmatprep.subr.bf16.mxu0 %v6336_v10  ;;  %v6420_v63 = vpack.c.bf16 %v2059_v2, %v2056_v1  ;;  %v2063_v10 = vld [vmem:[#allocation3 + $0xcd8] sm:$0xff]  ;;  %v2398_v1 = vld [vmem:[#allocation3 + $0xf68] sm:$0xff]  ;;  %v2401_v2 = vld [vmem:[#allocation3 + $0xf80] sm:$0xff] }
 0x2c3   :  { %6369 = vmatprep.subr.bf16.mxu1 %v6368_v40  ;;  %v6394_v54 = vpack.c.bf16 %v2063_v10, %v2060_v9  ;;  %v2399_v61 = vld [vmem:[#allocation3 + $0xf70] sm:$0xff]  ;;  %v2414_v28 = vld [vmem:[#allocation3 + $0xfe8] sm:$0xff]  ;;  %v2428_v41 = vld [vmem:[#allocation3 + $0x1058] sm:$0xff] }
 0x2c4   :  { %v2407_v9 = vld [vmem:[#allocation3 + $0xfb0] sm:$0xff] }
 0x2c5   :  { %6339 = vmatpush1.bf16.msra.mxu0 %v6338_v16  ;;  %v2066_v16 = vld [vmem:[#allocation3 + $0xcf0] sm:$0xff] }
 0x2c6   :  { %6371 = vmatpush3.bf16.msra.mxu1 %v6368_v40  ;;  %6341 = vmatprep.subr.bf16.mxu0 %v6340_v17  ;;  %v6424_v40 = vpack.c.bf16 %v2065_v8, %v2062_v7  ;;  %v2069_v17 = vld [vmem:[#allocation3 + $0xd08] sm:$0xff]  ;;  %v2397_v7 = vld [vmem:[#allocation3 + $0xf60] sm:$0xff]  ;;  %v2400_v8 = vld [vmem:[#allocation3 + $0xf78] sm:$0xff] }
 0x2c7   :  { %6373 = vmatprep.subr.bf16.mxu1 %v6372_v20  ;;  %v6398_v21 = vpack.c.bf16 %v2069_v17, %v2066_v16  ;;  %v1590_v10 = vld [vmem:[#allocation2 + $0x31] sm:$0xff]  ;;  %v6450_v11 = vpack.c.bf16 %v2400_v8, %v2397_v7  ;;  %v2405_v16 = vld [vmem:[#allocation3 + $0xfa0] sm:$0xff] }
 0x2c8   :  { %v2415_v29 = vld [vmem:[#allocation3 + $0xff0] sm:$0xff] }
 0x2c9   :  { %6343 = vmatpush1.bf16.msra.mxu0 %v6342_v24  ;;  %v2072_v24 = vld [vmem:[#allocation3 + $0xd20] sm:$0xff] }
 0x2ca   :  { %6375 = vmatpush3.bf16.msra.mxu1 %v6372_v20  ;;  %6377 = vmatprep.subr.bf16.mxu0 %v6376_v25  ;;  %v6428_v20 = vpack.c.bf16 %v2071_v14, %v2068_v13  ;;  %v2075_v25 = vld [vmem:[#allocation3 + $0xd38] sm:$0xff]  ;;  %v2410_v14 = vld [vmem:[#allocation3 + $0xfc8] sm:$0xff] }
 0x2cb   :  { %6409 = vmatprep.subr.bf16.mxu1 %v6408_v31  ;;  %v6402_v27 = vpack.c.bf16 %v2075_v25, %v2072_v24  ;;  %v2411_v24 = vld [vmem:[#allocation3 + $0xfd0] sm:$0xff] }
 0x2cc   :  { %1927 = vmatmul.mubr.f32.vlgmr.msra.gmra.mrb[16].mxu0 %v7513_v51  ;;  %v2055_v51 = vld [vmem:[#allocation3 + $0xc98] sm:$0xff] }
 0x2cd   :  { %6379 = vmatpush1.bf16.msra.mxu0 %v6378_v33  ;;  %5433 = vmatmul.mubr.f32.vlgmr.msra.gmra.mrb[8].mxu1 %v1580_v26  ;;  %v6388_v58 = vpack.c.bf16 %v2058_v52, %v2055_v51  ;;  %v2083_v33 = vld [vmem:[#allocation3 + $0xd78] sm:$0xff]  ;;  %v2393_v51 = vld [vmem:[#allocation3 + $0xf40] sm:$0xff] }
 0x2ce   :  { %1932 = vmatprep.mubr.f32.mxu0 %v7518_v47  ;;  %5435 = vmatprep.mubr.f32.mxu1 %v1581_v42  ;;  %v2396_v52 = vld [vmem:[#allocation3 + $0xf58] sm:$0xff] }
 0x2cf   :  { %6411 = vmatpush3.bf16.msra.mxu1 %v6408_v31  ;;  %6381 = vmatprep.subr.bf16.mxu0 %v6380_v37  ;;  %v6432_v31 = vpack.c.bf16 %v2077_v23, %v2074_v22  ;;  %v2389_v37 = vld [vmem:[#allocation3 + $0xf20] sm:$0xff]  ;;  %v2416_v23 = vld [vmem:[#allocation3 + $0xff8] sm:$0xff] }
 0x2d0   :  { %1933 = vmatmul.mubr.f32.gmra.mrb[18].mxu0 %v1580_v26  ;;  %6413 = vmatprep.subr.bf16.mxu1 %v6412_v38  ;;  %v6436_v26 = vpack.c.bf16 %v2083_v33, %v2080_v32  ;;  %v2422_v33 = vld [vmem:[#allocation3 + $0x1028] sm:$0xff] }
 0x2d1   :  { %6383 = vmatpush1.bf16.msra.mxu0 %v6382_v43  ;;  %5436 = vmatmul.mubr.f32.gmra.mrb[10].mxu1 %v1582_v53  ;;  %v2385_v43 = vld [vmem:[#allocation3 + $0xf00] sm:$0xff] }
 0x2d2   :  { %1938 = vmatprep.mubr.f32.mxu0 %v7518_v47  ;;  %5470 = vmatprep.mubr.f32.mxu1 %v7521_v56 }
 0x2d3   :  { %6415 = vmatpush3.bf16.msra.mxu1 %v6412_v38  ;;  %6385 = vmatprep.subr.bf16.mxu0 %v6384_v50  ;;  %v6406_v38 = vpack.c.bf16 %v2081_v36, %v2078_v35  ;;  %v6442_v50 = vpack.c.bf16 %v2388_v44, %v2385_v43  ;;  %v2417_v36 = vld [vmem:[#allocation3 + $0x1000] sm:$0xff]  ;;  %v2423_v43 = vld [vmem:[#allocation3 + $0x1030] sm:$0xff] }
 0x2d4   :  { %1939 = vmatmul.mubr.f32.gmra.mrb[20].mxu0 %v1581_v42  ;;  %6417 = vmatprep.subr.bf16.mxu1 %v6416_v55  ;;  %v6440_v42 = vpack.c.bf16 %v2389_v37, %v2386_v30  ;;  %v2420_v30 = vld [vmem:[#allocation3 + $0x1018] sm:$0xff]  ;;  %v2421_v37 = vld [vmem:[#allocation3 + $0x1020] sm:$0xff] }
 0x2d5   :  { %6387 = vmatpush1.bf16.msra.mxu0 %v6386_v57  ;;  %1944 = vmatprep.mubr.f32.mxu0 %v7518_v47  ;;  %v2394_v57 = vld [vmem:[#allocation3 + $0xf48] sm:$0xff] }
 0x2d6   :  { %6389 = vmatprep.subr.bf16.mxu0 %v6388_v58  ;;  %v6476_v58 = vpack.c.bf16 %v2396_v52, %v2393_v51  ;;  %v2429_v52 = vld [vmem:[#allocation3 + $0x1060] sm:$0xff] }
 0x2d7   :  { %6419 = vmatpush3.bf16.msra.mxu1 %v6416_v55  ;;  %v2391_v55 = vld [vmem:[#allocation3 + $0xf30] sm:$0xff] }
 0x2d8   :  { %1945 = vmatmul.mubr.f32.gmra.mrb[22].mxu0 %v1582_v53  ;;  %6421 = vmatprep.subr.bf16.mxu1 %v6420_v63  ;;  %v6444_v53 = vpack.c.bf16 %v2395_v48, %v2392_v46  ;;  %v6446_v4 = vpack.c.bf16 %v2394_v57, %v2391_v55  ;;  %v2426_v46 = vld [vmem:[#allocation3 + $0x1048] sm:$0xff]  ;;  %v2427_v48 = vld [vmem:[#allocation3 + $0x1050] sm:$0xff] }
 0x2d9   :  { %6391 = vmatpush1.bf16.msra.mxu0 %v6390_v6  ;;  %2148 = vmatprep.mubr.f32.mxu0 %v7518_v47  ;;  %v6448_v6 = vpack.c.bf16 %v2401_v2, %v2398_v1  ;;  %v2338_v55 = vld [vmem:[#allocation3 + $0xd88] sm:$0xff]  ;;  %v2341_v1 = vld [vmem:[#allocation3 + $0xda0] sm:$0xff] }
 0x2da   :  { %6393 = vmatprep.subr.bf16.mxu0 %v6392_v62  ;;  %v2404_v62 = vld [vmem:[#allocation3 + $0xf98] sm:$0xff]  ;;  %v6504_v2 = vpack.c.bf16 %v2341_v1, %v2338_v55 }
 0x2db   :  { %6423 = vmatpush3.bf16.msra.mxu1 %v6420_v63  ;;  %v1589_v63 = vld [vmem:[#allocation2 + $0x29] sm:$0xff]  ;;  %v6452_v12 = vpack.c.bf16 %v2407_v9, %v2404_v62  ;;  %v2356_v1 = vld [vmem:[#allocation3 + $0xe18] sm:$0xff] }
 0x2dc   :  { %6425 = vmatprep.subr.bf16.mxu1 %v6424_v40 }
 0x2dd   :  { %6395 = vmatpush1.bf16.msra.mxu0 %v6394_v54  ;;  %v2406_v54 = vld [vmem:[#allocation3 + $0xfa8] sm:$0xff] }
 0x2de   :  { %6397 = vmatprep.subr.bf16.mxu0 %v6396_v15  ;;  %v2413_v15 = vld [vmem:[#allocation3 + $0xfe0] sm:$0xff] }
 0x2df   :  { %6427 = vmatpush3.bf16.msra.mxu1 %v6424_v40  ;;  %v2403_v40 = vld [vmem:[#allocation3 + $0xf90] sm:$0xff]  ;;  %v6456_v17 = vpack.c.bf16 %v2413_v15, %v2410_v14  ;;  %v2340_v14 = vld [vmem:[#allocation3 + $0xd98] sm:$0xff] }
 0x2e0   :  { %6429 = vmatprep.subr.bf16.mxu1 %v6428_v20  ;;  %v6454_v13 = vpack.c.bf16 %v2406_v54, %v2403_v40 }
 0x2e1   :  { %6399 = vmatpush1.bf16.msra.mxu0 %v6398_v21  ;;  %v6484_v21 = vpack.c.bf16 %v2408_v18, %v2405_v16  ;;  %v2347_v18 = vld [vmem:[#allocation3 + $0xdd0] sm:$0xff] }
 0x2e2   :  { %6401 = vmatprep.subr.bf16.mxu0 %v6400_v0  ;;  %v2419_v0 = vld [vmem:[#allocation3 + $0x1010] sm:$0xff] }
 0x2e3   :  { %6431 = vmatpush3.bf16.msra.mxu1 %v6428_v20  ;;  %v2412_v20 = vld [vmem:[#allocation3 + $0xfd8] sm:$0xff]  ;;  %v6460_v25 = vpack.c.bf16 %v2419_v0, %v2416_v23 }
 0x2e4   :  { %6433 = vmatprep.subr.bf16.mxu1 %v6432_v31  ;;  %v6458_v22 = vpack.c.bf16 %v2412_v20, %v2409_v19 }
 0x2e5   :  { %6403 = vmatpush1.bf16.msra.mxu0 %v6402_v27  ;;  %v6488_v27 = vpack.c.bf16 %v2414_v28, %v2411_v24 }
 0x2e6   :  { %6405 = vmatprep.subr.bf16.mxu0 %v6404_v34  ;;  %v2425_v34 = vld [vmem:[#allocation3 + $0x1040] sm:$0xff] }
 0x2e7   :  { %6435 = vmatpush3.bf16.msra.mxu1 %v6432_v31  ;;  %v2418_v31 = vld [vmem:[#allocation3 + $0x1008] sm:$0xff]  ;;  %v6464_v35 = vpack.c.bf16 %v2425_v34, %v2422_v33 }
 0x2e8   :  { %6437 = vmatprep.subr.bf16.mxu1 %v6436_v26  ;;  %v6462_v32 = vpack.c.bf16 %v2418_v31, %v2415_v29  ;;  %v2346_v33 = vld [vmem:[#allocation3 + $0xdc8] sm:$0xff] }
 0x2e9   :  { %6407 = vmatpush1.bf16.msra.mxu0 %v6406_v38  ;;  %v2424_v38 = vld [vmem:[#allocation3 + $0x1038] sm:$0xff] }
 0x2ea   :  { %6441 = vmatprep.subr.bf16.mxu0 %v6440_v42  ;;  %v6466_v39 = vpack.c.bf16 %v2424_v38, %v2421_v37  ;;  %v2431_v42 = vld [vmem:[#allocation3 + $0x1070] sm:$0xff] }
 0x2eb   :  { %6439 = vmatpush3.bf16.msra.mxu1 %v6436_v26  ;;  %v6492_v26 = vpack.c.bf16 %v2420_v30, %v2417_v36  ;;  %v6468_v44 = vpack.c.bf16 %v2431_v42, %v2428_v41  ;;  %v2350_v36 = vld [vmem:[#allocation3 + $0xde8] sm:$0xff]  ;;  %v2353_v30 = vld [vmem:[#allocation3 + $0xe00] sm:$0xff]  ;;  %v2348_v42 = vld [vmem:[#allocation3 + $0xdd8] sm:$0xff] }
 0x2ec   :  { %2149 = vmatmul.mubr.f32.vlgmr.msra.gmra.mrb[16].mxu0 %v7521_v56  ;;  %6473 = vmatprep.subr.bf16.mxu1 %v6472_v49  ;;  %v6480_v56 = vpack.c.bf16 %v2402_v5, %v2399_v61  ;;  %v2271_v61 = vld [vmem:[#allocation6 + $0x6] sm:$0x7] }
 0x2ed   :  { %2154 = vmatprep.mubr.f32.mxu0 %v7518_v47  ;;  %6443 = vmatpush1.bf16.msra.mxu0 %v6442_v50  ;;  %v6496_v50 = vpack.c.bf16 %v2426_v46, %v2423_v43  ;;  %v2276_v5 = vrot.slane %v2271_v61, %v7469_v45  ;;  %v2284_v7 = vrot.slane %v2271_v61, %v7473_v60  ;;  %v2345_v41 = vld [vmem:[#allocation3 + $0xdc0] sm:$0xff] }
 0x2ee   :  { %5471 = vmatmul.mubr.f32.vlgmr.msra.gmra.mrb[8].mxu1 %v1588_v3  ;;  %6445 = vmatprep.subr.bf16.mxu0 %v6444_v53  ;;  %v2432_v53 = vld [vmem:[#allocation3 + $0x1078] sm:$0xff] }
 0x2ef   :  { %5473 = vmatprep.mubr.f32.mxu1 %v1589_v63  ;;  %6475 = vmatpush3.bf16.msra.mxu1 %v6472_v49  ;;  %v2430_v49 = vld [vmem:[#allocation3 + $0x1068] sm:$0xff]  ;;  %v6500_v57 = vpack.c.bf16 %v2432_v53, %v2429_v52  ;;  %v2352_v52 = vld [vmem:[#allocation3 + $0xdf8] sm:$0xff] }
 0x2f0   :  { %2155 = vmatmul.mubr.f32.gmra.mrb[18].mxu0 %v1588_v3  ;;  %6477 = vmatprep.subr.bf16.mxu1 %v6476_v58  ;;  %v6470_v51 = vpack.c.bf16 %v2430_v49, %v2427_v48  ;;  %v2342_v3 = vld [vmem:[#allocation3 + $0xda8] sm:$0xff] }
 0x2f1   :  { %2160 = vmatprep.mubr.f32.mxu0 %v7518_v47  ;;  %6447 = vmatpush1.bf16.msra.mxu0 %v6446_v4 }
 0x2f2   :  { %5474 = vmatmul.mubr.f32.gmra.mrb[10].mxu1 %v1590_v10  ;;  %6449 = vmatprep.subr.bf16.mxu0 %v6448_v6 }
 0x2f3   :  { %6479 = vmatpush3.bf16.msra.mxu1 %v6476_v58  ;;  %v2339_v58 = vld [vmem:[#allocation3 + $0xd90] sm:$0xff] }
 0x2f4   :  { %2161 = vmatmul.mubr.f32.gmra.mrb[20].mxu0 %v1589_v63  ;;  %6481 = vmatprep.subr.bf16.mxu1 %v6480_v56  ;;  %v7532_v4 = vpack.c.bf16 %v2342_v3, %v2339_v58  ;;  %v7537_v63 = vrot.slane %v2271_v61, %v7471_v59 }
 0x2f5   :  { %2166 = vmatprep.mubr.f32.mxu0 %v7518_v47  ;;  %6451 = vmatpush1.bf16.msra.mxu0 %v6450_v11 }
 0x2f6   :  { %6453 = vmatprep.subr.bf16.mxu0 %v6452_v12 }
 0x2f7   :  { %6483 = vmatpush3.bf16.msra.mxu1 %v6480_v56 }
 0x2f8   :  { %2167 = vmatmul.mubr.f32.gmra.mrb[22].mxu0 %v1590_v10  ;;  %6485 = vmatprep.subr.bf16.mxu1 %v6484_v21 }
 0x2f9   :  { %6455 = vmatpush1.bf16.msra.mxu0 %v6454_v13  ;;  %2497 = vmatprep.mubr.f32.mxu0 %v7518_v47  ;;  %v2337_v13 = vld [vmem:[#allocation3 + $0xd80] sm:$0xff] }
 0x2fa   :  { %6457 = vmatprep.subr.bf16.mxu0 %v6456_v17  ;;  %v2344_v17 = vld [vmem:[#allocation3 + $0xdb8] sm:$0xff] }
 0x2fb   :  { %6487 = vmatpush3.bf16.msra.mxu1 %v6484_v21 }
 0x2fc   :  { %6489 = vmatprep.subr.bf16.mxu1 %v6488_v27 }
 0x2fd   :  { %6459 = vmatpush1.bf16.msra.mxu0 %v6458_v22 }
 0x2fe   :  { %6461 = vmatprep.subr.bf16.mxu0 %v6460_v25  ;;  %v6506_v25 = vpack.c.bf16 %v2340_v14, %v2337_v13 }
 0x2ff   :  { %6491 = vmatpush3.bf16.msra.mxu1 %v6488_v27  ;;  %v6508_v27 = vpack.c.bf16 %v2347_v18, %v2344_v17 }
 0x300   :  { %6493 = vmatprep.subr.bf16.mxu1 %v6492_v26 }
 0x301   :  { %6463 = vmatpush1.bf16.msra.mxu0 %v6462_v32  ;;  %v2343_v32 = vld [vmem:[#allocation3 + $0xdb0] sm:$0xff] }
 0x302   :  { %6465 = vmatprep.subr.bf16.mxu0 %v6464_v35 }
 0x303   :  { %6495 = vmatpush3.bf16.msra.mxu1 %v6492_v26 }
 0x304   :  { %6497 = vmatprep.subr.bf16.mxu1 %v6496_v50 }
 0x305   :  { %6467 = vmatpush1.bf16.msra.mxu0 %v6466_v39 }
 0x306   :  { %6469 = vmatprep.subr.bf16.mxu0 %v6468_v44  ;;  %v6510_v44 = vpack.c.bf16 %v2346_v33, %v2343_v32  ;;  %v2370_v32 = vld [vmem:[#allocation3 + $0xe88] sm:$0xff] }
 0x307   :  { %6499 = vmatpush3.bf16.msra.mxu1 %v6496_v50  ;;  %v6512_v50 = vpack.c.bf16 %v2353_v30, %v2350_v36  ;;  %v2374_v33 = vld [vmem:[#allocation3 + $0xea8] sm:$0xff]  ;;  %v2372_v36 = vld [vmem:[#allocation3 + $0xe98] sm:$0xff] }
 0x308   :  { %6501 = vmatprep.subr.bf16.mxu1 %v6500_v57 }
 0x309   :  { %6471 = vmatpush1.bf16.msra.mxu0 %v6470_v51  ;;  %v2349_v51 = vld [vmem:[#allocation3 + $0xde0] sm:$0xff] }
 0x30a   :  { %6505 = vmatprep.subr.bf16.mxu0 %v6504_v2  ;;  %v2359_v2 = vld [vmem:[#allocation3 + $0xe30] sm:$0xff] }
 0x30b   :  { %6503 = vmatpush3.bf16.msra.mxu1 %v6500_v57  ;;  %v6540_v57 = vpack.c.bf16 %v2348_v42, %v2345_v41  ;;  %v2380_v41 = vld [vmem:[#allocation3 + $0xed8] sm:$0xff]  ;;  %v2383_v42 = vld [vmem:[#allocation3 + $0xef0] sm:$0xff] }
 0x30c   :  { %6537 = vmatprep.subr.bf16.mxu1 %v7532_v4 }
 0x3bf   :  { %v2150_v6 = vpop.f32.mrb[16].mxu0 }
 0x3c0   :  { %v2288_v8 = vadd.f32 %v2276_v5, %v2150_v6  ;;  %v2152_v62 = vpop.f32.mrb[17].mxu0 }
 0x3c1   :  { %v2289_v9 = vadd.f32 %v7537_v63, %v2152_v62  ;;  %v5472_v56 = vpop.f32.mrb[8].mxu1  ;;  %v2354_v62 = vld [vmem:[#allocation3 + $0xe08] sm:$0xff] }
 0x3c2   :  { %v2300_v10 = vmax.f32 %v2288_v8, 0.0  ;;  %v2239_v11 = vpop.f32.mrb[9].mxu1  ;;  %v2293_v20 = vadd.f32 %v5472_v56, %v2284_v7  ;;  %v2351_v8 = vld [vmem:[#allocation3 + $0xdf0] sm:$0xff]  ;;  %v6514_v56 = vpack.c.bf16 %v2352_v52, %v2349_v51  ;;  %v2382_v51 = vld [vmem:[#allocation3 + $0xee8] sm:$0xff]  ;;  %v2381_v52 = vld [vmem:[#allocation3 + $0xee0] sm:$0xff] }
 0x3c3   :  { %v2301_v12 = vmax.f32 %v2289_v9, 0.0  ;;  %v2290_v40 = vadd.f32 %v2284_v7, %v2239_v11  ;;  %v2156_v54 = vpop.f32.mrb[18].mxu0  ;;  %v6516_v11 = vpack.c.bf16 %v2359_v2, %v2356_v1 }
 0x3c4   :  { %v2291_v15 = vadd.f32 %v2276_v5, %v2156_v54  ;;  %v2158_v16 = vpop.f32.mrb[19].mxu0  ;;  %v2305_v37 = vmax.f32 %v2293_v20, 0.0  ;;  %v2365_v54 = vld [vmem:[#allocation3 + $0xe60] sm:$0xff]  ;;  %v2364_v20 = vld [vmem:[#allocation3 + $0xe58] sm:$0xff] }
 0x3c5   :  { %v2312_v19 = vadd.f32 %v2301_v12, %v2300_v10  ;;  %v2302_v21 = vmax.f32 %v2290_v40, 0.0  ;;  %v2292_v22 = vadd.f32 %v7537_v63, %v2158_v16  ;;  %v5475_v23 = vpop.f32.mrb[10].mxu1  ;;  %v2358_v12 = vld [vmem:[#allocation3 + $0xe28] sm:$0xff]  ;;  %v6544_v40 = vpack.c.bf16 %v2354_v62, %v2351_v8  ;;  %v2791_v8 = vld [vmem:[#allocation3 + $0x10d0] sm:$0xff] }
 0x3c6   :  { %v2303_v0 = vmax.f32 %v2291_v15, 0.0  ;;  %v2249_v24 = vpop.f32.mrb[11].mxu1  ;;  %v2299_v58 = vadd.f32 %v5475_v23, %v2284_v7  ;;  %v2357_v15 = vld [vmem:[#allocation3 + $0xe20] sm:$0xff]  ;;  %v2371_v23 = vld [vmem:[#allocation3 + $0xe90] sm:$0xff] }
 0x3c7   :  { %v2316_v28 = vadd.f32 %v2312_v19, %v2302_v21  ;;  %v2304_v29 = vmax.f32 %v2292_v22, 0.0  ;;  %v2162_v31 = vpop.f32.mrb[20].mxu0  ;;  %v2296_v38 = vadd.f32 %v2284_v7, %v2249_v24  ;;  %v2355_v7 = vld [vmem:[#allocation3 + $0xe10] sm:$0xff]  ;;  %v2361_v19 = vld [vmem:[#allocation3 + $0xe40] sm:$0xff]  ;;  %v2368_v21 = vld [vmem:[#allocation3 + $0xe78] sm:$0xff] }
 0x3c8   :  { %v2294_v34 = vadd.f32 %v2276_v5, %v2162_v31  ;;  %v2164_v35 = vpop.f32.mrb[21].mxu0  ;;  %v2311_v13 = vmax.f32 %v2299_v58, 0.0  ;;  %v6518_v16 = vpack.c.bf16 %v2358_v12, %v2355_v7  ;;  %v2366_v24 = vld [vmem:[#allocation3 + $0xe68] sm:$0xff]  ;;  %v2783_v62 = vld [vmem:[#allocation3 + $0x1090] sm:$0xff] }
 0x3c9   :  { %2320 = vst [vmem:[#allocation2 + $0x8] sm:$0xff] %v2316_v28  ;;  %v2313_v26 = vadd.f32 %v2304_v29, %v2303_v0  ;;  %v2295_v39 = vadd.f32 %v7537_v63, %v2164_v35  ;;  %2498 = vmatmul.mubr.f32.vlgmr.msra.gmra.mrb[24].mxu0 %v2316_v28  ;;  %5508 = vmatprep.mubr.f32.mxu1 %v2316_v28  ;;  %v2308_v3 = vmax.f32 %v2296_v38, 0.0  ;;  %v2363_v0 = vld [vmem:[#allocation3 + $0xe50] sm:$0xff]  ;;  %v2369_v35 = vld [vmem:[#allocation3 + $0xe80] sm:$0xff]  ;;  %v2794_v12 = vld [vmem:[#allocation3 + $0x10e8] sm:$0xff] }
 0x3ca   :  { %v2306_v43 = vmax.f32 %v2294_v34, 0.0  ;;  %6507 = vmatpush1.bf16.msra.mxu0 %v6506_v25  ;;  %2503 = vmatprep.mubr.f32.mxu0 %v7518_v47  ;;  %v6522_v28 = vpack.c.bf16 %v2364_v20, %v2361_v19  ;;  %v6524_v29 = vpack.c.bf16 %v2371_v23, %v2368_v21  ;;  %v6552_v31 = vpack.c.bf16 %v2366_v24, %v2363_v0  ;;  %v2377_v34 = vld [vmem:[#allocation3 + $0xec0] sm:$0xff]  ;;  %v2803_v19 = vld [vmem:[#allocation3 + $0x1130] sm:$0xff]  ;;  %v2802_v24 = vld [vmem:[#allocation3 + $0x1128] sm:$0xff] }
 0x3cb   :  { %v2317_v46 = vadd.f32 %v2313_v26, %v2305_v37  ;;  %v2307_v48 = vmax.f32 %v2295_v39, 0.0  ;;  %v2168_v49 = vpop.f32.mrb[22].mxu0  ;;  %6509 = vmatprep.subr.bf16.mxu0 %v6508_v27  ;;  %v2367_v27 = vld [vmem:[#allocation3 + $0xe70] sm:$0xff]  ;;  %v6528_v37 = vpack.c.bf16 %v2377_v34, %v2374_v33  ;;  %v6556_v26 = vpack.c.bf16 %v2372_v36, %v2369_v35  ;;  %v2373_v38 = vld [vmem:[#allocation3 + $0xea0] sm:$0xff]  ;;  %v2376_v39 = vld [vmem:[#allocation3 + $0xeb8] sm:$0xff] }
 0x3cc   :  { %v2297_v53 = vadd.f32 %v2276_v5, %v2168_v49  ;;  %v2170_v55 = vpop.f32.mrb[23].mxu0  ;;  %v6526_v30 = vpack.c.bf16 %v2370_v32, %v2367_v27  ;;  %v2795_v21 = vld [vmem:[#allocation3 + $0x10f0] sm:$0xff]  ;;  %v2809_v27 = vld [vmem:[#allocation3 + $0x1160] sm:$0xff]  ;;  %v2804_v34 = vld [vmem:[#allocation3 + $0x1138] sm:$0xff] }
 0x3cd   :  { %2321 = vst [vmem:[#allocation2 + $0x10] sm:$0xff] %v2317_v46  ;;  %v2314_v61 = vadd.f32 %v2307_v48, %v2306_v43  ;;  %v2298_v6 = vadd.f32 %v7537_v63, %v2170_v55  ;;  %2504 = vmatmul.mubr.f32.gmra.mrb[26].mxu0 %v2317_v46  ;;  %5509 = vmatmul.mubr.f32.vlgmr.msra.gmra.mrb[12].mxu1 %v2317_v46  ;;  %v2362_v63 = vld [vmem:[#allocation3 + $0xe48] sm:$0xff]  ;;  %v2375_v43 = vld [vmem:[#allocation3 + $0xeb0] sm:$0xff]  ;;  %v2801_v33 = vld [vmem:[#allocation3 + $0x1120] sm:$0xff] }
 0x3ce   :  { %v2309_v9 = vmax.f32 %v2297_v53, 0.0  ;;  %6511 = vmatpush1.bf16.msra.mxu0 %v6510_v44  ;;  %6539 = vmatpush3.bf16.msra.mxu1 %v7532_v4  ;;  %v2360_v4 = vld [vmem:[#allocation3 + $0xe38] sm:$0xff]  ;;  %v6520_v18 = vpack.c.bf16 %v2365_v54, %v2362_v63  ;;  %v2378_v44 = vld [vmem:[#allocation3 + $0xec8] sm:$0xff]  ;;  %v6530_v46 = vpack.c.bf16 %v2376_v39, %v2373_v38  ;;  %v6532_v48 = vpack.c.bf16 %v2383_v42, %v2380_v41  ;;  %v2789_v63 = vld [vmem:[#allocation3 + $0x10c0] sm:$0xff] }
 0x3cf   :  { %v2318_v5 = vadd.f32 %v2314_v61, %v2308_v3  ;;  %v2310_v10 = vmax.f32 %v2298_v6, 0.0  ;;  %2509 = vmatprep.mubr.f32.mxu0 %v7518_v47  ;;  %6513 = vmatprep.subr.bf16.mxu0 %v6512_v50  ;;  %v6548_v22 = vpack.c.bf16 %v2360_v4, %v2357_v15  ;;  %v6560_v49 = vpack.c.bf16 %v2378_v44, %v2375_v43  ;;  %v2379_v50 = vld [vmem:[#allocation3 + $0xed0] sm:$0xff]  ;;  %v2384_v53 = vld [vmem:[#allocation3 + $0xef8] sm:$0xff]  ;;  %v2782_v55 = vld [vmem:[#allocation3 + $0x1088] sm:$0xff] }
 0x3d0   :  { %6541 = vmatprep.subr.bf16.mxu1 %v6540_v57  ;;  %v2324_v25 = vld [vmem:[#allocation2 + $0x7] sm:$0xff]  ;;  %v6534_v1 = vpack.c.bf16 %v2382_v51, %v2379_v50  ;;  %v6564_v2 = vpack.c.bf16 %v2384_v53, %v2381_v52  ;;  %v2784_v61 = vld [vmem:[#allocation3 + $0x1098] sm:$0xff]  ;;  %v2799_v0 = vld [vmem:[#allocation3 + $0x1110] sm:$0xff] }
 0x3d1   :  { %2322 = vst [vmem:[#allocation2 + $0x28] sm:$0xff] %v2318_v5  ;;  %v2315_v14 = vadd.f32 %v2310_v10, %v2309_v9  ;;  %2510 = vmatmul.mubr.f32.gmra.mrb[28].mxu0 %v2318_v5  ;;  %5511 = vmatprep.mubr.f32.mxu1 %v2318_v5  ;;  %v2781_v3 = vld [vmem:[#allocation3 + $0x1080] sm:$0xff]  ;;  %v2788_v6 = vld [vmem:[#allocation3 + $0x10b8] sm:$0xff]  ;;  %v2786_v9 = vld [vmem:[#allocation3 + $0x10a8] sm:$0xff]  ;;  %v6582_v35 = vpack.c.bf16 %v2802_v24, %v2799_v0 }
 0x3d2   :  { %6515 = vmatpush1.bf16.msra.mxu0 %v6514_v56  ;;  %6543 = vmatpush3.bf16.msra.mxu1 %v6540_v57  ;;  %v2785_v57 = vld [vmem:[#allocation3 + $0x10a0] sm:$0xff]  ;;  %v6570_v56 = vpack.c.bf16 %v2784_v61, %v2781_v3  ;;  %v6572_v5 = vpack.c.bf16 %v2791_v8, %v2788_v6  ;;  %v2787_v10 = vld [vmem:[#allocation3 + $0x10b0] sm:$0xff]  ;;  %v6600_v7 = vpack.c.bf16 %v2786_v9, %v2783_v62  ;;  %v2792_v54 = vld [vmem:[#allocation3 + $0x10d8] sm:$0xff] }
 0x3d3   :  { %v2319_v17 = vadd.f32 %v2315_v14, %v2311_v13  ;;  %2515 = vmatprep.mubr.f32.mxu0 %v7518_v47  ;;  %6517 = vmatprep.subr.bf16.mxu0 %v6516_v11  ;;  %v6568_v58 = vpack.c.bf16 %v2785_v57, %v2782_v55  ;;  %v2790_v11 = vld [vmem:[#allocation3 + $0x10c8] sm:$0xff]  ;;  %v2793_v14 = vld [vmem:[#allocation3 + $0x10e0] sm:$0xff]  ;;  %v2796_v15 = vld [vmem:[#allocation3 + $0x10f8] sm:$0xff] }
 0x3d4   :  { %6545 = vmatprep.subr.bf16.mxu1 %v6544_v40  ;;  %v6574_v13 = vpack.c.bf16 %v2790_v11, %v2787_v10  ;;  %v2325_v4 = vld [vmem:[#allocation2 + $0xf] sm:$0xff]  ;;  %v6578_v23 = vpack.c.bf16 %v2796_v15, %v2793_v14  ;;  %v2812_v38 = vld [vmem:[#allocation3 + $0x1178] sm:$0xff]  ;;  %v2821_v51 = vld [vmem:[#allocation3 + $0x11c0] sm:$0xff] }
 0x3d5   :  { %2323 = vst [vmem:[#allocation2 + $0x30] sm:$0xff] %v2319_v17  ;;  %2516 = vmatmul.mubr.f32.gmra.mrb[30].mxu0 %v2319_v17  ;;  %5512 = vmatmul.mubr.f32.gmra.mrb[14].mxu1 %v2319_v17  ;;  %v6604_v17 = vpack.c.bf16 %v2792_v54, %v2789_v63  ;;  %v7551_v32 = vld [vmem:[#allocation2 + $0x9] sm:$0xff]  ;;  %v2813_v52 = vld [vmem:[#allocation3 + $0x1180] sm:$0xff]  ;;  %v2816_v53 = vld [vmem:[#allocation3 + $0x1198] sm:$0xff] }
 0x3d6   :  { %6519 = vmatpush1.bf16.msra.mxu0 %v6518_v16  ;;  %6547 = vmatpush3.bf16.msra.mxu1 %v6544_v40  ;;  %v2797_v40 = vld [vmem:[#allocation3 + $0x1100] sm:$0xff]  ;;  %v2815_v39 = vld [vmem:[#allocation3 + $0x1190] sm:$0xff]  ;;  %v2810_v42 = vld [vmem:[#allocation3 + $0x1168] sm:$0xff] }
 0x3d7   :  { %5546 = vmatprep.mubr.f32.mxu1 %v2324_v25  ;;  %6521 = vmatprep.subr.bf16.mxu0 %v6520_v18  ;;  %v6576_v16 = vpack.c.bf16 %v2797_v40, %v2794_v12  ;;  %v2800_v18 = vld [vmem:[#allocation3 + $0x1118] sm:$0xff]  ;;  %v2807_v41 = vld [vmem:[#allocation3 + $0x1150] sm:$0xff]  ;;  %v6588_v44 = vpack.c.bf16 %v2815_v39, %v2812_v38  ;;  %v2818_v50 = vld [vmem:[#allocation3 + $0x11a8] sm:$0xff] }
 0x3d8   :  { %6549 = vmatprep.subr.bf16.mxu1 %v6548_v22  ;;  %2671 = vmatprep.mubr.f32.mxu0 %v7518_v47  ;;  %v2326_v20 = vld [vmem:[#allocation2 + $0x27] sm:$0xff]  ;;  %v6592_v57 = vpack.c.bf16 %v2821_v51, %v2818_v50  ;;  %v2827_v3 = vld [vmem:[#allocation3 + $0x11f0] sm:$0xff]  ;;  %v2828_v12 = vld [vmem:[#allocation3 + $0x11f8] sm:$0xff] }
 0x3d9   :  { %v2819_v61 = vld [vmem:[#allocation3 + $0x11b0] sm:$0xff]  ;;  %v2822_v6 = vld [vmem:[#allocation3 + $0x11c8] sm:$0xff]  ;;  %v3134_v11 = vld [vmem:[#allocation3 + $0x13a0] sm:$0xff] }
 0x3da   :  { %6523 = vmatpush1.bf16.msra.mxu0 %v6522_v28  ;;  %6551 = vmatpush3.bf16.msra.mxu1 %v6548_v22  ;;  %v2798_v22 = vld [vmem:[#allocation3 + $0x1108] sm:$0xff]  ;;  %v6580_v28 = vpack.c.bf16 %v2803_v19, %v2800_v18  ;;  %v2823_v9 = vld [vmem:[#allocation3 + $0x11d0] sm:$0xff]  ;;  %v3130_v54 = vld [vmem:[#allocation3 + $0x1380] sm:$0xff] }
 0x3db   :  { %6525 = vmatprep.subr.bf16.mxu0 %v6524_v29  ;;  %6553 = vmatprep.subr.bf16.mxu1 %v6552_v31  ;;  %v6608_v29 = vpack.c.bf16 %v2798_v22, %v2795_v21  ;;  %v3131_v10 = vld [vmem:[#allocation3 + $0x1388] sm:$0xff]  ;;  %v3137_v15 = vld [vmem:[#allocation3 + $0x13b8] sm:$0xff]  ;;  %v3136_v21 = vld [vmem:[#allocation3 + $0x13b0] sm:$0xff] }
 0x3dc   :  { %v6632_v63 = vpack.c.bf16 %v3134_v11, %v3131_v10  ;;  %v3139_v22 = vld [vmem:[#allocation3 + $0x13c8] sm:$0xff]  ;;  %v3141_v0 = vld [vmem:[#allocation3 + $0x13d8] sm:$0xff]  ;;  %v7557_v24 = vld [vmem:[#allocation2] sm:$0xff] }
 0x3dd   :  { %v3155_v51 = vld [vmem:[#allocation3 + $0x1448] sm:$0xff] }
 0x3de   :  { %6527 = vmatpush1.bf16.msra.mxu0 %v6526_v30  ;;  %6555 = vmatpush3.bf16.msra.mxu1 %v6552_v31  ;;  %v2806_v31 = vld [vmem:[#allocation3 + $0x1148] sm:$0xff]  ;;  %v2805_v30 = vld [vmem:[#allocation3 + $0x1140] sm:$0xff] }
 0x3df   :  { %6529 = vmatprep.subr.bf16.mxu0 %v6528_v37  ;;  %6557 = vmatprep.subr.bf16.mxu1 %v6556_v26  ;;  %v6584_v36 = vpack.c.bf16 %v2809_v27, %v2806_v31  ;;  %v2808_v37 = vld [vmem:[#allocation3 + $0x1158] sm:$0xff]  ;;  %v6638_v31 = vpack.c.bf16 %v3139_v22, %v3136_v21  ;;  %v3167_v11 = vld [vmem:[#allocation3 + $0x14a8] sm:$0xff]  ;;  %v3174_v21 = vld [vmem:[#allocation3 + $0x14e0] sm:$0xff] }
 0x3e0   :  { %v6586_v43 = vpack.c.bf16 %v2808_v37, %v2805_v30  ;;  %v2334_v30 = vld [vmem:[#allocation2 + $0x29] sm:$0xff]  ;;  %v3149_v37 = vld [vmem:[#allocation3 + $0x1418] sm:$0xff] }
 0x3e1   :  { %v3177_v22 = vld [vmem:[#allocation3 + $0x14f8] sm:$0xff] }
 0x3e2   :  { %6531 = vmatpush1.bf16.msra.mxu0 %v6530_v46  ;;  %6559 = vmatpush3.bf16.msra.mxu1 %v6556_v26  ;;  %v6612_v26 = vpack.c.bf16 %v2804_v34, %v2801_v33  ;;  %v2811_v46 = vld [vmem:[#allocation3 + $0x1170] sm:$0xff]  ;;  %v3142_v33 = vld [vmem:[#allocation3 + $0x13e0] sm:$0xff] }
 0x3e3   :  { %6533 = vmatprep.subr.bf16.mxu0 %v6532_v48  ;;  %6561 = vmatprep.subr.bf16.mxu1 %v6560_v49  ;;  %v2814_v48 = vld [vmem:[#allocation3 + $0x1188] sm:$0xff] }
 0x3e4   :  { %v6590_v55 = vpack.c.bf16 %v2814_v48, %v2811_v46  ;;  %v3150_v48 = vld [vmem:[#allocation3 + $0x1420] sm:$0xff] }
 0x3e6   :  { %6535 = vmatpush1.bf16.msra.mxu0 %v6534_v1  ;;  %6563 = vmatpush3.bf16.msra.mxu1 %v6560_v49  ;;  %v6616_v49 = vpack.c.bf16 %v2810_v42, %v2807_v41  ;;  %v2817_v1 = vld [vmem:[#allocation3 + $0x11a0] sm:$0xff]  ;;  %v2335_v41 = vld [vmem:[#allocation2 + $0x31] sm:$0xff] }
 0x3e7   :  { %6565 = vmatprep.subr.bf16.mxu1 %v6564_v2  ;;  %6569 = vmatprep.subr.bf16.mxu0 %v6568_v58  ;;  %v2824_v58 = vld [vmem:[#allocation3 + $0x11d8] sm:$0xff] }
 0x3e8   :  { %v6596_v62 = vpack.c.bf16 %v2827_v3, %v2824_v58  ;;  %v3161_v3 = vld [vmem:[#allocation3 + $0x1478] sm:$0xff] }
 0x3e9   :  { %2672 = vmatmul.mubr.f32.vlgmr.msra.gmra.mrb[24].mxu0 %v2324_v25  ;;  %v2327_v25 = vld [vmem:[#allocation2 + $0x2f] sm:$0xff] }
 0x3ea   :  { %6567 = vmatpush3.bf16.msra.mxu1 %v6564_v2  ;;  %6571 = vmatpush1.bf16.msra.mxu0 %v6570_v56  ;;  %v2820_v2 = vld [vmem:[#allocation3 + $0x11b8] sm:$0xff]  ;;  %v2826_v56 = vld [vmem:[#allocation3 + $0x11e8] sm:$0xff] }
 0x3eb   :  { %2677 = vmatprep.mubr.f32.mxu0 %v7518_v47  ;;  %6573 = vmatprep.subr.bf16.mxu0 %v6572_v5  ;;  %v6594_v8 = vpack.c.bf16 %v2820_v2, %v2817_v1  ;;  %v6624_v5 = vpack.c.bf16 %v2822_v6, %v2819_v61  ;;  %v6598_v40 = vpack.c.bf16 %v2826_v56, %v2823_v9  ;;  %v3156_v2 = vld [vmem:[#allocation3 + $0x1450] sm:$0xff]  ;;  %v3162_v56 = vld [vmem:[#allocation3 + $0x1480] sm:$0xff] }
 0x3ec   :  { %6601 = vmatprep.subr.bf16.mxu1 %v6600_v7  ;;  %v3164_v61 = vld [vmem:[#allocation3 + $0x1490] sm:$0xff] }
 0x3ed   :  { %2678 = vmatmul.mubr.f32.gmra.mrb[26].mxu0 %v2325_v4  ;;  %5547 = vmatmul.mubr.f32.vlgmr.msra.gmra.mrb[12].mxu1 %v2325_v4  ;;  %v3140_v4 = vld [vmem:[#allocation3 + $0x13d0] sm:$0xff]  ;;  %v6652_v6 = vpack.c.bf16 %v3164_v61, %v3161_v3 }
 0x3ee   :  { %5549 = vmatprep.mubr.f32.mxu1 %v2326_v20  ;;  %6575 = vmatpush1.bf16.msra.mxu0 %v6574_v13  ;;  %v3133_v13 = vld [vmem:[#allocation3 + $0x1398] sm:$0xff]  ;;  %v6636_v19 = vpack.c.bf16 %v3140_v4, %v3137_v15 }
 0x3ef   :  { %6603 = vmatpush3.bf16.msra.mxu1 %v6600_v7  ;;  %2683 = vmatprep.mubr.f32.mxu0 %v7518_v47  ;;  %v2825_v7 = vld [vmem:[#allocation3 + $0x11e0] sm:$0xff]  ;;  %v6634_v18 = vpack.c.bf16 %v3133_v13, %v3130_v54  ;;  %v3168_v13 = vld [vmem:[#allocation3 + $0x14b0] sm:$0xff]  ;;  %v3173_v4 = vld [vmem:[#allocation3 + $0x14d8] sm:$0xff] }
 0x3f0   :  { %6577 = vmatprep.subr.bf16.mxu0 %v6576_v16  ;;  %6605 = vmatprep.subr.bf16.mxu1 %v6604_v17  ;;  %v6628_v14 = vpack.c.bf16 %v2828_v12, %v2825_v7  ;;  %v3132_v16 = vld [vmem:[#allocation3 + $0x1390] sm:$0xff]  ;;  %v3170_v7 = vld [vmem:[#allocation3 + $0x14c0] sm:$0xff] }
 0x3f1   :  { %2684 = vmatmul.mubr.f32.gmra.mrb[28].mxu0 %v2326_v20  ;;  %5550 = vmatmul.mubr.f32.gmra.mrb[14].mxu1 %v2327_v25  ;;  %v6656_v12 = vpack.c.bf16 %v3170_v7, %v3167_v11  ;;  %v3088_v7 = vld [vmem:[#allocation3 + $0x1230] sm:$0xff] }
 0x3f2   :  { %6579 = vmatpush1.bf16.msra.mxu0 %v6578_v23  ;;  %5584 = vmatprep.mubr.f32.mxu1 %v7551_v32  ;;  %v3138_v23 = vld [vmem:[#allocation3 + $0x13c0] sm:$0xff] }
 0x3f3   :  { %6607 = vmatpush3.bf16.msra.mxu1 %v6604_v17  ;;  %2689 = vmatprep.mubr.f32.mxu0 %v7518_v47  ;;  %v3135_v17 = vld [vmem:[#allocation3 + $0x13a8] sm:$0xff]  ;;  %v6668_v27 = vpack.c.bf16 %v3141_v0, %v3138_v23  ;;  %v6692_v23 = vpack.c.bf16 %v3177_v22, %v3174_v21  ;;  %v3098_v21 = vld [vmem:[#allocation3 + $0x1280] sm:$0xff]  ;;  %v3096_v22 = vld [vmem:[#allocation3 + $0x1270] sm:$0xff] }
 0x3f4   :  { %6581 = vmatprep.subr.bf16.mxu0 %v6580_v28  ;;  %6609 = vmatprep.subr.bf16.mxu1 %v6608_v29  ;;  %v6664_v20 = vpack.c.bf16 %v3135_v17, %v3132_v16  ;;  %v3146_v28 = vld [vmem:[#allocation3 + $0x1400] sm:$0xff]  ;;  %v3176_v16 = vld [vmem:[#allocation3 + $0x14f0] sm:$0xff]  ;;  %v3083_v0 = vld [vmem:[#allocation3 + $0x1208] sm:$0xff] }
 0x3f5   :  { %2690 = vmatmul.mubr.f32.gmra.mrb[30].mxu0 %v2327_v25  ;;  %v3143_v25 = vld [vmem:[#allocation3 + $0x13e8] sm:$0xff]  ;;  %v6660_v17 = vpack.c.bf16 %v3176_v16, %v3173_v4 }
 0x3f6   :  { %6583 = vmatpush1.bf16.msra.mxu0 %v6582_v35  ;;  %2893 = vmatprep.mubr.f32.mxu0 %v7518_v47  ;;  %v6620_v47 = vpack.c.bf16 %v2816_v53, %v2813_v52  ;;  %v6640_v34 = vpack.c.bf16 %v3146_v28, %v3143_v25  ;;  %v3144_v35 = vld [vmem:[#allocation3 + $0x13f0] sm:$0xff]  ;;  %v3158_v52 = vld [vmem:[#allocation3 + $0x1460] sm:$0xff] }
 0x3f7   :  { %6611 = vmatpush3.bf16.msra.mxu1 %v6608_v29  ;;  %6585 = vmatprep.subr.bf16.mxu0 %v6584_v36  ;;  %v2333_v29 = vld [vmem:[#allocation2 + $0x11] sm:$0xff]  ;;  %v3147_v36 = vld [vmem:[#allocation3 + $0x1408] sm:$0xff]  ;;  %v6648_v53 = vpack.c.bf16 %v3158_v52, %v3155_v51  ;;  %v3086_v25 = vld [vmem:[#allocation3 + $0x1220] sm:$0xff] }
 0x3f8   :  { %6613 = vmatprep.subr.bf16.mxu1 %v6612_v26  ;;  %v6672_v39 = vpack.c.bf16 %v3147_v36, %v3144_v35  ;;  %v6696_v28 = vpack.c.bf16 %v3086_v25, %v3083_v0 }
 0x3fa   :  { %6587 = vmatpush1.bf16.msra.mxu0 %v6586_v43  ;;  %v3148_v43 = vld [vmem:[#allocation3 + $0x1410] sm:$0xff] }
 0x3fb   :  { %6615 = vmatpush3.bf16.msra.mxu1 %v6612_v26  ;;  %6589 = vmatprep.subr.bf16.mxu0 %v6588_v44  ;;  %v3152_v26 = vld [vmem:[#allocation3 + $0x1430] sm:$0xff]  ;;  %v3151_v44 = vld [vmem:[#allocation3 + $0x1428] sm:$0xff] }
 0x3fc   :  { %6617 = vmatprep.subr.bf16.mxu1 %v6616_v49  ;;  %v6644_v42 = vpack.c.bf16 %v3152_v26, %v3149_v37  ;;  %v6646_v46 = vpack.c.bf16 %v3151_v44, %v3148_v43 }
 0x3fe   :  { %6591 = vmatpush1.bf16.msra.mxu0 %v6590_v55  ;;  %v3154_v55 = vld [vmem:[#allocation3 + $0x1440] sm:$0xff] }
 0x3ff   :  { %6619 = vmatpush3.bf16.msra.mxu1 %v6616_v49  ;;  %6593 = vmatprep.subr.bf16.mxu0 %v6592_v57  ;;  %v3153_v49 = vld [vmem:[#allocation3 + $0x1438] sm:$0xff] }
 0x400   :  { %6621 = vmatprep.subr.bf16.mxu1 %v6620_v47  ;;  %v6676_v50 = vpack.c.bf16 %v3153_v49, %v3150_v48  ;;  %v3157_v57 = vld [vmem:[#allocation3 + $0x1458] sm:$0xff] }
 0x401   :  { %v6650_v1 = vpack.c.bf16 %v3157_v57, %v3154_v55  ;;  %v3085_v55 = vld [vmem:[#allocation3 + $0x1218] sm:$0xff] }
 0x402   :  { %6595 = vmatpush1.bf16.msra.mxu0 %v6594_v8  ;;  %v3160_v8 = vld [vmem:[#allocation3 + $0x1470] sm:$0xff] }
 0x403   :  { %6623 = vmatpush3.bf16.msra.mxu1 %v6620_v47  ;;  %6597 = vmatprep.subr.bf16.mxu0 %v6596_v62  ;;  %v3159_v47 = vld [vmem:[#allocation3 + $0x1468] sm:$0xff] }
 0x404   :  { %6625 = vmatprep.subr.bf16.mxu1 %v6624_v5  ;;  %v6680_v58 = vpack.c.bf16 %v3159_v47, %v3156_v2  ;;  %v3163_v62 = vld [vmem:[#allocation3 + $0x1488] sm:$0xff]  ;;  %v3089_v2 = vld [vmem:[#allocation3 + $0x1238] sm:$0xff] }
 0x405   :  { %v6654_v9 = vpack.c.bf16 %v3163_v62, %v3160_v8  ;;  %v3090_v8 = vld [vmem:[#allocation3 + $0x1240] sm:$0xff]  ;;  %v3093_v62 = vld [vmem:[#allocation3 + $0x1258] sm:$0xff] }
 0x406   :  { %6599 = vmatpush1.bf16.msra.mxu0 %v6598_v40  ;;  %v3166_v40 = vld [vmem:[#allocation3 + $0x14a0] sm:$0xff]  ;;  %v6732_v16 = vpack.c.bf16 %v3093_v62, %v3090_v8  ;;  %v3117_v8 = vld [vmem:[#allocation3 + $0x1318] sm:$0xff] }
 0x407   :  { %6627 = vmatpush3.bf16.msra.mxu1 %v6624_v5  ;;  %6633 = vmatprep.subr.bf16.mxu0 %v6632_v63  ;;  %v3165_v5 = vld [vmem:[#allocation3 + $0x1498] sm:$0xff] }
 0x408   :  { %6629 = vmatprep.subr.bf16.mxu1 %v6628_v14  ;;  %v6684_v10 = vpack.c.bf16 %v3165_v5, %v3162_v56  ;;  %v3169_v63 = vld [vmem:[#allocation3 + $0x14b8] sm:$0xff] }
 0x409   :  { %2894 = vmatmul.mubr.f32.vlgmr.msra.gmra.mrb[24].mxu0 %v7551_v32  ;;  %v3145_v32 = vld [vmem:[#allocation3 + $0x13f8] sm:$0xff]  ;;  %v6658_v54 = vpack.c.bf16 %v3169_v63, %v3166_v40 }
 0x40a   :  { %2899 = vmatprep.mubr.f32.mxu0 %v7557_v24  ;;  %6635 = vmatpush1.bf16.msra.mxu0 %v6634_v18  ;;  %v6642_v38 = vpack.c.bf16 %v3145_v32, %v3142_v33  ;;  %v3172_v18 = vld [vmem:[#allocation3 + $0x14d0] sm:$0xff]  ;;  %v3016_v33 = vld [vmem:[#allocation6 + $0x9] sm:$0x7] }
 0x40b   :  { %6631 = vmatpush3.bf16.msra.mxu1 %v6628_v14  ;;  %6637 = vmatprep.subr.bf16.mxu0 %v6636_v19  ;;  %v3171_v14 = vld [vmem:[#allocation3 + $0x14c8] sm:$0xff]  ;;  %v3025_v32 = vrot.slane %v3016_v33, %v7471_v59  ;;  %v3029_v26 = vrot.slane %v3016_v33, %v7473_v60 }
 0x40c   :  { %6665 = vmatprep.subr.bf16.mxu1 %v6664_v20  ;;  %v6688_v15 = vpack.c.bf16 %v3171_v14, %v3168_v13  ;;  %v3175_v19 = vld [vmem:[#allocation3 + $0x14e8] sm:$0xff] }
 0x40d   :  { %2900 = vmatmul.mubr.f32.gmra.mrb[26].mxu0 %v2333_v29 }
 0x40e   :  { %5585 = vmatmul.mubr.f32.vlgmr.msra.gmra.mrb[12].mxu1 %v2333_v29  ;;  %2905 = vmatprep.mubr.f32.mxu0 %v7557_v24  ;;  %v3084_v29 = vld [vmem:[#allocation3 + $0x1210] sm:$0xff] }
 0x40f   :  { %5587 = vmatprep.mubr.f32.mxu1 %v2334_v30  ;;  %6667 = vmatpush3.bf16.msra.mxu1 %v6664_v20  ;;  %v6662_v20 = vpack.c.bf16 %v3175_v19, %v3172_v18 }
 0x410   :  { %6639 = vmatpush1.bf16.msra.mxu0 %v6638_v31  ;;  %6669 = vmatprep.subr.bf16.mxu1 %v6668_v27  ;;  %v3087_v31 = vld [vmem:[#allocation3 + $0x1228] sm:$0xff] }
 0x411   :  { %2906 = vmatmul.mubr.f32.gmra.mrb[28].mxu0 %v2334_v30  ;;  %6641 = vmatprep.subr.bf16.mxu0 %v6640_v34  ;;  %v3021_v34 = vrot.slane %v3016_v33, %v7469_v45  ;;  %v3094_v33 = vld [vmem:[#allocation3 + $0x1260] sm:$0xff] }
 0x412   :  { %5588 = vmatmul.mubr.f32.gmra.mrb[14].mxu1 %v2335_v41  ;;  %2911 = vmatprep.mubr.f32.mxu0 %v7557_v24 }
 0x413   :  { %6671 = vmatpush3.bf16.msra.mxu1 %v6668_v27  ;;  %v7563_v27 = vpack.c.bf16 %v3087_v31, %v3084_v29 }
 0x414   :  { %6643 = vmatpush1.bf16.msra.mxu0 %v6642_v38  ;;  %6673 = vmatprep.subr.bf16.mxu1 %v6672_v39 }
 0x415   :  { %2912 = vmatmul.mubr.f32.gmra.mrb[30].mxu0 %v2335_v41  ;;  %6645 = vmatprep.subr.bf16.mxu0 %v6644_v42 }
 0x416   :  { %3242 = vmatprep.mubr.f32.mxu0 %v7557_v24 }
 0x417   :  { %6675 = vmatpush3.bf16.msra.mxu1 %v6672_v39 }
 0x418   :  { %6647 = vmatpush1.bf16.msra.mxu0 %v6646_v46  ;;  %6677 = vmatprep.subr.bf16.mxu1 %v6676_v50 }
 0x419   :  { %6649 = vmatprep.subr.bf16.mxu0 %v6648_v53  ;;  %v3082_v53 = vld [vmem:[#allocation3 + $0x1200] sm:$0xff] }
 0x41a   :  { %v6698_v11 = vpack.c.bf16 %v3085_v55, %v3082_v53  ;;  %v3111_v53 = vld [vmem:[#allocation3 + $0x12e8] sm:$0xff] }
 0x41b   :  { %6679 = vmatpush3.bf16.msra.mxu1 %v6676_v50 }
 0x41c   :  { %6651 = vmatpush1.bf16.msra.mxu0 %v6650_v1  ;;  %6681 = vmatprep.subr.bf16.mxu1 %v6680_v58 }
 0x41d   :  { %6653 = vmatprep.subr.bf16.mxu0 %v6652_v6  ;;  %v3092_v6 = vld [vmem:[#allocation3 + $0x1250] sm:$0xff] }
 0x41e   :  { %v6700_v4 = vpack.c.bf16 %v3092_v6, %v3089_v2  ;;  %v3106_v2 = vld [vmem:[#allocation3 + $0x12c0] sm:$0xff] }
 0x41f   :  { %6683 = vmatpush3.bf16.msra.mxu1 %v6680_v58  ;;  %v3114_v6 = vld [vmem:[#allocation3 + $0x1300] sm:$0xff] }
 0x420   :  { %6655 = vmatpush1.bf16.msra.mxu0 %v6654_v9  ;;  %6685 = vmatprep.subr.bf16.mxu1 %v6684_v10 }
 0x421   :  { %6657 = vmatprep.subr.bf16.mxu0 %v6656_v12  ;;  %v3091_v12 = vld [vmem:[#allocation3 + $0x1248] sm:$0xff] }
 0x423   :  { %6687 = vmatpush3.bf16.msra.mxu1 %v6684_v10 }
 0x424   :  { %6659 = vmatpush1.bf16.msra.mxu0 %v6658_v54  ;;  %6689 = vmatprep.subr.bf16.mxu1 %v6688_v15 }
 0x425   :  { %6661 = vmatprep.subr.bf16.mxu0 %v6660_v17  ;;  %v3095_v17 = vld [vmem:[#allocation3 + $0x1268] sm:$0xff] }
 0x427   :  { %6691 = vmatpush3.bf16.msra.mxu1 %v6688_v15 }
 0x428   :  { %6663 = vmatpush1.bf16.msra.mxu0 %v6662_v20  ;;  %6693 = vmatprep.subr.bf16.mxu1 %v6692_v23  ;;  %v6702_v20 = vpack.c.bf16 %v3091_v12, %v3088_v7  ;;  %v3122_v7 = vld [vmem:[#allocation3 + $0x1340] sm:$0xff]  ;;  %v3120_v12 = vld [vmem:[#allocation3 + $0x1330] sm:$0xff] }
 0x429   :  { %6697 = vmatprep.subr.bf16.mxu0 %v6696_v28 }
 0x42b   :  { %6695 = vmatpush3.bf16.msra.mxu1 %v6692_v23  ;;  %v3099_v23 = vld [vmem:[#allocation3 + $0x1288] sm:$0xff] }
 0x42c   :  { %6729 = vmatprep.subr.bf16.mxu1 %v7563_v27 }
 0x4dc   :  { %v2895_v35 = vpop.f32.mrb[24].mxu0 }
 0x4dd   :  { %v3033_v36 = vadd.f32 %v3021_v34, %v2895_v35  ;;  %v2897_v30 = vpop.f32.mrb[25].mxu0 }
 0x4de   :  { %v3034_v37 = vadd.f32 %v3025_v32, %v2897_v30  ;;  %v6704_v30 = vpack.c.bf16 %v3098_v21, %v3095_v17  ;;  %v3126_v17 = vld [vmem:[#allocation3 + $0x1360] sm:$0xff]  ;;  %v3124_v21 = vld [vmem:[#allocation3 + $0x1350] sm:$0xff] }
 0x4df   :  { %v3045_v38 = vmax.f32 %v3033_v36, 0.0 }
 0x4e0   :  { %v3046_v39 = vmax.f32 %v3034_v37, 0.0  ;;  %v2901_v41 = vpop.f32.mrb[26].mxu0  ;;  %v6736_v37 = vpack.c.bf16 %v3099_v23, %v3096_v22  ;;  %v3127_v22 = vld [vmem:[#allocation3 + $0x1368] sm:$0xff] }
 0x4e1   :  { %v3036_v42 = vadd.f32 %v3021_v34, %v2901_v41  ;;  %v5586_v43 = vpop.f32.mrb[12].mxu1  ;;  %v2903_v44 = vpop.f32.mrb[27].mxu0 }
 0x4e2   :  { %v3057_v46 = vadd.f32 %v3046_v39, %v3045_v38  ;;  %v3038_v48 = vadd.f32 %v5586_v43, %v3029_v26  ;;  %v3037_v49 = vadd.f32 %v3025_v32, %v2903_v44  ;;  %v2984_v50 = vpop.f32.mrb[13].mxu1  ;;  %v3104_v38 = vld [vmem:[#allocation3 + $0x12b0] sm:$0xff]  ;;  %v3103_v44 = vld [vmem:[#allocation3 + $0x12a8] sm:$0xff] }
 0x4e3   :  { %v3048_v51 = vmax.f32 %v3036_v42, 0.0  ;;  %v3035_v52 = vadd.f32 %v3029_v26, %v2984_v50  ;;  %v3105_v42 = vld [vmem:[#allocation3 + $0x12b8] sm:$0xff]  ;;  %v3100_v43 = vld [vmem:[#allocation3 + $0x1290] sm:$0xff]  ;;  %v3110_v50 = vld [vmem:[#allocation3 + $0x12e0] sm:$0xff] }
 0x4e4   :  { %v3049_v57 = vmax.f32 %v3037_v49, 0.0  ;;  %v2907_v1 = vpop.f32.mrb[28].mxu0  ;;  %v3050_v9 = vmax.f32 %v3038_v48, 0.0  ;;  %v3107_v49 = vld [vmem:[#allocation3 + $0x12c8] sm:$0xff]  ;;  %v6710_v55 = vpack.c.bf16 %v3103_v44, %v3100_v43 }
 0x4e5   :  { %v3047_v47 = vmax.f32 %v3035_v52, 0.0  ;;  %v3039_v58 = vadd.f32 %v3021_v34, %v2907_v1  ;;  %v5589_v3 = vpop.f32.mrb[14].mxu1  ;;  %v2909_v61 = vpop.f32.mrb[29].mxu0  ;;  %v3108_v52 = vld [vmem:[#allocation3 + $0x12d0] sm:$0xff]  ;;  %v6712_v1 = vpack.c.bf16 %v3110_v50, %v3107_v49  ;;  %v3539_v44 = vld [vmem:[#allocation3 + $0x1568] sm:$0xff] }
 0x4e6   :  { %v3058_v56 = vadd.f32 %v3049_v57, %v3048_v51  ;;  %v3040_v5 = vadd.f32 %v3025_v32, %v2909_v61  ;;  %v2994_v10 = vpop.f32.mrb[15].mxu1  ;;  %v3044_v0 = vadd.f32 %v5589_v3, %v3029_v26  ;;  %v3113_v3 = vld [vmem:[#allocation3 + $0x12f8] sm:$0xff]  ;;  %v3116_v61 = vld [vmem:[#allocation3 + $0x1310] sm:$0xff] }
 0x4e7   :  { %v3061_v40 = vadd.f32 %v3057_v46, %v3047_v47  ;;  %v3051_v63 = vmax.f32 %v3039_v58, 0.0  ;;  %v3041_v54 = vadd.f32 %v3029_v26, %v2994_v10  ;;  %v3101_v26 = vld [vmem:[#allocation3 + $0x1298] sm:$0xff]  ;;  %v6744_v58 = vpack.c.bf16 %v3111_v53, %v3108_v52  ;;  %v3540_v50 = vld [vmem:[#allocation3 + $0x1570] sm:$0xff]  ;;  %v3538_v52 = vld [vmem:[#allocation3 + $0x1560] sm:$0xff] }
 0x4e8   :  { %v3062_v13 = vadd.f32 %v3058_v56, %v3050_v9  ;;  %v3052_v14 = vmax.f32 %v3040_v5, 0.0  ;;  %v2913_v15 = vpop.f32.mrb[30].mxu0  ;;  %v3056_v39 = vmax.f32 %v3044_v0, 0.0  ;;  %v6708_v48 = vpack.c.bf16 %v3104_v38, %v3101_v26  ;;  %v3109_v47 = vld [vmem:[#allocation3 + $0x12d8] sm:$0xff]  ;;  %v3112_v56 = vld [vmem:[#allocation3 + $0x12f0] sm:$0xff]  ;;  %v3115_v5 = vld [vmem:[#allocation3 + $0x1308] sm:$0xff] }
 0x4e9   :  { %3065 = vst [vmem:[#allocation2 + $0x8] sm:$0xff] %v3061_v40  ;;  %v3042_v18 = vadd.f32 %v3021_v34, %v2913_v15  ;;  %v2915_v19 = vpop.f32.mrb[31].mxu0  ;;  %3243 = vmatmul.mubr.f32.vlgmr.msra.gmra.mrb[32].mxu0 %v3061_v40  ;;  %5622 = vmatprep.mubr.f32.mxu1 %v3061_v40  ;;  %v3053_v28 = vmax.f32 %v3041_v54, 0.0  ;;  %v3097_v34 = vld [vmem:[#allocation3 + $0x1278] sm:$0xff]  ;;  %v6714_v62 = vpack.c.bf16 %v3109_v47, %v3106_v2  ;;  %v3123_v40 = vld [vmem:[#allocation3 + $0x1348] sm:$0xff]  ;;  %v3534_v38 = vld [vmem:[#allocation3 + $0x1540] sm:$0xff] }
 0x4ea   :  { %3066 = vst [vmem:[#allocation2 + $0x10] sm:$0xff] %v3062_v13  ;;  %v3059_v25 = vadd.f32 %v3052_v14, %v3051_v63  ;;  %v3043_v29 = vadd.f32 %v3025_v32, %v2915_v19  ;;  %6699 = vmatpush1.bf16.msra.mxu0 %v6698_v11  ;;  %5623 = vmatmul.mubr.f32.vlgmr.msra.gmra.mrb[16].mxu1 %v3062_v13  ;;  %v3119_v11 = vld [vmem:[#allocation3 + $0x1328] sm:$0xff]  ;;  %v3121_v14 = vld [vmem:[#allocation3 + $0x1338] sm:$0xff] }
 0x4eb   :  { %v3054_v31 = vmax.f32 %v3042_v18, 0.0  ;;  %6731 = vmatpush3.bf16.msra.mxu1 %v7563_v27  ;;  %3248 = vmatprep.mubr.f32.mxu0 %v7557_v24  ;;  %v6706_v41 = vpack.c.bf16 %v3097_v34, %v3094_v33  ;;  %v3102_v27 = vld [vmem:[#allocation3 + $0x12a0] sm:$0xff]  ;;  %v6716_v9 = vpack.c.bf16 %v3116_v61, %v3113_v3  ;;  %v6748_v10 = vpack.c.bf16 %v3117_v8, %v3114_v6  ;;  %v3129_v18 = vld [vmem:[#allocation3 + $0x1378] sm:$0xff]  ;;  %v3527_v0 = vld [vmem:[#allocation3 + $0x1508] sm:$0xff] }
 0x4ec   :  { %v3063_v35 = vadd.f32 %v3059_v25, %v3053_v28  ;;  %v3055_v36 = vmax.f32 %v3043_v29, 0.0  ;;  %6701 = vmatprep.subr.bf16.mxu0 %v6700_v4  ;;  %6733 = vmatprep.subr.bf16.mxu1 %v6732_v16  ;;  %v6740_v51 = vpack.c.bf16 %v3105_v42, %v3102_v27  ;;  %v6718_v63 = vpack.c.bf16 %v3115_v5, %v3112_v56  ;;  %v3125_v4 = vld [vmem:[#allocation3 + $0x1358] sm:$0xff]  ;;  %v3530_v25 = vld [vmem:[#allocation3 + $0x1520] sm:$0xff]  ;;  %v3528_v28 = vld [vmem:[#allocation3 + $0x1510] sm:$0xff] }
 0x4ed   :  { %3249 = vmatmul.mubr.f32.gmra.mrb[34].mxu0 %v3062_v13  ;;  %v6720_v54 = vpack.c.bf16 %v3122_v7, %v3119_v11  ;;  %v3118_v13 = vld [vmem:[#allocation3 + $0x1320] sm:$0xff]  ;;  %v6752_v15 = vpack.c.bf16 %v3123_v40, %v3120_v12  ;;  %v6756_v23 = vpack.c.bf16 %v3129_v18, %v3126_v17  ;;  %v3531_v29 = vld [vmem:[#allocation3 + $0x1528] sm:$0xff]  ;;  %v6760_v33 = vpack.c.bf16 %v3530_v25, %v3527_v0  ;;  %v3541_v53 = vld [vmem:[#allocation3 + $0x1578] sm:$0xff] }
 0x4ee   :  { %3067 = vst [vmem:[#allocation2 + $0x28] sm:$0xff] %v3063_v35  ;;  %v3060_v32 = vadd.f32 %v3055_v36, %v3054_v31  ;;  %6703 = vmatpush1.bf16.msra.mxu0 %v6702_v20  ;;  %5625 = vmatprep.mubr.f32.mxu1 %v3063_v35  ;;  %v6722_v19 = vpack.c.bf16 %v3121_v14, %v3118_v13  ;;  %v3526_v34 = vld [vmem:[#allocation3 + $0x1500] sm:$0xff]  ;;  %v3549_v6 = vld [vmem:[#allocation3 + $0x15b8] sm:$0xff]  ;;  %v3551_v56 = vld [vmem:[#allocation3 + $0x15c8] sm:$0xff] }
 0x4ef   :  { %6735 = vmatpush3.bf16.msra.mxu1 %v6732_v16  ;;  %3254 = vmatprep.mubr.f32.mxu0 %v7557_v24  ;;  %v3128_v16 = vld [vmem:[#allocation3 + $0x1370] sm:$0xff]  ;;  %v6726_v31 = vpack.c.bf16 %v3127_v22, %v3124_v21  ;;  %v6792_v36 = vpack.c.bf16 %v3531_v29, %v3528_v28  ;;  %v6770_v3 = vpack.c.bf16 %v3541_v53, %v3538_v52  ;;  %v3546_v61 = vld [vmem:[#allocation3 + $0x15a0] sm:$0xff]  ;;  %v3555_v12 = vld [vmem:[#allocation3 + $0x15e8] sm:$0xff] }
 0x4f0   :  { %v3064_v46 = vadd.f32 %v3060_v32, %v3056_v39  ;;  %6705 = vmatprep.subr.bf16.mxu0 %v6704_v30  ;;  %6737 = vmatprep.subr.bf16.mxu1 %v6736_v37  ;;  %v7573_v57 = vld [vmem:[#allocation2 + $0x7] sm:$0xff]  ;;  %v6724_v20 = vpack.c.bf16 %v3128_v16, %v3125_v4  ;;  %v3533_v30 = vld [vmem:[#allocation3 + $0x1538] sm:$0xff]  ;;  %v3532_v32 = vld [vmem:[#allocation3 + $0x1530] sm:$0xff] }
 0x4f1   :  { %3255 = vmatmul.mubr.f32.gmra.mrb[36].mxu0 %v3063_v35  ;;  %v3529_v35 = vld [vmem:[#allocation3 + $0x1518] sm:$0xff]  ;;  %v3070_v42 = vld [vmem:[#allocation2 + $0xf] sm:$0xff]  ;;  %v3554_v5 = vld [vmem:[#allocation3 + $0x15e0] sm:$0xff] }
 0x4f2   :  { %3068 = vst [vmem:[#allocation2 + $0x30] sm:$0xff] %v3064_v46  ;;  %6707 = vmatpush1.bf16.msra.mxu0 %v6706_v41  ;;  %5626 = vmatmul.mubr.f32.gmra.mrb[18].mxu1 %v3064_v46  ;;  %v6762_v26 = vpack.c.bf16 %v3529_v35, %v3526_v34  ;;  %v3537_v39 = vld [vmem:[#allocation3 + $0x1558] sm:$0xff]  ;;  %v3535_v41 = vld [vmem:[#allocation3 + $0x1548] sm:$0xff]  ;;  %v3552_v7 = vld [vmem:[#allocation3 + $0x15d0] sm:$0xff]  ;;  %v6776_v40 = vpack.c.bf16 %v3554_v5, %v3551_v56 }
 0x4f3   :  { %6739 = vmatpush3.bf16.msra.mxu1 %v6736_v37  ;;  %3260 = vmatprep.mubr.f32.mxu0 %v7557_v24  ;;  %v3536_v37 = vld [vmem:[#allocation3 + $0x1550] sm:$0xff]  ;;  %v6796_v43 = vpack.c.bf16 %v3537_v39, %v3534_v38  ;;  %v6766_v49 = vpack.c.bf16 %v3535_v41, %v3532_v32  ;;  %v3557_v13 = vld [vmem:[#allocation3 + $0x15f8] sm:$0xff]  ;;  %v3558_v16 = vld [vmem:[#allocation3 + $0x1600] sm:$0xff] }
 0x4f4   :  { %6709 = vmatprep.subr.bf16.mxu0 %v6708_v48  ;;  %5660 = vmatprep.mubr.f32.mxu1 %v7573_v57  ;;  %v6764_v27 = vpack.c.bf16 %v3536_v37, %v3533_v30  ;;  %v3560_v14 = vld [vmem:[#allocation3 + $0x1610] sm:$0xff]  ;;  %v3561_v17 = vld [vmem:[#allocation3 + $0x1618] sm:$0xff]  ;;  %v3563_v21 = vld [vmem:[#allocation3 + $0x1628] sm:$0xff] }
 0x4f5   :  { %3261 = vmatmul.mubr.f32.gmra.mrb[38].mxu0 %v3064_v46  ;;  %6741 = vmatprep.subr.bf16.mxu1 %v6740_v51  ;;  %v3542_v46 = vld [vmem:[#allocation3 + $0x1580] sm:$0xff]  ;;  %v6780_v18 = vpack.c.bf16 %v3560_v14, %v3557_v13  ;;  %v3564_v25 = vld [vmem:[#allocation3 + $0x1630] sm:$0xff]  ;;  %v3567_v28 = vld [vmem:[#allocation3 + $0x1648] sm:$0xff] }
 0x4f6   :  { %6711 = vmatpush1.bf16.msra.mxu0 %v6710_v55  ;;  %3416 = vmatprep.mubr.f32.mxu0 %v7557_v24  ;;  %v3071_v48 = vld [vmem:[#allocation2 + $0x27] sm:$0xff]  ;;  %v6768_v55 = vpack.c.bf16 %v3542_v46, %v3539_v44  ;;  %v3569_v34 = vld [vmem:[#allocation3 + $0x1658] sm:$0xff]  ;;  %v3572_v35 = vld [vmem:[#allocation3 + $0x1670] sm:$0xff] }
 0x4f7   :  { %6743 = vmatpush3.bf16.msra.mxu1 %v6740_v51  ;;  %6713 = vmatprep.subr.bf16.mxu0 %v6712_v1  ;;  %v3543_v51 = vld [vmem:[#allocation3 + $0x1588] sm:$0xff]  ;;  %v3545_v1 = vld [vmem:[#allocation3 + $0x1598] sm:$0xff]  ;;  %v3566_v22 = vld [vmem:[#allocation3 + $0x1640] sm:$0xff]  ;;  %v6788_v38 = vpack.c.bf16 %v3572_v35, %v3569_v34 }
 0x4f8   :  { %6745 = vmatprep.subr.bf16.mxu1 %v6744_v58  ;;  %v6800_v47 = vpack.c.bf16 %v3543_v51, %v3540_v50  ;;  %v6784_v29 = vpack.c.bf16 %v3566_v22, %v3563_v21  ;;  %v3570_v37 = vld [vmem:[#allocation3 + $0x1660] sm:$0xff]  ;;  %v3568_v39 = vld [vmem:[#allocation3 + $0x1650] sm:$0xff]  ;;  %v3571_v32 = vld [vmem:[#allocation3 + $0x1668] sm:$0xff] }
 0x4f9   :  { %v3072_v2 = vld [vmem:[#allocation2 + $0x2f] sm:$0xff]  ;;  %v3878_v50 = vld [vmem:[#allocation3 + $0x1818] sm:$0xff]  ;;  %v3899_v22 = vld [vmem:[#allocation3 + $0x18c0] sm:$0xff] }
 0x4fa   :  { %6715 = vmatpush1.bf16.msra.mxu0 %v6714_v62  ;;  %v3544_v62 = vld [vmem:[#allocation3 + $0x1590] sm:$0xff]  ;;  %v3876_v41 = vld [vmem:[#allocation3 + $0x1808] sm:$0xff]  ;;  %v3882_v51 = vld [vmem:[#allocation3 + $0x1838] sm:$0xff] }
 0x4fb   :  { %6747 = vmatpush3.bf16.msra.mxu1 %v6744_v58  ;;  %6717 = vmatprep.subr.bf16.mxu0 %v6716_v9  ;;  %v7579_v58 = vld [vmem:[#allocation2 + $0x9] sm:$0xff]  ;;  %v3898_v21 = vld [vmem:[#allocation3 + $0x18b8] sm:$0xff] }
 0x4fc   :  { %6749 = vmatprep.subr.bf16.mxu1 %v6748_v10  ;;  %v3547_v9 = vld [vmem:[#allocation3 + $0x15a8] sm:$0xff]  ;;  %v3877_v44 = vld [vmem:[#allocation3 + $0x1810] sm:$0xff] }
 0x4fd   :  { %v6774_v11 = vpack.c.bf16 %v3547_v9, %v3544_v62  ;;  %v3880_v46 = vld [vmem:[#allocation3 + $0x1828] sm:$0xff]  ;;  %v3885_v52 = vld [vmem:[#allocation3 + $0x1850] sm:$0xff] }
 0x4fe   :  { %6719 = vmatpush1.bf16.msra.mxu0 %v6718_v63  ;;  %v3550_v63 = vld [vmem:[#allocation3 + $0x15c0] sm:$0xff]  ;;  %v6856_v53 = vpack.c.bf16 %v3880_v46, %v3877_v44  ;;  %v3078_v62 = vld [vmem:[#allocation2 + $0x11] sm:$0xff]  ;;  %v3892_v5 = vld [vmem:[#allocation3 + $0x1888] sm:$0xff] }
 0x4ff   :  { %6751 = vmatpush3.bf16.msra.mxu1 %v6748_v10  ;;  %6721 = vmatprep.subr.bf16.mxu0 %v6720_v54  ;;  %v6804_v10 = vpack.c.bf16 %v3549_v6, %v3546_v61  ;;  %v3553_v54 = vld [vmem:[#allocation3 + $0x15d8] sm:$0xff]  ;;  %v3888_v61 = vld [vmem:[#allocation3 + $0x1868] sm:$0xff]  ;;  %v3891_v6 = vld [vmem:[#allocation3 + $0x1880] sm:$0xff] }
 0x500   :  { %6753 = vmatprep.subr.bf16.mxu1 %v6752_v15  ;;  %v6778_v4 = vpack.c.bf16 %v3553_v54, %v3550_v63  ;;  %v3889_v56 = vld [vmem:[#allocation3 + $0x1870] sm:$0xff]  ;;  %v3904_v34 = vld [vmem:[#allocation3 + $0x18e8] sm:$0xff]  ;;  %v3918_v44 = vld [vmem:[#allocation3 + $0x1958] sm:$0xff] }
 0x501   :  { %v3897_v63 = vld [vmem:[#allocation3 + $0x18b0] sm:$0xff] }
 0x502   :  { %6723 = vmatpush1.bf16.msra.mxu0 %v6722_v19  ;;  %v3556_v19 = vld [vmem:[#allocation3 + $0x15f0] sm:$0xff] }
 0x503   :  { %6755 = vmatpush3.bf16.msra.mxu1 %v6752_v15  ;;  %6725 = vmatprep.subr.bf16.mxu0 %v6724_v20  ;;  %v6808_v15 = vpack.c.bf16 %v3555_v12, %v3552_v7  ;;  %v3559_v20 = vld [vmem:[#allocation3 + $0x1608] sm:$0xff]  ;;  %v3887_v7 = vld [vmem:[#allocation3 + $0x1860] sm:$0xff]  ;;  %v3890_v12 = vld [vmem:[#allocation3 + $0x1878] sm:$0xff] }
 0x504   :  { %6757 = vmatprep.subr.bf16.mxu1 %v6756_v23  ;;  %v6782_v0 = vpack.c.bf16 %v3559_v20, %v3556_v19  ;;  %v3080_v54 = vld [vmem:[#allocation2 + $0x31] sm:$0xff]  ;;  %v6834_v13 = vpack.c.bf16 %v3890_v12, %v3887_v7  ;;  %v3895_v19 = vld [vmem:[#allocation3 + $0x18a0] sm:$0xff] }
 0x505   :  { %v3905_v35 = vld [vmem:[#allocation3 + $0x18f0] sm:$0xff] }
 0x506   :  { %6727 = vmatpush1.bf16.msra.mxu0 %v6726_v31  ;;  %v3562_v31 = vld [vmem:[#allocation3 + $0x1620] sm:$0xff]  ;;  %v3921_v46 = vld [vmem:[#allocation3 + $0x1970] sm:$0xff] }
 0x507   :  { %6759 = vmatpush3.bf16.msra.mxu1 %v6756_v23  ;;  %6761 = vmatprep.subr.bf16.mxu0 %v6760_v33  ;;  %v6812_v23 = vpack.c.bf16 %v3561_v17, %v3558_v16  ;;  %v3565_v33 = vld [vmem:[#allocation3 + $0x1638] sm:$0xff]  ;;  %v3900_v17 = vld [vmem:[#allocation3 + $0x18c8] sm:$0xff] }
 0x508   :  { %6793 = vmatprep.subr.bf16.mxu1 %v6792_v36  ;;  %v6786_v30 = vpack.c.bf16 %v3565_v33, %v3562_v31  ;;  %v3901_v31 = vld [vmem:[#allocation3 + $0x18d0] sm:$0xff] }
 0x509   :  { %3417 = vmatmul.mubr.f32.vlgmr.msra.gmra.mrb[32].mxu0 %v7573_v57  ;;  %v3548_v57 = vld [vmem:[#allocation3 + $0x15b0] sm:$0xff] }
 0x50a   :  { %6763 = vmatpush1.bf16.msra.mxu0 %v6762_v26  ;;  %5661 = vmatmul.mubr.f32.vlgmr.msra.gmra.mrb[16].mxu1 %v3070_v42  ;;  %v6772_v8 = vpack.c.bf16 %v3548_v57, %v3545_v1  ;;  %v3573_v26 = vld [vmem:[#allocation3 + $0x1678] sm:$0xff]  ;;  %v3883_v1 = vld [vmem:[#allocation3 + $0x1840] sm:$0xff] }
 0x50b   :  { %3422 = vmatprep.mubr.f32.mxu0 %v7557_v24  ;;  %5663 = vmatprep.mubr.f32.mxu1 %v3071_v48  ;;  %v3886_v57 = vld [vmem:[#allocation3 + $0x1858] sm:$0xff] }
 0x50c   :  { %6795 = vmatpush3.bf16.msra.mxu1 %v6792_v36  ;;  %6765 = vmatprep.subr.bf16.mxu0 %v6764_v27  ;;  %v6816_v36 = vpack.c.bf16 %v3567_v28, %v3564_v25  ;;  %v3879_v27 = vld [vmem:[#allocation3 + $0x1820] sm:$0xff]  ;;  %v3906_v28 = vld [vmem:[#allocation3 + $0x18f8] sm:$0xff] }
 0x50d   :  { %3423 = vmatmul.mubr.f32.gmra.mrb[34].mxu0 %v3070_v42  ;;  %6797 = vmatprep.subr.bf16.mxu1 %v6796_v43  ;;  %v6820_v42 = vpack.c.bf16 %v3573_v26, %v3570_v37  ;;  %v3912_v37 = vld [vmem:[#allocation3 + $0x1928] sm:$0xff]  ;;  %v3915_v26 = vld [vmem:[#allocation3 + $0x1940] sm:$0xff] }
 0x50e   :  { %6767 = vmatpush1.bf16.msra.mxu0 %v6766_v49  ;;  %5664 = vmatmul.mubr.f32.gmra.mrb[18].mxu1 %v3072_v2  ;;  %v3875_v49 = vld [vmem:[#allocation3 + $0x1800] sm:$0xff] }
 0x50f   :  { %3428 = vmatprep.mubr.f32.mxu0 %v7557_v24  ;;  %5698 = vmatprep.mubr.f32.mxu1 %v7579_v58 }
 0x510   :  { %6799 = vmatpush3.bf16.msra.mxu1 %v6796_v43  ;;  %6769 = vmatprep.subr.bf16.mxu0 %v6768_v55  ;;  %v6790_v43 = vpack.c.bf16 %v3571_v32, %v3568_v39  ;;  %v6826_v55 = vpack.c.bf16 %v3878_v50, %v3875_v49  ;;  %v3907_v39 = vld [vmem:[#allocation3 + $0x1900] sm:$0xff]  ;;  %v3910_v32 = vld [vmem:[#allocation3 + $0x1918] sm:$0xff]  ;;  %v6852_v49 = vpack.c.bf16 %v3921_v46, %v3918_v44  ;;  %v3916_v50 = vld [vmem:[#allocation3 + $0x1948] sm:$0xff] }
 0x511   :  { %3429 = vmatmul.mubr.f32.gmra.mrb[36].mxu0 %v3071_v48  ;;  %6801 = vmatprep.subr.bf16.mxu1 %v6800_v47  ;;  %v6824_v48 = vpack.c.bf16 %v3879_v27, %v3876_v41  ;;  %v3911_v41 = vld [vmem:[#allocation3 + $0x1920] sm:$0xff]  ;;  %v6876_v27 = vpack.c.bf16 %v3910_v32, %v3907_v39  ;;  %v3838_v44 = vld [vmem:[#allocation3 + $0x16d8] sm:$0xff] }
 0x512   :  { %6771 = vmatpush1.bf16.msra.mxu0 %v6770_v3  ;;  %3434 = vmatprep.mubr.f32.mxu0 %v7557_v24  ;;  %v3884_v3 = vld [vmem:[#allocation3 + $0x1848] sm:$0xff]  ;;  %v3843_v39 = vld [vmem:[#allocation3 + $0x1700] sm:$0xff] }
 0x513   :  { %6773 = vmatprep.subr.bf16.mxu0 %v6772_v8  ;;  %v6860_v8 = vpack.c.bf16 %v3886_v57, %v3883_v1  ;;  %v3919_v1 = vld [vmem:[#allocation3 + $0x1960] sm:$0xff]  ;;  %v3922_v57 = vld [vmem:[#allocation3 + $0x1978] sm:$0xff] }
 0x514   :  { %6803 = vmatpush3.bf16.msra.mxu1 %v6800_v47  ;;  %v3881_v47 = vld [vmem:[#allocation3 + $0x1830] sm:$0xff] }
 0x515   :  { %3435 = vmatmul.mubr.f32.gmra.mrb[38].mxu0 %v3072_v2  ;;  %6805 = vmatprep.subr.bf16.mxu1 %v6804_v10  ;;  %v6828_v2 = vpack.c.bf16 %v3885_v52, %v3882_v51  ;;  %v6830_v9 = vpack.c.bf16 %v3884_v3, %v3881_v47  ;;  %v3917_v51 = vld [vmem:[#allocation3 + $0x1950] sm:$0xff]  ;;  %v3920_v52 = vld [vmem:[#allocation3 + $0x1968] sm:$0xff]  ;;  %v6884_v47 = vpack.c.bf16 %v3922_v57, %v3919_v1  ;;  %v3831_v3 = vld [vmem:[#allocation3 + $0x16a0] sm:$0xff] }
 0x516   :  { %6775 = vmatpush1.bf16.msra.mxu0 %v6774_v11  ;;  %3638 = vmatprep.mubr.f32.mxu0 %v7557_v24  ;;  %v6832_v11 = vpack.c.bf16 %v3891_v6, %v3888_v61  ;;  %v3829_v6 = vld [vmem:[#allocation3 + $0x1690] sm:$0xff]  ;;  %v3842_v1 = vld [vmem:[#allocation3 + $0x16f8] sm:$0xff] }
 0x517   :  { %6777 = vmatprep.subr.bf16.mxu0 %v6776_v40  ;;  %v3894_v40 = vld [vmem:[#allocation3 + $0x1898] sm:$0xff] }
 0x518   :  { %6807 = vmatpush3.bf16.msra.mxu1 %v6804_v10  ;;  %v3079_v10 = vld [vmem:[#allocation2 + $0x29] sm:$0xff]  ;;  %v6836_v14 = vpack.c.bf16 %v3897_v63, %v3894_v40 }
 0x519   :  { %6809 = vmatprep.subr.bf16.mxu1 %v6808_v15 }
 0x51a   :  { %6779 = vmatpush1.bf16.msra.mxu0 %v6778_v4  ;;  %v3896_v4 = vld [vmem:[#allocation3 + $0x18a8] sm:$0xff] }
 0x51b   :  { %6781 = vmatprep.subr.bf16.mxu0 %v6780_v18  ;;  %v3903_v18 = vld [vmem:[#allocation3 + $0x18e0] sm:$0xff] }
 0x51c   :  { %6811 = vmatpush3.bf16.msra.mxu1 %v6808_v15  ;;  %v3893_v15 = vld [vmem:[#allocation3 + $0x1890] sm:$0xff]  ;;  %v6840_v20 = vpack.c.bf16 %v3903_v18, %v3900_v17 }
 0x51d   :  { %6813 = vmatprep.subr.bf16.mxu1 %v6812_v23  ;;  %v6838_v16 = vpack.c.bf16 %v3896_v4, %v3893_v15  ;;  %v3827_v4 = vld [vmem:[#allocation3 + $0x1680] sm:$0xff] }
 0x51e   :  { %6783 = vmatpush1.bf16.msra.mxu0 %v6782_v0  ;;  %v6868_v0 = vpack.c.bf16 %v3898_v21, %v3895_v19  ;;  %v3834_v19 = vld [vmem:[#allocation3 + $0x16b8] sm:$0xff] }
 0x51f   :  { %6785 = vmatprep.subr.bf16.mxu0 %v6784_v29  ;;  %v3909_v29 = vld [vmem:[#allocation3 + $0x1910] sm:$0xff] }
 0x520   :  { %6815 = vmatpush3.bf16.msra.mxu1 %v6812_v23  ;;  %v3902_v23 = vld [vmem:[#allocation3 + $0x18d8] sm:$0xff]  ;;  %v6844_v33 = vpack.c.bf16 %v3909_v29, %v3906_v28 }
 0x521   :  { %6817 = vmatprep.subr.bf16.mxu1 %v6816_v36  ;;  %v6842_v25 = vpack.c.bf16 %v3902_v23, %v3899_v22 }
 0x522   :  { %6787 = vmatpush1.bf16.msra.mxu0 %v6786_v30 }
 0x523   :  { %6789 = vmatprep.subr.bf16.mxu0 %v6788_v38  ;;  %v6848_v38 = vpack.c.bf16 %v3915_v26, %v3912_v37 }
 0x524   :  { %6819 = vmatpush3.bf16.msra.mxu1 %v6816_v36  ;;  %v6872_v36 = vpack.c.bf16 %v3904_v34, %v3901_v31 }
 0x525   :  { %6821 = vmatprep.subr.bf16.mxu1 %v6820_v42 }
 0x526   :  { %6791 = vmatpush1.bf16.msra.mxu0 %v6790_v43 }
 0x527   :  { %6825 = vmatprep.subr.bf16.mxu0 %v6824_v48  ;;  %v3913_v48 = vld [vmem:[#allocation3 + $0x1930] sm:$0xff] }
 0x528   :  { %6823 = vmatpush3.bf16.msra.mxu1 %v6820_v42  ;;  %v3914_v42 = vld [vmem:[#allocation3 + $0x1938] sm:$0xff] }
 0x529   :  { %3639 = vmatmul.mubr.f32.vlgmr.msra.gmra.mrb[32].mxu0 %v7579_v58  ;;  %6857 = vmatprep.subr.bf16.mxu1 %v6856_v53  ;;  %v6864_v58 = vpack.c.bf16 %v3892_v5, %v3889_v56  ;;  %v6850_v43 = vpack.c.bf16 %v3914_v42, %v3911_v41 }
 0x52a   :  { %3644 = vmatprep.mubr.f32.mxu0 %v7557_v24  ;;  %6827 = vmatpush1.bf16.msra.mxu0 %v6826_v55  ;;  %v6854_v55 = vpack.c.bf16 %v3920_v52, %v3917_v51 }
 0x52b   :  { %5699 = vmatmul.mubr.f32.vlgmr.msra.gmra.mrb[16].mxu1 %v3078_v62  ;;  %6829 = vmatprep.subr.bf16.mxu0 %v6828_v2  ;;  %v3828_v2 = vld [vmem:[#allocation3 + $0x1688] sm:$0xff] }
 0x52c   :  { %5701 = vmatprep.mubr.f32.mxu1 %v3079_v10  ;;  %6859 = vmatpush3.bf16.msra.mxu1 %v6856_v53  ;;  %v6880_v53 = vpack.c.bf16 %v3916_v50, %v3913_v48  ;;  %v6888_v61 = vpack.c.bf16 %v3831_v3, %v3828_v2  ;;  %v7601_v48 = vld [vmem:[#allocation2] sm:$0xff]  ;;  %v3846_v3 = vld [vmem:[#allocation3 + $0x1718] sm:$0xff] }
 0x52d   :  { %3645 = vmatmul.mubr.f32.gmra.mrb[34].mxu0 %v3078_v62  ;;  %6861 = vmatprep.subr.bf16.mxu1 %v6860_v8 }
 0x52e   :  { %3650 = vmatprep.mubr.f32.mxu0 %v7557_v24  ;;  %6831 = vmatpush1.bf16.msra.mxu0 %v6830_v9  ;;  %v3761_v9 = vld [vmem:[#allocation6 + $0xc] sm:$0x7] }
 0x52f   :  { %5702 = vmatmul.mubr.f32.gmra.mrb[18].mxu1 %v3080_v54  ;;  %6833 = vmatprep.subr.bf16.mxu0 %v6832_v11  ;;  %v3766_v56 = vrot.slane %v3761_v9, %v7469_v45  ;;  %v7595_v5 = vrot.slane %v3761_v9, %v7471_v59  ;;  %v3774_v11 = vrot.slane %v3761_v9, %v7473_v60 }
 0x530   :  { %6863 = vmatpush3.bf16.msra.mxu1 %v6860_v8  ;;  %v3832_v8 = vld [vmem:[#allocation3 + $0x16a8] sm:$0xff] }
 0x531   :  { %3651 = vmatmul.mubr.f32.gmra.mrb[36].mxu0 %v3079_v10  ;;  %6865 = vmatprep.subr.bf16.mxu1 %v6864_v58  ;;  %v7590_v62 = vpack.c.bf16 %v3832_v8, %v3829_v6 }
 0x532   :  { %3656 = vmatprep.mubr.f32.mxu0 %v7557_v24  ;;  %6835 = vmatpush1.bf16.msra.mxu0 %v6834_v13 }
 0x533   :  { %6837 = vmatprep.subr.bf16.mxu0 %v6836_v14 }
 0x534   :  { %6867 = vmatpush3.bf16.msra.mxu1 %v6864_v58 }
 0x535   :  { %3657 = vmatmul.mubr.f32.gmra.mrb[38].mxu0 %v3080_v54  ;;  %6869 = vmatprep.subr.bf16.mxu1 %v6868_v0 }
 0x536   :  { %6839 = vmatpush1.bf16.msra.mxu0 %v6838_v16  ;;  %3987 = vmatprep.mubr.f32.mxu0 %v7557_v24  ;;  %v3908_v24 = vld [vmem:[#allocation3 + $0x1908] sm:$0xff]  ;;  %v3830_v16 = vld [vmem:[#allocation3 + $0x1698] sm:$0xff] }
 0x537   :  { %6841 = vmatprep.subr.bf16.mxu0 %v6840_v20  ;;  %v6846_v30 = vpack.c.bf16 %v3908_v24, %v3905_v35  ;;  %v3837_v20 = vld [vmem:[#allocation3 + $0x16d0] sm:$0xff]  ;;  %v6890_v31 = vpack.c.bf16 %v3830_v16, %v3827_v4 }
 0x538   :  { %6871 = vmatpush3.bf16.msra.mxu1 %v6868_v0  ;;  %v6892_v24 = vpack.c.bf16 %v3837_v20, %v3834_v19 }
 0x539   :  { %6873 = vmatprep.subr.bf16.mxu1 %v6872_v36 }
 0x53a   :  { %6843 = vmatpush1.bf16.msra.mxu0 %v6842_v25 }
 0x53b   :  { %6845 = vmatprep.subr.bf16.mxu0 %v6844_v33 }
 0x53c   :  { %6875 = vmatpush3.bf16.msra.mxu1 %v6872_v36  ;;  %v3833_v36 = vld [vmem:[#allocation3 + $0x16b0] sm:$0xff] }
 0x53d   :  { %6877 = vmatprep.subr.bf16.mxu1 %v6876_v27 }
 0x53e   :  { %6847 = vmatpush1.bf16.msra.mxu0 %v6846_v30  ;;  %v3836_v30 = vld [vmem:[#allocation3 + $0x16c8] sm:$0xff] }
 0x53f   :  { %6849 = vmatprep.subr.bf16.mxu0 %v6848_v38  ;;  %v3840_v38 = vld [vmem:[#allocation3 + $0x16e8] sm:$0xff] }
 0x540   :  { %6879 = vmatpush3.bf16.msra.mxu1 %v6876_v27 }
 0x541   :  { %6881 = vmatprep.subr.bf16.mxu1 %v6880_v53 }
 0x542   :  { %6851 = vmatpush1.bf16.msra.mxu0 %v6850_v43  ;;  %v3835_v43 = vld [vmem:[#allocation3 + $0x16c0] sm:$0xff] }
 0x543   :  { %6853 = vmatprep.subr.bf16.mxu0 %v6852_v49  ;;  %v6894_v49 = vpack.c.bf16 %v3836_v30, %v3833_v36  ;;  %v3860_v36 = vld [vmem:[#allocation3 + $0x1788] sm:$0xff] }
 0x544   :  { %6883 = vmatpush3.bf16.msra.mxu1 %v6880_v53  ;;  %v6896_v53 = vpack.c.bf16 %v3843_v39, %v3840_v38  ;;  %v3864_v30 = vld [vmem:[#allocation3 + $0x17a8] sm:$0xff]  ;;  %v3862_v38 = vld [vmem:[#allocation3 + $0x1798] sm:$0xff] }
 0x545   :  { %6885 = vmatprep.subr.bf16.mxu1 %v6884_v47 }
 0x546   :  { %6855 = vmatpush1.bf16.msra.mxu0 %v6854_v55  ;;  %v3839_v55 = vld [vmem:[#allocation3 + $0x16e0] sm:$0xff] }
 0x547   :  { %6889 = vmatprep.subr.bf16.mxu0 %v6888_v61  ;;  %v3849_v61 = vld [vmem:[#allocation3 + $0x1730] sm:$0xff] }
 0x548   :  { %6887 = vmatpush3.bf16.msra.mxu1 %v6884_v47  ;;  %v6924_v47 = vpack.c.bf16 %v3838_v44, %v3835_v43  ;;  %v3870_v43 = vld [vmem:[#allocation3 + $0x17d8] sm:$0xff]  ;;  %v3873_v44 = vld [vmem:[#allocation3 + $0x17f0] sm:$0xff] }
 0x549   :  { %6921 = vmatprep.subr.bf16.mxu1 %v7590_v62 }
 0x5fc   :  { %v3640_v10 = vpop.f32.mrb[32].mxu0 }
 0x5fd   :  { %v3778_v7 = vadd.f32 %v3766_v56, %v3640_v10  ;;  %v3642_v12 = vpop.f32.mrb[33].mxu0 }
 0x5fe   :  { %v3779_v40 = vadd.f32 %v7595_v5, %v3642_v12  ;;  %v5700_v63 = vpop.f32.mrb[16].mxu1  ;;  %v3844_v12 = vld [vmem:[#allocation3 + $0x1708] sm:$0xff] }
 0x5ff   :  { %v3790_v58 = vmax.f32 %v3778_v7, 0.0  ;;  %v3729_v54 = vpop.f32.mrb[17].mxu1  ;;  %v3783_v22 = vadd.f32 %v5700_v63, %v3774_v11  ;;  %v3841_v7 = vld [vmem:[#allocation3 + $0x16f0] sm:$0xff]  ;;  %v6898_v63 = vpack.c.bf16 %v3842_v1, %v3839_v55  ;;  %v3872_v55 = vld [vmem:[#allocation3 + $0x17e8] sm:$0xff]  ;;  %v3871_v1 = vld [vmem:[#allocation3 + $0x17e0] sm:$0xff] }
 0x600   :  { %v3791_v13 = vmax.f32 %v3779_v40, 0.0  ;;  %v3780_v14 = vadd.f32 %v3774_v11, %v3729_v54  ;;  %v3646_v15 = vpop.f32.mrb[34].mxu0  ;;  %v6900_v54 = vpack.c.bf16 %v3849_v61, %v3846_v3 }
 0x601   :  { %v3781_v17 = vadd.f32 %v3766_v56, %v3646_v15  ;;  %v3648_v18 = vpop.f32.mrb[35].mxu0  ;;  %v3795_v32 = vmax.f32 %v3783_v22, 0.0  ;;  %v3855_v15 = vld [vmem:[#allocation3 + $0x1760] sm:$0xff]  ;;  %v3854_v22 = vld [vmem:[#allocation3 + $0x1758] sm:$0xff] }
 0x602   :  { %v3802_v21 = vadd.f32 %v3791_v13, %v3790_v58  ;;  %v3792_v23 = vmax.f32 %v3780_v14, 0.0  ;;  %v3782_v0 = vadd.f32 %v7595_v5, %v3648_v18  ;;  %v5703_v25 = vpop.f32.mrb[18].mxu1  ;;  %v3848_v13 = vld [vmem:[#allocation3 + $0x1728] sm:$0xff]  ;;  %v6928_v14 = vpack.c.bf16 %v3844_v12, %v3841_v7  ;;  %v4281_v7 = vld [vmem:[#allocation3 + $0x19d0] sm:$0xff] }
 0x603   :  { %v3793_v28 = vmax.f32 %v3781_v17, 0.0  ;;  %v3739_v29 = vpop.f32.mrb[19].mxu1  ;;  %v3789_v6 = vadd.f32 %v5703_v25, %v3774_v11  ;;  %v3847_v17 = vld [vmem:[#allocation3 + $0x1720] sm:$0xff]  ;;  %v3861_v25 = vld [vmem:[#allocation3 + $0x1790] sm:$0xff] }
 0x604   :  { %v3806_v33 = vadd.f32 %v3802_v21, %v3792_v23  ;;  %v3794_v34 = vmax.f32 %v3782_v0, 0.0  ;;  %v3652_v35 = vpop.f32.mrb[36].mxu0  ;;  %v3786_v27 = vadd.f32 %v3774_v11, %v3739_v29  ;;  %v3845_v11 = vld [vmem:[#allocation3 + $0x1710] sm:$0xff]  ;;  %v3851_v21 = vld [vmem:[#allocation3 + $0x1740] sm:$0xff]  ;;  %v3858_v23 = vld [vmem:[#allocation3 + $0x1778] sm:$0xff] }
 0x605   :  { %v3784_v37 = vadd.f32 %v3766_v56, %v3652_v35  ;;  %v3654_v26 = vpop.f32.mrb[37].mxu0  ;;  %v3801_v4 = vmax.f32 %v3789_v6, 0.0  ;;  %v6902_v18 = vpack.c.bf16 %v3848_v13, %v3845_v11  ;;  %v3856_v29 = vld [vmem:[#allocation3 + $0x1768] sm:$0xff]  ;;  %v4273_v12 = vld [vmem:[#allocation3 + $0x1990] sm:$0xff] }
 0x606   :  { %3810 = vst [vmem:[#allocation2 + $0x8] sm:$0xff] %v3806_v33  ;;  %v3803_v41 = vadd.f32 %v3794_v34, %v3793_v28  ;;  %v3785_v42 = vadd.f32 %v7595_v5, %v3654_v26  ;;  %3988 = vmatmul.mubr.f32.vlgmr.msra.gmra.mrb[40].mxu0 %v3806_v33  ;;  %5736 = vmatprep.mubr.f32.mxu1 %v3806_v33  ;;  %v3798_v8 = vmax.f32 %v3786_v27, 0.0  ;;  %v3853_v28 = vld [vmem:[#allocation3 + $0x1750] sm:$0xff]  ;;  %v3859_v26 = vld [vmem:[#allocation3 + $0x1780] sm:$0xff]  ;;  %v4284_v13 = vld [vmem:[#allocation3 + $0x19e8] sm:$0xff] }
 0x607   :  { %v3796_v46 = vmax.f32 %v3784_v37, 0.0  ;;  %6891 = vmatpush1.bf16.msra.mxu0 %v6890_v31  ;;  %3993 = vmatprep.mubr.f32.mxu0 %v7601_v48  ;;  %v6906_v33 = vpack.c.bf16 %v3854_v22, %v3851_v21  ;;  %v6908_v34 = vpack.c.bf16 %v3861_v25, %v3858_v23  ;;  %v6936_v35 = vpack.c.bf16 %v3856_v29, %v3853_v28  ;;  %v3867_v37 = vld [vmem:[#allocation3 + $0x17c0] sm:$0xff]  ;;  %v4293_v21 = vld [vmem:[#allocation3 + $0x1a30] sm:$0xff]  ;;  %v4292_v29 = vld [vmem:[#allocation3 + $0x1a28] sm:$0xff] }
 0x608   :  { %v3807_v50 = vadd.f32 %v3803_v41, %v3795_v32  ;;  %v3797_v51 = vmax.f32 %v3785_v42, 0.0  ;;  %v3658_v52 = vpop.f32.mrb[38].mxu0  ;;  %6893 = vmatprep.subr.bf16.mxu0 %v6892_v24  ;;  %v3857_v24 = vld [vmem:[#allocation3 + $0x1770] sm:$0xff]  ;;  %v6912_v32 = vpack.c.bf16 %v3867_v37, %v3864_v30  ;;  %v6940_v41 = vpack.c.bf16 %v3862_v38, %v3859_v26  ;;  %v3863_v27 = vld [vmem:[#allocation3 + $0x17a0] sm:$0xff]  ;;  %v3866_v42 = vld [vmem:[#allocation3 + $0x17b8] sm:$0xff] }
 0x609   :  { %v3787_v57 = vadd.f32 %v3766_v56, %v3658_v52  ;;  %v3660_v2 = vpop.f32.mrb[39].mxu0  ;;  %v6910_v39 = vpack.c.bf16 %v3860_v36, %v3857_v24  ;;  %v4285_v23 = vld [vmem:[#allocation3 + $0x19f0] sm:$0xff]  ;;  %v4299_v24 = vld [vmem:[#allocation3 + $0x1a60] sm:$0xff]  ;;  %v4294_v37 = vld [vmem:[#allocation3 + $0x1a38] sm:$0xff] }
 0x60a   :  { %3811 = vst [vmem:[#allocation2 + $0x10] sm:$0xff] %v3807_v50  ;;  %v3804_v9 = vadd.f32 %v3797_v51, %v3796_v46  ;;  %v3788_v10 = vadd.f32 %v7595_v5, %v3660_v2  ;;  %3994 = vmatmul.mubr.f32.gmra.mrb[42].mxu0 %v3807_v50  ;;  %5737 = vmatmul.mubr.f32.vlgmr.msra.gmra.mrb[20].mxu1 %v3807_v50  ;;  %v3852_v5 = vld [vmem:[#allocation3 + $0x1748] sm:$0xff]  ;;  %v3865_v46 = vld [vmem:[#allocation3 + $0x17b0] sm:$0xff]  ;;  %v4291_v30 = vld [vmem:[#allocation3 + $0x1a20] sm:$0xff] }
 0x60b   :  { %v3799_v40 = vmax.f32 %v3787_v57, 0.0  ;;  %6895 = vmatpush1.bf16.msra.mxu0 %v6894_v49  ;;  %6923 = vmatpush3.bf16.msra.mxu1 %v7590_v62  ;;  %v3850_v62 = vld [vmem:[#allocation3 + $0x1738] sm:$0xff]  ;;  %v6904_v20 = vpack.c.bf16 %v3855_v15, %v3852_v5  ;;  %v3868_v49 = vld [vmem:[#allocation3 + $0x17c8] sm:$0xff]  ;;  %v6914_v50 = vpack.c.bf16 %v3866_v42, %v3863_v27  ;;  %v6916_v51 = vpack.c.bf16 %v3873_v44, %v3870_v43  ;;  %v4279_v5 = vld [vmem:[#allocation3 + $0x19c0] sm:$0xff] }
 0x60c   :  { %v3808_v56 = vadd.f32 %v3804_v9, %v3798_v8  ;;  %v3800_v58 = vmax.f32 %v3788_v10, 0.0  ;;  %3999 = vmatprep.mubr.f32.mxu0 %v7601_v48  ;;  %6897 = vmatprep.subr.bf16.mxu0 %v6896_v53  ;;  %v6932_v0 = vpack.c.bf16 %v3850_v62, %v3847_v17  ;;  %v6944_v52 = vpack.c.bf16 %v3868_v49, %v3865_v46  ;;  %v3869_v53 = vld [vmem:[#allocation3 + $0x17d0] sm:$0xff]  ;;  %v3874_v57 = vld [vmem:[#allocation3 + $0x17f8] sm:$0xff]  ;;  %v4272_v2 = vld [vmem:[#allocation3 + $0x1988] sm:$0xff] }
 0x60d   :  { %6925 = vmatprep.subr.bf16.mxu1 %v6924_v47  ;;  %v3814_v31 = vld [vmem:[#allocation2 + $0x7] sm:$0xff]  ;;  %v6918_v3 = vpack.c.bf16 %v3872_v55, %v3869_v53  ;;  %v6948_v61 = vpack.c.bf16 %v3874_v57, %v3871_v1  ;;  %v4274_v9 = vld [vmem:[#allocation3 + $0x1998] sm:$0xff]  ;;  %v4289_v28 = vld [vmem:[#allocation3 + $0x1a10] sm:$0xff] }
 0x60e   :  { %3812 = vst [vmem:[#allocation2 + $0x28] sm:$0xff] %v3808_v56  ;;  %v3805_v16 = vadd.f32 %v3800_v58, %v3799_v40  ;;  %4000 = vmatmul.mubr.f32.gmra.mrb[44].mxu0 %v3808_v56  ;;  %5739 = vmatprep.mubr.f32.mxu1 %v3808_v56  ;;  %v4271_v8 = vld [vmem:[#allocation3 + $0x1980] sm:$0xff]  ;;  %v4278_v10 = vld [vmem:[#allocation3 + $0x19b8] sm:$0xff]  ;;  %v4276_v40 = vld [vmem:[#allocation3 + $0x19a8] sm:$0xff]  ;;  %v6966_v26 = vpack.c.bf16 %v4292_v29, %v4289_v28 }
 0x60f   :  { %6899 = vmatpush1.bf16.msra.mxu0 %v6898_v63  ;;  %6927 = vmatpush3.bf16.msra.mxu1 %v6924_v47  ;;  %v4275_v47 = vld [vmem:[#allocation3 + $0x19a0] sm:$0xff]  ;;  %v6954_v63 = vpack.c.bf16 %v4274_v9, %v4271_v8  ;;  %v6956_v56 = vpack.c.bf16 %v4281_v7, %v4278_v10  ;;  %v4277_v58 = vld [vmem:[#allocation3 + $0x19b0] sm:$0xff]  ;;  %v6984_v11 = vpack.c.bf16 %v4276_v40, %v4273_v12  ;;  %v4282_v15 = vld [vmem:[#allocation3 + $0x19d8] sm:$0xff] }
 0x610   :  { %v3809_v19 = vadd.f32 %v3805_v16, %v3801_v4  ;;  %4005 = vmatprep.mubr.f32.mxu0 %v7601_v48  ;;  %6901 = vmatprep.subr.bf16.mxu0 %v6900_v54  ;;  %v6952_v6 = vpack.c.bf16 %v4275_v47, %v4272_v2  ;;  %v4280_v54 = vld [vmem:[#allocation3 + $0x19c8] sm:$0xff]  ;;  %v4283_v16 = vld [vmem:[#allocation3 + $0x19e0] sm:$0xff]  ;;  %v4286_v17 = vld [vmem:[#allocation3 + $0x19f8] sm:$0xff] }
 0x611   :  { %6929 = vmatprep.subr.bf16.mxu1 %v6928_v14  ;;  %v6958_v4 = vpack.c.bf16 %v4280_v54, %v4277_v58  ;;  %v3815_v62 = vld [vmem:[#allocation2 + $0xf] sm:$0xff]  ;;  %v6962_v25 = vpack.c.bf16 %v4286_v17, %v4283_v16  ;;  %v4302_v27 = vld [vmem:[#allocation3 + $0x1a78] sm:$0xff]  ;;  %v4311_v55 = vld [vmem:[#allocation3 + $0x1ac0] sm:$0xff]  ;;  %v7333_v16 = vmov 0.0|0.0  }
 0x612   :  { %3813 = vst [vmem:[#allocation2 + $0x30] sm:$0xff] %v3809_v19  ;;  %4006 = vmatmul.mubr.f32.gmra.mrb[46].mxu0 %v3809_v19  ;;  %5740 = vmatmul.mubr.f32.gmra.mrb[22].mxu1 %v3809_v19  ;;  %v6988_v19 = vpack.c.bf16 %v4282_v15, %v4279_v5  ;;  %v7611_v36 = vld [vmem:[#allocation2 + $0x9] sm:$0xff]  ;;  %v4303_v1 = vld [vmem:[#allocation3 + $0x1a80] sm:$0xff]  ;;  %v4306_v57 = vld [vmem:[#allocation3 + $0x1a98] sm:$0xff] }
 0x613   :  { %6903 = vmatpush1.bf16.msra.mxu0 %v6902_v18  ;;  %6931 = vmatpush3.bf16.msra.mxu1 %v6928_v14  ;;  %v4287_v14 = vld [vmem:[#allocation3 + $0x1a00] sm:$0xff]  ;;  %v4305_v42 = vld [vmem:[#allocation3 + $0x1a90] sm:$0xff]  ;;  %v4300_v44 = vld [vmem:[#allocation3 + $0x1a68] sm:$0xff] }
 0x614   :  { %5774 = vmatprep.mubr.f32.mxu1 %v3814_v31  ;;  %6905 = vmatprep.subr.bf16.mxu0 %v6904_v20  ;;  %v6960_v18 = vpack.c.bf16 %v4287_v14, %v4284_v13  ;;  %v4290_v20 = vld [vmem:[#allocation3 + $0x1a18] sm:$0xff]  ;;  %v4297_v43 = vld [vmem:[#allocation3 + $0x1a50] sm:$0xff]  ;;  %v6972_v49 = vpack.c.bf16 %v4305_v42, %v4302_v27  ;;  %v4308_v53 = vld [vmem:[#allocation3 + $0x1aa8] sm:$0xff] }
 0x615   :  { %6933 = vmatprep.subr.bf16.mxu1 %v6932_v0  ;;  %4161 = vmatprep.mubr.f32.mxu0 %v7601_v48  ;;  %v3816_v22 = vld [vmem:[#allocation2 + $0x27] sm:$0xff]  ;;  %v6976_v47 = vpack.c.bf16 %v4311_v55, %v4308_v53  ;;  %v4314_v8 = vld [vmem:[#allocation3 + $0x1ad8] sm:$0xff]  ;;  %v4317_v9 = vld [vmem:[#allocation3 + $0x1af0] sm:$0xff] }
 0x616   :  { %v4309_v10 = vld [vmem:[#allocation3 + $0x1ab0] sm:$0xff]  ;;  %v4312_v7 = vld [vmem:[#allocation3 + $0x1ac8] sm:$0xff]  ;;  %v6980_v40 = vpack.c.bf16 %v4317_v9, %v4314_v8  ;;  %v4315_v54 = vld [vmem:[#allocation3 + $0x1ae0] sm:$0xff] }
 0x617   :  { %6907 = vmatpush1.bf16.msra.mxu0 %v6906_v33  ;;  %6935 = vmatpush3.bf16.msra.mxu1 %v6932_v0  ;;  %v4288_v0 = vld [vmem:[#allocation3 + $0x1a08] sm:$0xff]  ;;  %v6964_v33 = vpack.c.bf16 %v4293_v21, %v4290_v20  ;;  %v7008_v58 = vpack.c.bf16 %v4312_v7, %v4309_v10  ;;  %v3823_v5 = vld [vmem:[#allocation2 + $0x11] sm:$0xff]  ;;  %v4638_v17 = vld [vmem:[%s7699_s4] sm:$0xff] }
 0x618   :  { %6909 = vmatprep.subr.bf16.mxu0 %v6908_v34  ;;  %6937 = vmatprep.subr.bf16.mxu1 %v6936_v35  ;;  %v6992_v34 = vpack.c.bf16 %v4288_v0, %v4285_v23  ;;  %v4641_v20 = vld [vmem:[%s7699_s4 + $0x18] sm:$0xff]  ;;  %v4644_v0 = vld [vmem:[%s7699_s4 + $0x30] sm:$0xff]  ;;  %v4646_v29 = vld [vmem:[%s7699_s4 + $0x40] sm:$0xff] }
 0x619   :  { %v3824_v15 = vld [vmem:[#allocation2 + $0x29] sm:$0xff] }
 0x61b   :  { %6911 = vmatpush1.bf16.msra.mxu0 %v6910_v39  ;;  %6939 = vmatpush3.bf16.msra.mxu1 %v6936_v35  ;;  %v4296_v35 = vld [vmem:[#allocation3 + $0x1a48] sm:$0xff]  ;;  %v4295_v39 = vld [vmem:[#allocation3 + $0x1a40] sm:$0xff] }
 0x61c   :  { %6913 = vmatprep.subr.bf16.mxu0 %v6912_v32  ;;  %6941 = vmatprep.subr.bf16.mxu1 %v6940_v41  ;;  %v6968_v38 = vpack.c.bf16 %v4299_v24, %v4296_v35  ;;  %v4298_v32 = vld [vmem:[#allocation3 + $0x1a58] sm:$0xff] }
 0x61d   :  { %v6970_v46 = vpack.c.bf16 %v4298_v32, %v4295_v39  ;;  %v4649_v35 = vld [vmem:[%s7699_s4 + $0x58] sm:$0xff]  ;;  %v4506_v32 = vld [vmem:[#allocation6 + $0xf] sm:$0x7] }
 0x61e   :  { %v4515_v27 = vrot.slane %v4506_v32, %v7471_v59 }
 0x61f   :  { %6915 = vmatpush1.bf16.msra.mxu0 %v6914_v50  ;;  %6943 = vmatpush3.bf16.msra.mxu1 %v6940_v41  ;;  %v6996_v41 = vpack.c.bf16 %v4294_v37, %v4291_v30  ;;  %v4301_v50 = vld [vmem:[#allocation3 + $0x1a70] sm:$0xff]  ;;  %v4651_v30 = vld [vmem:[%s7699_s4 + $0x68] sm:$0xff] }
 0x620   :  { %6917 = vmatprep.subr.bf16.mxu0 %v6916_v51  ;;  %6945 = vmatprep.subr.bf16.mxu1 %v6944_v52  ;;  %v4304_v51 = vld [vmem:[#allocation3 + $0x1a88] sm:$0xff] }
 0x621   :  { %v6974_v2 = vpack.c.bf16 %v4304_v51, %v4301_v50 }
 0x623   :  { %6919 = vmatpush1.bf16.msra.mxu0 %v6918_v3  ;;  %6947 = vmatpush3.bf16.msra.mxu1 %v6944_v52  ;;  %v7000_v52 = vpack.c.bf16 %v4300_v44, %v4297_v43  ;;  %v4307_v3 = vld [vmem:[#allocation3 + $0x1aa0] sm:$0xff] }
 0x624   :  { %6949 = vmatprep.subr.bf16.mxu1 %v6948_v61  ;;  %6953 = vmatprep.subr.bf16.mxu0 %v6952_v6  ;;  %v7004_v6 = vpack.c.bf16 %v4306_v57, %v4303_v1 }
 0x626   :  { %4162 = vmatmul.mubr.f32.vlgmr.msra.gmra.mrb[40].mxu0 %v3814_v31  ;;  %v3817_v31 = vld [vmem:[#allocation2 + $0x2f] sm:$0xff] }
 0x627   :  { %6951 = vmatpush3.bf16.msra.mxu1 %v6948_v61  ;;  %6955 = vmatpush1.bf16.msra.mxu0 %v6954_v63  ;;  %v4310_v61 = vld [vmem:[#allocation3 + $0x1ab8] sm:$0xff]  ;;  %v4313_v63 = vld [vmem:[#allocation3 + $0x1ad0] sm:$0xff] }
 0x628   :  { %4167 = vmatprep.mubr.f32.mxu0 %v7601_v48  ;;  %6957 = vmatprep.subr.bf16.mxu0 %v6956_v56  ;;  %v6978_v12 = vpack.c.bf16 %v4310_v61, %v4307_v3  ;;  %v4316_v56 = vld [vmem:[#allocation3 + $0x1ae8] sm:$0xff] }
 0x629   :  { %6985 = vmatprep.subr.bf16.mxu1 %v6984_v11  ;;  %v6982_v13 = vpack.c.bf16 %v4316_v56, %v4313_v63 }
 0x62a   :  { %4168 = vmatmul.mubr.f32.gmra.mrb[42].mxu0 %v3815_v62  ;;  %5775 = vmatmul.mubr.f32.vlgmr.msra.gmra.mrb[20].mxu1 %v3815_v62  ;;  %v4639_v62 = vld [vmem:[%s7699_s4 + $0x8] sm:$0xff] }
 0x62b   :  { %5777 = vmatprep.mubr.f32.mxu1 %v3816_v22  ;;  %6959 = vmatpush1.bf16.msra.mxu0 %v6958_v4  ;;  %v3825_v4 = vld [vmem:[#allocation2 + $0x31] sm:$0xff] }
 0x62c   :  { %6987 = vmatpush3.bf16.msra.mxu1 %v6984_v11  ;;  %4173 = vmatprep.mubr.f32.mxu0 %v7601_v48  ;;  %v4318_v11 = vld [vmem:[#allocation3 + $0x1af8] sm:$0xff] }
 0x62d   :  { %6961 = vmatprep.subr.bf16.mxu0 %v6960_v18  ;;  %6989 = vmatprep.subr.bf16.mxu1 %v6988_v19  ;;  %v7012_v14 = vpack.c.bf16 %v4318_v11, %v4315_v54  ;;  %v4640_v18 = vld [vmem:[%s7699_s4 + $0x10] sm:$0xff] }
 0x62e   :  { %4174 = vmatmul.mubr.f32.gmra.mrb[44].mxu0 %v3816_v22  ;;  %5778 = vmatmul.mubr.f32.gmra.mrb[22].mxu1 %v3817_v31  ;;  %v7026_v21 = vpack.c.bf16 %v4641_v20, %v4640_v18  ;;  %v4643_v22 = vld [vmem:[%s7699_s4 + $0x28] sm:$0xff] }
 0x62f   :  { %6963 = vmatpush1.bf16.msra.mxu0 %v6962_v25  ;;  %5812 = vmatprep.mubr.f32.mxu1 %v7611_v36  ;;  %v4645_v25 = vld [vmem:[%s7699_s4 + $0x38] sm:$0xff] }
 0x630   :  { %6991 = vmatpush3.bf16.msra.mxu1 %v6988_v19  ;;  %4179 = vmatprep.mubr.f32.mxu0 %v7601_v48  ;;  %v7023_v19 = vpack.c.bf16 %v4639_v62, %v4638_v17  ;;  %v7032_v28 = vpack.c.bf16 %v4645_v25, %v4644_v0 }
 0x631   :  { %6965 = vmatprep.subr.bf16.mxu0 %v6964_v33  ;;  %6993 = vmatprep.subr.bf16.mxu1 %v6992_v34 }
 0x632   :  { %4180 = vmatmul.mubr.f32.gmra.mrb[46].mxu0 %v3817_v31  ;;  %v4647_v31 = vld [vmem:[%s7699_s4 + $0x48] sm:$0xff] }
 0x633   :  { %6967 = vmatpush1.bf16.msra.mxu0 %v6966_v26  ;;  %4383 = vmatprep.mubr.f32.mxu0 %v7601_v48  ;;  %v7035_v33 = vpack.c.bf16 %v4647_v31, %v4646_v29  ;;  %v4652_v26 = vld [vmem:[%s7699_s4 + $0x70] sm:$0xff] }
 0x634   :  { %6995 = vmatpush3.bf16.msra.mxu1 %v6992_v34  ;;  %6969 = vmatprep.subr.bf16.mxu0 %v6968_v38  ;;  %v4648_v34 = vld [vmem:[%s7699_s4 + $0x50] sm:$0xff]  ;;  %v4653_v38 = vld [vmem:[%s7699_s4 + $0x78] sm:$0xff] }
 0x635   :  { %6997 = vmatprep.subr.bf16.mxu1 %v6996_v41  ;;  %v7038_v24 = vpack.c.bf16 %v4649_v35, %v4648_v34  ;;  %v7044_v39 = vpack.c.bf16 %v4653_v38, %v4652_v26 }
 0x637   :  { %6971 = vmatpush1.bf16.msra.mxu0 %v6970_v46 }
 0x638   :  { %6999 = vmatpush3.bf16.msra.mxu1 %v6996_v41  ;;  %6973 = vmatprep.subr.bf16.mxu0 %v6972_v49  ;;  %v4511_v41 = vrot.slane %v4506_v32, %v7469_v45  ;;  %v4519_v49 = vrot.slane %v4506_v32, %v7473_v60 }
 0x639   :  { %7001 = vmatprep.subr.bf16.mxu1 %v7000_v52 }
 0x63b   :  { %6975 = vmatpush1.bf16.msra.mxu0 %v6974_v2 }
 0x63c   :  { %7003 = vmatpush3.bf16.msra.mxu1 %v7000_v52  ;;  %6977 = vmatprep.subr.bf16.mxu0 %v6976_v47 }
 0x63d   :  { %7005 = vmatprep.subr.bf16.mxu1 %v7004_v6 }
 0x63f   :  { %6979 = vmatpush1.bf16.msra.mxu0 %v6978_v12 }
 0x640   :  { %7007 = vmatpush3.bf16.msra.mxu1 %v7004_v6  ;;  %6981 = vmatprep.subr.bf16.mxu0 %v6980_v40 }
 0x641   :  { %7009 = vmatprep.subr.bf16.mxu1 %v7008_v58 }
 0x643   :  { %6983 = vmatpush1.bf16.msra.mxu0 %v6982_v13 }
 0x644   :  { %7011 = vmatpush3.bf16.msra.mxu1 %v7008_v58  ;;  %7022 = vmatprep.subr.bf16.mxu0 %v7333_v16 }
 0x645   :  { %7013 = vmatprep.subr.bf16.mxu1 %v7012_v14 }
 0x646   :  { %4384 = vmatmul.mubr.f32.vlgmr.msra.gmra.mrb[40].mxu0 %v7611_v36  ;;  %v4650_v36 = vld [vmem:[%s7699_s4 + $0x60] sm:$0xff] }
 0x647   :  { %4389 = vmatprep.mubr.f32.mxu0 %v7601_v48  ;;  %7024 = vmatpush3.bf16.msra.mxu0 %v7023_v19  ;;  %v7041_v37 = vpack.c.bf16 %v4651_v30, %v4650_v36 }
 0x648   :  { %7015 = vmatpush3.bf16.msra.mxu1 %v7012_v14  ;;  %7025 = vmatprep.subr.bf16.mxu0 %v7333_v16 }
 0x649   :  { %7016 = vmatprep.subr.bf16.mxu1 %v7333_v16 }
 0x64a   :  { %4390 = vmatmul.mubr.f32.gmra.mrb[42].mxu0 %v3823_v5 }
 0x64b   :  { %5813 = vmatmul.mubr.f32.vlgmr.msra.gmra.mrb[20].mxu1 %v3823_v5  ;;  %4395 = vmatprep.mubr.f32.mxu0 %v7601_v48 }
 0x64c   :  { %5815 = vmatprep.mubr.f32.mxu1 %v3824_v15  ;;  %7027 = vmatpush3.bf16.msra.mxu0 %v7026_v21 }
 0x64d   :  { %7028 = vmatprep.subr.bf16.mxu0 %v7333_v16 }
 0x64e   :  { %4396 = vmatmul.mubr.f32.gmra.mrb[44].mxu0 %v3824_v15 }
 0x64f   :  { %5816 = vmatmul.mubr.f32.gmra.mrb[22].mxu1 %v3825_v4  ;;  %4401 = vmatprep.mubr.f32.mxu0 %v7601_v48 }
 0x650   :  { %5826 = vmatprep.mubr.msk.f32.mxu1 %vm7334_vm0, %v7601_v48 }
 0x652   :  { %4402 = vmatmul.mubr.f32.gmra.mrb[46].mxu0 %v3825_v4 }
 0x653   :  { %5861 = vmatprep.mubr.msk.f32.mxu0 %vm7334_vm0, %v7601_v48  ;;  %v4642_v48 = vld [vmem:[%s7699_s4 + $0x20] sm:$0xff]  ;;  %s7335_s4 = smov [#allocation11]  }
 0x654   :  { %v7029_v23 = vpack.c.bf16 %v4643_v22, %v4642_v48  ;;  %s4739_s7 = sshll.u32 %s7335_s4, 4  ;;  %s4740_s7 = int_to_ptr.vmem [resolvable:$true] %s4739_s7 }
 0x655   :  { %s7294_s8 = scalar_lea.vmem %s4740_s7, 32  ;;  %p7299_p5 = scmp.lt.s32.totalorder %s4740_s7, %s4740_s7 }
 0x656   :  { %7030 = vmatpush3.bf16.msra.mxu0 %v7029_v23  ;;  %p7295_p4 = scmp.ne.s32.totalorder %s4740_s7, %s7294_s8  ;;  %p7300_p6 = scmp.lt.s32.totalorder %s7294_s8, %s7294_s8 }
 0x657   :  { %7031 = vmatprep.subr.bf16.mxu0 %v7333_v16 }
 0x658   :  { %p7301_p7 = por %p7300_p6, %p7299_p5 }
 0x65a   :  { %7033 = vmatpush3.bf16.msra.mxu0 %v7032_v28  ;;  %v4563_v28 = vld [vmem:[#allocation8] sm:$0x3]  ;;  %p7302_p8 = pnand %p7301_p7, %p7295_p4 }
 0x65b   :  { %7034 = vmatprep.subr.bf16.mxu0 %v7333_v16 }
 0x65e   :  { %7036 = vmatpush3.bf16.msra.mxu0 %v7035_v33  ;;  %v4751_v33 = vld [vmem:[#allocation9] ss:$0 sm:$0xff] }
 0x65f   :  { %7037 = vmatprep.subr.bf16.mxu0 %v7333_v16 }
 0x662   :  { %7039 = vmatpush3.bf16.msra.mxu0 %v7038_v24 }
 0x663   :  { %7040 = vmatprep.subr.bf16.mxu0 %v7333_v16 }
 0x666   :  { %7042 = vmatpush3.bf16.msra.mxu0 %v7041_v37 }
 0x667   :  { %7043 = vmatprep.subr.bf16.mxu0 %v7333_v16 }
 0x66a   :  { %7045 = vmatpush3.bf16.msra.mxu0 %v7044_v39 }
 0x719   :  { %v4385_v42 = vpop.f32.mrb[40].mxu0 }
 0x71a   :  { %v4523_v43 = vadd.f32 %v4511_v41, %v4385_v42  ;;  %v4387_v44 = vpop.f32.mrb[41].mxu0 }
 0x71b   :  { %v4524_v46 = vadd.f32 %v4515_v27, %v4387_v44 }
 0x71c   :  { %v4535_v50 = vmax.f32 %v4523_v43, 0.0 }
 0x71d   :  { %v4536_v51 = vmax.f32 %v4524_v46, 0.0  ;;  %v4391_v52 = vpop.f32.mrb[42].mxu0 }
 0x71e   :  { %v4526_v53 = vadd.f32 %v4511_v41, %v4391_v52  ;;  %v5814_v55 = vpop.f32.mrb[20].mxu1  ;;  %v4393_v1 = vpop.f32.mrb[43].mxu0 }
 0x71f   :  { %v4547_v57 = vadd.f32 %v4536_v51, %v4535_v50  ;;  %v4528_v2 = vadd.f32 %v5814_v55, %v4519_v49  ;;  %v4527_v47 = vadd.f32 %v4515_v27, %v4393_v1  ;;  %v4474_v3 = vpop.f32.mrb[21].mxu1 }
 0x720   :  { %v4538_v61 = vmax.f32 %v4526_v53, 0.0  ;;  %v4525_v45 = vadd.f32 %v4519_v49, %v4474_v3 }
 0x721   :  { %v4539_v6 = vmax.f32 %v4527_v47, 0.0  ;;  %v4397_v59 = vpop.f32.mrb[44].mxu0  ;;  %v4540_v12 = vmax.f32 %v4528_v2, 0.0 }
 0x722   :  { %v4537_v8 = vmax.f32 %v4525_v45, 0.0  ;;  %v4529_v9 = vadd.f32 %v4511_v41, %v4397_v59  ;;  %v5817_v10 = vpop.f32.mrb[22].mxu1  ;;  %v4399_v7 = vpop.f32.mrb[45].mxu0 }
 0x723   :  { %v4548_v60 = vadd.f32 %v4539_v6, %v4538_v61  ;;  %v4530_v40 = vadd.f32 %v4515_v27, %v4399_v7  ;;  %v4484_v63 = vpop.f32.mrb[23].mxu1  ;;  %v4534_v5 = vadd.f32 %v5817_v10, %v4519_v49 }
 0x724   :  { %v4551_v56 = vadd.f32 %v4547_v57, %v4537_v8  ;;  %v4541_v58 = vmax.f32 %v4529_v9, 0.0  ;;  %v4531_v54 = vadd.f32 %v4519_v49, %v4484_v63 }
 0x725   :  { %v4552_v11 = vadd.f32 %v4548_v60, %v4540_v12  ;;  %v4542_v13 = vmax.f32 %v4530_v40, 0.0  ;;  %v4403_v14 = vpop.f32.mrb[46].mxu0  ;;  %v4546_v22 = vmax.f32 %v4534_v5, 0.0 }
 0x726   :  { %4555 = vst [vmem:[#allocation2 + $0x8] sm:$0xff] %v4551_v56  ;;  %v4532_v15 = vadd.f32 %v4511_v41, %v4403_v14  ;;  %v4405_v4 = vpop.f32.mrb[47].mxu0  ;;  %v4543_v62 = vmax.f32 %v4531_v54, 0.0 }
 0x727   :  { %4556 = vst [vmem:[#allocation2 + $0x10] sm:$0xff] %v4552_v11  ;;  %v4549_v17 = vadd.f32 %v4542_v13, %v4541_v58  ;;  %v4533_v18 = vadd.f32 %v4515_v27, %v4405_v4  ;;  %v7017_v19 = vpack.c.bf16 %v4552_v11, %v4551_v56 }
 0x728   :  { %v4544_v20 = vmax.f32 %v4532_v15, 0.0 }
 0x729   :  { %v4553_v21 = vadd.f32 %v4549_v17, %v4543_v62  ;;  %v4545_v48 = vmax.f32 %v4533_v18, 0.0  ;;  %7018 = vmatpush3.bf16.msra.mxu1 %v7017_v19 }
 0x72a   :  { %7019 = vmatprep.subr.bf16.mxu1 %v7333_v16 }
 0x72b   :  { %4557 = vst [vmem:[#allocation2 + $0x28] sm:$0xff] %v4553_v21  ;;  %v4550_v23 = vadd.f32 %v4545_v48, %v4544_v20 }
 0x72d   :  { %v4554_v0 = vadd.f32 %v4550_v23, %v4546_v22 }
 0x72f   :  { %4558 = vst [vmem:[#allocation2 + $0x30] sm:$0xff] %v4554_v0  ;;  %v7020_v25 = vpack.c.bf16 %v4554_v0, %v4553_v21 }
 0x731   :  { %7021 = vmatpush3.bf16.msra.mxu1 %v7020_v25 }
 0x734   :  { %5827 = vmatmul.mubr.msk.f32.vlgmr.msra.gmra.mrb[24].mxu1 %vm4564_vm1, %v4563_v28 }
 0x807   :  { %v4634_v29 = vpop.f32.mrb[24].mxu1 }
 0x808   :  { %v5828_v31 = vpop.f32.mrb[25].mxu1  ;;  %5862 = vmatmul.mubr.f32.vlgmr.msra.gmra.mrb[48].mxu0 %v4634_v29 }
 0x8db   :  { %v4727_v34 = vpop.f32.mrb[48].mxu0 }
 0x8dc   :  { %v4728_v35 = vadd.f32 %v4751_v33, %v4727_v34  ;;  %v5863_v16 = vpop.f32.mrb[49].mxu0 }
 0x8de   :  { %4732 = vst.msk [vmem:[#allocation11] sm:$0x3] %vm4731_vm2, %v4728_v35 }
 0x8df   :  { %7305 = shalt.err (!%p7302_p8)
}
 0x8e0   :  { %s7306_s1 = scalar_lea.hbm %s7701_s6, 32 }
 0x8e1   :  { %p7307_p9 = scmp.ne.s32.totalorder %s7701_s6, %s7306_s1  ;;  %p7310_p10 = scmp.lt.u32.totalorder %s7306_s1, %s7701_s6 }
 0x8e3   :  { %p7312_p11 = pnand %p7310_p10, %p7307_p9 }
 0x8e5   :  { %7315 = shalt.err (!%p7312_p11)
}
 0x8e6   :  { %4742 = dma.vmem_to_hbm [thread:$0]  %s4740_s7, 32, %s7701_s6, [#allocation5]  }
 0x8e7   :  { %7322 = dma.done.wait [#allocation5], 32  }
 0x8e8   :  { %7323 = vsyncadd [#allocation5], 4294967264 }
 0x8e9   :  { %4746 = vsyncpa [#allocation4], 1 }
 0x8ea   :  { %4747 = vsyncpa [#allocation7], 1 }
 0x8eb   :  { %4748 = vsyncpa [#allocation10], 1 }
 0x8ec   :  { %4749 = vsyncpa [#allocation5], 1 }

</bundles_post_ra>
